<compile_context>
chip_gen: v7x
topology: tpu7x:2x2x1
jax: 0.10.0
libtpu: 0.0.40
codegen_flags: <defaults>
</compile_context>

<pallas_src>
import jax
import jax.numpy as jnp
from jax import lax
from jax.experimental import pallas as pl
from jax.experimental.pallas import tpu as pltpu

_IN = 784     # 28*28 input features
_H1 = 384     # 320 hidden, zero-padded to a lane multiple
_H2 = 64      # 50 hidden, zero-padded to a lane multiple
_OUT = 128    # 10 logits, emitted into a lane-dense 128-wide output slab
_NCLS = 10
_TB = 256     # batch tile (multiple of MXU M dim on v5e/v6e/v7x)


def _mlp_soft_kernel(x_ref, w1_ref, b1_ref, w2_ref, b2_ref, w3_ref, b3_ref,
                     o_ref):
    x = x_ref[...]                                            # (TB, 784) bf16

    # fc1 + relu  (bf16 MXU matmul, f32 accumulate, f32 elementwise)
    h1 = jnp.dot(x, w1_ref[...], preferred_element_type=jnp.float32)
    h1 = jnp.maximum(h1 + b1_ref[...], 0.0)                   # (TB, 384)

    # (dropout -> identity in eval mode)

    # fc2 + relu
    h2 = jnp.dot(h1.astype(jnp.bfloat16), w2_ref[...],
                 preferred_element_type=jnp.float32)
    h2 = jnp.maximum(h2 + b2_ref[...], 0.0)                   # (TB, 64)

    # fc3 + relu  (output padded to 128 lanes; padded columns are exactly 0)
    h3 = jnp.dot(h2.astype(jnp.bfloat16), w3_ref[...],
                 preferred_element_type=jnp.float32)
    h3 = jnp.maximum(h3 + b3_ref[...], 0.0)                   # (TB, 128)

    # Mask padded logit lanes with -inf so they contribute nothing to softmax.
    lane = lax.broadcasted_iota(jnp.int32, h3.shape, 1)
    valid = lane < _NCLS
    neg_inf = jnp.float32(-jnp.inf)
    logits = jnp.where(valid, h3, neg_inf)

    # softmax over dim=1
    m = jnp.max(logits, axis=1, keepdims=True)
    e = jnp.exp(logits - m)                                   # padded lanes -> 0
    denom = jnp.sum(e, axis=1, keepdims=True)
    y = e * pl.reciprocal(denom, approx=True)                 # (TB, 128)

    # log_softmax over dim=1 applied to the softmax output (per the module)
    ym = jnp.where(valid, y, neg_inf)
    m2 = jnp.max(ym, axis=1, keepdims=True)
    lse = jnp.log(jnp.sum(jnp.exp(ym - m2), axis=1, keepdims=True)) + m2
    o_ref[...] = jnp.where(valid, y - lse, 0.0).astype(o_ref.dtype)


def mlp_soft_forward(x_nchw, params, *, tb=_TB):
    """x_nchw: (B, 1, 28, 28) float32. params: PyTorch-layout (W:(out,in), b:(out,)).
    Returns (B, 10) log-softmax-of-softmax output (float32)."""
    w1, b1, w2, b2, w3, b3 = params
    B = x_nchw.shape[0]
    x = x_nchw.reshape(B, -1).astype(jnp.float32)
    assert x.shape[1] == _IN, "mlp_soft expects 784 input features"

    # Transpose to (in, out), zero-pad hidden widths to lane multiples, and
    # pad the logit dim into a 128-wide slab (zeros -> masked in-kernel).
    w1p = jnp.zeros((_IN, _H1), jnp.float32).at[:, :320].set(w1.T)
    b1p = jnp.zeros((1, _H1), jnp.float32).at[:, :320].set(b1)
    w2p = jnp.zeros((_H1, _H2), jnp.float32).at[:320, :50].set(w2.T)
    b2p = jnp.zeros((1, _H2), jnp.float32).at[:, :50].set(b2)
    w3p = jnp.zeros((_H2, _OUT), jnp.float32).at[:50, :_NCLS].set(w3.T)
    b3p = jnp.zeros((1, _OUT), jnp.float32).at[:, :_NCLS].set(b3)

    # Matmul operands in bf16 (f32 accumulation inside the kernel).
    w1b = w1p.astype(jnp.bfloat16)
    w2b = w2p.astype(jnp.bfloat16)
    w3b = w3p.astype(jnp.bfloat16)

    # Pad the batch to a multiple of the tile (padded rows sliced off below).
    n_tiles = pl.cdiv(B, tb)
    Bp = n_tiles * tb
    xb = jnp.zeros((Bp, _IN), jnp.bfloat16).at[:B].set(x.astype(jnp.bfloat16))

    out = pl.pallas_call(
        _mlp_soft_kernel,
        out_shape=jax.ShapeDtypeStruct((Bp, _OUT), jnp.float32),
        grid_spec=pl.GridSpec(
            grid=(n_tiles,),
            in_specs=[
                pl.BlockSpec((tb, _IN), lambda i: (i, 0)),     # x: batch-tiled
                pl.BlockSpec((_IN, _H1), lambda i: (0, 0)),    # weights stay
                pl.BlockSpec((1, _H1), lambda i: (0, 0)),      # VMEM-resident
                pl.BlockSpec((_H1, _H2), lambda i: (0, 0)),
                pl.BlockSpec((1, _H2), lambda i: (0, 0)),
                pl.BlockSpec((_H2, _OUT), lambda i: (0, 0)),
                pl.BlockSpec((1, _OUT), lambda i: (0, 0)),
            ],
            out_specs=pl.BlockSpec((tb, _OUT), lambda i: (i, 0)),
        ),
        compiler_params=pltpu.CompilerParams(
            dimension_semantics=("parallel",),
            vmem_limit_bytes=32 * 1024 * 1024,
        ),
    )(xb, w1b, b1p, w2b, b2p, w3b, b3p)
    return out[:B, :_NCLS]


def _mlp_soft_reference(x_nchw, params):
    """Pure-JAX f32 reference (for tolerance validation against bf16 kernel)."""
    w1, b1, w2, b2, w3, b3 = params
    x = x_nchw.reshape(x_nchw.shape[0], -1)
    h1 = jnp.maximum(x @ w1.T + b1, 0.0)
    h2 = jnp.maximum(h1 @ w2.T + b2, 0.0)
    h3 = jnp.maximum(h2 @ w3.T + b3, 0.0)
    y = jax.nn.softmax(h3, axis=1)
    return jax.nn.log_softmax(y, axis=1)


def init_params(key):
    """Deterministic init matching nn.Linear (weight stored as (out, in))."""
    ks = jax.random.split(key, 6)

    def lin(kw, kb, fan_in, fan_out):
        bound = 1.0 / jnp.sqrt(fan_in)
        w = jax.random.uniform(kw, (fan_out, fan_in), jnp.float32, -bound, bound)
        b = jax.random.uniform(kb, (fan_out,), jnp.float32, -bound, bound)
        return w, b

    w1, b1 = lin(ks[0], ks[1], 784, 320)
    w2, b2 = lin(ks[2], ks[3], 320, 50)
    w3, b3 = lin(ks[4], ks[5], 50, 10)
    return (w1, b1, w2, b2, w3, b3)


if __name__ == "__main__":
    key = jax.random.PRNGKey(0)
    k_x, k_p = jax.random.split(key)

    # MNIST-shaped input: batch=2, NCHW (2, 1, 28, 28) -> flattens to 784.
    x = jax.random.normal(k_x, (2, 1, 28, 28), dtype=jnp.float32)
    params = init_params(k_p)

    out = mlp_soft_forward(x, params)
    jax.block_until_ready(out)

    assert out.shape == (2, 10)
    assert bool(jnp.all(jnp.isfinite(out)))

    # Tolerance check vs. f32 reference (bf16 matmuls break bit-parity).
    ref = _mlp_soft_reference(x, params)
    assert bool(jnp.allclose(out, ref, atol=5e-2, rtol=5e-2))

    print("KERNEL_OK")
</pallas_src>

<mosaic_0001>
module attributes {stable_mosaic.version = 11 : i64} {
  func.func @_mlp_soft_kernel(%arg0: i32, %arg1: memref<256x784xbf16, #tpu.memory_space<vmem>>, %arg2: memref<784x384xbf16, #tpu.memory_space<vmem>>, %arg3: memref<1x384xf32, #tpu.memory_space<vmem>>, %arg4: memref<384x64xbf16, #tpu.memory_space<vmem>>, %arg5: memref<1x64xf32, #tpu.memory_space<vmem>>, %arg6: memref<64x128xbf16, #tpu.memory_space<vmem>>, %arg7: memref<1x128xf32, #tpu.memory_space<vmem>>, %arg8: memref<256x128xf32, #tpu.memory_space<vmem>>) attributes {dimension_semantics = [#tpu.dimension_semantics<parallel>], iteration_bounds = array<i64: 1>, scalar_prefetch = 0 : i64, scratch_operands = 0 : i64, tpu.core_type = #tpu.core_type<tc>, window_params = [{transform_indices = @transform_0, window_bounds = array<i64: 256, 784>}, {pipeline_mode = #tpu.pipeline_mode<synchronous>, transform_indices = @transform_1, window_bounds = array<i64: 784, 384>}, {pipeline_mode = #tpu.pipeline_mode<synchronous>, transform_indices = @transform_2, window_bounds = array<i64: 1, 384>}, {pipeline_mode = #tpu.pipeline_mode<synchronous>, transform_indices = @transform_3, window_bounds = array<i64: 384, 64>}, {pipeline_mode = #tpu.pipeline_mode<synchronous>, transform_indices = @transform_4, window_bounds = array<i64: 1, 64>}, {pipeline_mode = #tpu.pipeline_mode<synchronous>, transform_indices = @transform_5, window_bounds = array<i64: 64, 128>}, {pipeline_mode = #tpu.pipeline_mode<synchronous>, transform_indices = @transform_6, window_bounds = array<i64: 1, 128>}, {transform_indices = @transform_7, window_bounds = array<i64: 256, 128>}]} {
    %c0 = arith.constant 0 : index
    %c0_0 = arith.constant 0 : index
    %0 = vector.load %arg1[%c0, %c0_0] : memref<256x784xbf16, #tpu.memory_space<vmem>>, vector<256x784xbf16>
    %c0_1 = arith.constant 0 : index
    %c0_2 = arith.constant 0 : index
    %1 = vector.load %arg2[%c0_1, %c0_2] : memref<784x384xbf16, #tpu.memory_space<vmem>>, vector<784x384xbf16>
    %cst = arith.constant dense<0.000000e+00> : vector<256x384xf32>
    %2 = tpu.matmul %0, %1, %cst {dimension_numbers = #tpu.dot_dimension_numbers<[1], [0], [0], [1], [0, 0, 1, 1], [], []>} : vector<256x784xbf16>, vector<784x384xbf16>, vector<256x384xf32> -> vector<256x384xf32>
    %c0_3 = arith.constant 0 : index
    %c0_4 = arith.constant 0 : index
    %3 = vector.load %arg3[%c0_3, %c0_4] : memref<1x384xf32, #tpu.memory_space<vmem>>, vector<1x384xf32>
    %4 = vector.broadcast %3 : vector<1x384xf32> to vector<256x384xf32>
    %5 = arith.addf %2, %4 : vector<256x384xf32>
    %cst_5 = arith.constant 0.000000e+00 : f32
    %6 = vector.broadcast %cst_5 : f32 to vector<256x384xf32>
    %7 = arith.maximumf %5, %6 : vector<256x384xf32>
    %8 = arith.truncf %7 : vector<256x384xf32> to vector<256x384xbf16>
    %c0_6 = arith.constant 0 : index
    %c0_7 = arith.constant 0 : index
    %9 = vector.load %arg4[%c0_6, %c0_7] : memref<384x64xbf16, #tpu.memory_space<vmem>>, vector<384x64xbf16>
    %cst_8 = arith.constant dense<0.000000e+00> : vector<256x64xf32>
    %10 = tpu.matmul %8, %9, %cst_8 {dimension_numbers = #tpu.dot_dimension_numbers<[1], [0], [0], [1], [0, 0, 1, 1], [], []>} : vector<256x384xbf16>, vector<384x64xbf16>, vector<256x64xf32> -> vector<256x64xf32>
    %c0_9 = arith.constant 0 : index
    %c0_10 = arith.constant 0 : index
    %11 = vector.load %arg5[%c0_9, %c0_10] : memref<1x64xf32, #tpu.memory_space<vmem>>, vector<1x64xf32>
    %12 = vector.broadcast %11 : vector<1x64xf32> to vector<256x64xf32>
    %13 = arith.addf %10, %12 : vector<256x64xf32>
    %cst_11 = arith.constant 0.000000e+00 : f32
    %14 = vector.broadcast %cst_11 : f32 to vector<256x64xf32>
    %15 = arith.maximumf %13, %14 : vector<256x64xf32>
    %16 = arith.truncf %15 : vector<256x64xf32> to vector<256x64xbf16>
    %c0_12 = arith.constant 0 : index
    %c0_13 = arith.constant 0 : index
    %17 = vector.load %arg6[%c0_12, %c0_13] : memref<64x128xbf16, #tpu.memory_space<vmem>>, vector<64x128xbf16>
    %cst_14 = arith.constant dense<0.000000e+00> : vector<256x128xf32>
    %18 = tpu.matmul %16, %17, %cst_14 {dimension_numbers = #tpu.dot_dimension_numbers<[1], [0], [0], [1], [0, 0, 1, 1], [], []>} : vector<256x64xbf16>, vector<64x128xbf16>, vector<256x128xf32> -> vector<256x128xf32>
    %c0_15 = arith.constant 0 : index
    %c0_16 = arith.constant 0 : index
    %19 = vector.load %arg7[%c0_15, %c0_16] : memref<1x128xf32, #tpu.memory_space<vmem>>, vector<1x128xf32>
    %20 = vector.broadcast %19 : vector<1x128xf32> to vector<256x128xf32>
    %21 = arith.addf %18, %20 : vector<256x128xf32>
    %cst_17 = arith.constant 0.000000e+00 : f32
    %22 = vector.broadcast %cst_17 : f32 to vector<256x128xf32>
    %23 = arith.maximumf %21, %22 : vector<256x128xf32>
    %24 = tpu.iota {dimensions = array<i32: 1>} : vector<256x128xi32>
    %c10_i32 = arith.constant 10 : i32
    %25 = vector.broadcast %c10_i32 : i32 to vector<256x128xi32>
    %26 = arith.cmpi slt, %24, %25 : vector<256x128xi32>
    %cst_18 = arith.constant 0xFF800000 : f32
    %27 = vector.broadcast %cst_18 : f32 to vector<256x128xf32>
    %28 = arith.select %26, %23, %27 : vector<256x128xi1>, vector<256x128xf32>
    %cst_19 = arith.constant dense<0xFF800000> : vector<256xf32>
    %29 = vector.multi_reduction <maximumf>, %28, %cst_19 [1] : vector<256x128xf32> to vector<256xf32>
    %30 = vector.shape_cast %29 : vector<256xf32> to vector<256x1xf32>
    %31 = vector.broadcast %30 : vector<256x1xf32> to vector<256x128xf32>
    %32 = arith.subf %28, %31 : vector<256x128xf32>
    %33 = math.exp %32 : vector<256x128xf32>
    %cst_20 = arith.constant dense<0.000000e+00> : vector<256xf32>
    %34 = vector.multi_reduction <add>, %33, %cst_20 [1] : vector<256x128xf32> to vector<256xf32>
    %35 = vector.shape_cast %34 : vector<256xf32> to vector<256x1xf32>
    %36 = tpu.reciprocal %35 {approx = true} : vector<256x1xf32> -> vector<256x1xf32>
    %37 = vector.broadcast %36 : vector<256x1xf32> to vector<256x128xf32>
    %38 = arith.mulf %33, %37 : vector<256x128xf32>
    %cst_21 = arith.constant 0xFF800000 : f32
    %39 = vector.broadcast %cst_21 : f32 to vector<256x128xf32>
    %40 = arith.select %26, %38, %39 : vector<256x128xi1>, vector<256x128xf32>
    %cst_22 = arith.constant dense<0xFF800000> : vector<256xf32>
    %41 = vector.multi_reduction <maximumf>, %40, %cst_22 [1] : vector<256x128xf32> to vector<256xf32>
    %42 = vector.shape_cast %41 : vector<256xf32> to vector<256x1xf32>
    %43 = vector.broadcast %42 : vector<256x1xf32> to vector<256x128xf32>
    %44 = arith.subf %40, %43 : vector<256x128xf32>
    %45 = math.exp %44 : vector<256x128xf32>
    %cst_23 = arith.constant dense<0.000000e+00> : vector<256xf32>
    %46 = vector.multi_reduction <add>, %45, %cst_23 [1] : vector<256x128xf32> to vector<256xf32>
    %47 = vector.shape_cast %46 : vector<256xf32> to vector<256x1xf32>
    %48 = math.log %47 : vector<256x1xf32>
    %49 = arith.addf %48, %42 : vector<256x1xf32>
    %50 = vector.broadcast %49 : vector<256x1xf32> to vector<256x128xf32>
    %51 = arith.subf %38, %50 : vector<256x128xf32>
    %cst_24 = arith.constant 0.000000e+00 : f32
    %52 = vector.broadcast %cst_24 : f32 to vector<256x128xf32>
    %53 = arith.select %26, %51, %52 : vector<256x128xi1>, vector<256x128xf32>
    %c0_25 = arith.constant 0 : index
    %c0_26 = arith.constant 0 : index
    %54 = vector.load %arg8[%c0_25, %c0_26] : memref<256x128xf32, #tpu.memory_space<vmem>>, vector<256x128xf32>
    tpu.vector_store %arg8[%c0_25, %c0_26], %53 {strides = array<i32>} : memref<256x128xf32, #tpu.memory_space<vmem>>, vector<256x128xf32>,
    return
  }
  func.func @transform_0(%arg0: i32) -> (i32, i32) {
    %c0_i32 = arith.constant 0 : i32
    %c0_i32_0 = arith.constant 0 : i32
    return %arg0, %c0_i32 : i32, i32
  }
  func.func @transform_1(%arg0: i32) -> (i32, i32) {
    %c0_i32 = arith.constant 0 : i32
    %c0_i32_0 = arith.constant 0 : i32
    %c0_i32_1 = arith.constant 0 : i32
    return %c0_i32, %c0_i32_0 : i32, i32
  }
  func.func @transform_2(%arg0: i32) -> (i32, i32) {
    %c0_i32 = arith.constant 0 : i32
    %c0_i32_0 = arith.constant 0 : i32
    %c0_i32_1 = arith.constant 0 : i32
    return %c0_i32, %c0_i32_0 : i32, i32
  }
  func.func @transform_3(%arg0: i32) -> (i32, i32) {
    %c0_i32 = arith.constant 0 : i32
    %c0_i32_0 = arith.constant 0 : i32
    %c0_i32_1 = arith.constant 0 : i32
    return %c0_i32, %c0_i32_0 : i32, i32
  }
  func.func @transform_4(%arg0: i32) -> (i32, i32) {
    %c0_i32 = arith.constant 0 : i32
    %c0_i32_0 = arith.constant 0 : i32
    %c0_i32_1 = arith.constant 0 : i32
    return %c0_i32, %c0_i32_0 : i32, i32
  }
  func.func @transform_5(%arg0: i32) -> (i32, i32) {
    %c0_i32 = arith.constant 0 : i32
    %c0_i32_0 = arith.constant 0 : i32
    %c0_i32_1 = arith.constant 0 : i32
    return %c0_i32, %c0_i32_0 : i32, i32
  }
  func.func @transform_6(%arg0: i32) -> (i32, i32) {
    %c0_i32 = arith.constant 0 : i32
    %c0_i32_0 = arith.constant 0 : i32
    %c0_i32_1 = arith.constant 0 : i32
    return %c0_i32, %c0_i32_0 : i32, i32
  }
  func.func @transform_7(%arg0: i32) -> (i32, i32) {
    %c0_i32 = arith.constant 0 : i32
    %c0_i32_0 = arith.constant 0 : i32
    return %arg0, %c0_i32 : i32, i32
  }
}

</mosaic_0001>

<bundles_post_ra>
// kernel: tpu_custom_call.1
= control target key start
LH: loop header
LB: loop body
LE: loop exit
PB: predicated region body
PF: predicated region fallthrough
CT: control target
= control target key end

     0   :  { %s9463_s0 = inlined_call_operand.vmem [shape: bf16[256,784], index: 0, kind: input, shape index: {}]   ;;  %s9464_s1 = inlined_call_operand.vmem [shape: bf16[784,384], index: 1, kind: input, shape index: {}]   ;;  %s9465_s2 = inlined_call_operand.vmem [shape: f32[1,384], index: 2, kind: input, shape index: {}]   ;;  %s9466_s3 = inlined_call_operand.vmem [shape: bf16[384,64], index: 3, kind: input, shape index: {}]   ;;  %s9467_s4 = inlined_call_operand.vmem [shape: f32[1,64], index: 4, kind: input, shape index: {}]   ;;  %s9468_s5 = inlined_call_operand.vmem [shape: bf16[64,128], index: 5, kind: input, shape index: {}]   ;;  %s9469_s6 = inlined_call_operand.vmem [shape: f32[1,128], index: 6, kind: input, shape index: {}]   ;;  %s9470_s7 = inlined_call_operand.hbm [shape: f32[256,128], index: 7, kind: output, shape index: {}]  }
   0x1   :  { %v6195_v0 = vld [vmem:[%s9464_s1 + $0x4] ss:$12 sps:$4 sm:$0xff]   ;;  %v6197_v1 = vld [vmem:[%s9464_s1 + $0xc8] ss:$12 sps:$4 sm:$0xff]   ;;  %v6198_v2 = vld [vmem:[%s9464_s1] ss:$12 sps:$4 sm:$0xff]  }
   0x2   :  { %1762 = vmatprep.subr.bf16.mxu0 %v6195_v0  ;;  %5296 = vmatprep.subr.bf16.mxu1 %v6197_v1  ;;  %v6199_v3 = vld [vmem:[%s9464_s1 + $0x8] ss:$12 sps:$4 sm:$0xff]   ;;  %v6202_v5 = vld [vmem:[%s9464_s1 + $0xe0] ss:$12 sps:$4 sm:$0xff]   ;;  %v6203_v6 = vld [vmem:[%s9464_s1 + $0x18] ss:$12 sps:$4 sm:$0xff]  }
   0x3   :  { %1763 = vmatpush1.bf16.msra.mxu0 %v6198_v2  ;;  %v6200_v4 = vld [vmem:[%s9464_s1 + $0x1c] ss:$12 sps:$4 sm:$0xff]   ;;  %5297 = vmatpush3.bf16.msra.mxu1 %v6199_v3  ;;  %v6204_v7 = vld [vmem:[%s9464_s1 + $0x20] ss:$12 sps:$4 sm:$0xff]   ;;  %v6207_v9 = vld [vmem:[%s9464_s1 + $0xf8] ss:$12 sps:$4 sm:$0xff]  }
   0x4   :  { %1764 = vmatprep.subr.bf16.mxu0 %v6200_v4  ;;  %5298 = vmatprep.subr.bf16.mxu1 %v6202_v5  ;;  %v6205_v8 = vld [vmem:[%s9464_s1 + $0x34] ss:$12 sps:$4 sm:$0xff]   ;;  %v6208_v10 = vld [vmem:[%s9464_s1 + $0x30] ss:$12 sps:$4 sm:$0xff]   ;;  %v6209_v11 = vld [vmem:[%s9464_s1 + $0x38] ss:$12 sps:$4 sm:$0xff]  }
   0x5   :  { %v6210_v12 = vld [vmem:[%s9464_s1 + $0x4c] ss:$12 sps:$4 sm:$0xff]   ;;  %v6212_v13 = vld [vmem:[%s9464_s1 + $0x110] ss:$12 sps:$4 sm:$0xff]   ;;  %v6213_v14 = vld [vmem:[%s9464_s1 + $0x48] ss:$12 sps:$4 sm:$0xff]  }
   0x6   :  { %v6214_v15 = vld [vmem:[%s9464_s1 + $0x50] ss:$12 sps:$4 sm:$0xff]   ;;  %v6217_v17 = vld [vmem:[%s9464_s1 + $0x128] ss:$12 sps:$4 sm:$0xff]   ;;  %v6218_v18 = vld [vmem:[%s9464_s1 + $0x60] ss:$12 sps:$4 sm:$0xff]  }
   0x7   :  { %1765 = vmatpush1.bf16.msra.mxu0 %v6203_v6  ;;  %5299 = vmatpush3.bf16.msra.mxu1 %v6204_v7  ;;  %v6215_v16 = vld [vmem:[%s9464_s1 + $0x64] ss:$12 sps:$4 sm:$0xff]   ;;  %v6219_v19 = vld [vmem:[%s9464_s1 + $0x68] ss:$12 sps:$4 sm:$0xff]   ;;  %v6222_v21 = vld [vmem:[%s9464_s1 + $0x140] ss:$12 sps:$4 sm:$0xff]  }
   0x8   :  { %1766 = vmatprep.subr.bf16.mxu0 %v6205_v8  ;;  %5300 = vmatprep.subr.bf16.mxu1 %v6207_v9  ;;  %v6220_v20 = vld [vmem:[%s9464_s1 + $0x7c] ss:$12 sps:$4 sm:$0xff]   ;;  %v6223_v22 = vld [vmem:[%s9464_s1 + $0x78] ss:$12 sps:$4 sm:$0xff]   ;;  %v6224_v23 = vld [vmem:[%s9464_s1 + $0x80] ss:$12 sps:$4 sm:$0xff]  }
   0x9   :  { %v6225_v24 = vld [vmem:[%s9464_s1 + $0x94] ss:$12 sps:$4 sm:$0xff]   ;;  %v6227_v25 = vld [vmem:[%s9464_s1 + $0x158] ss:$12 sps:$4 sm:$0xff]   ;;  %v6228_v26 = vld [vmem:[%s9464_s1 + $0x90] ss:$12 sps:$4 sm:$0xff]  }
   0xa   :  { %v6229_v27 = vld [vmem:[%s9464_s1 + $0x98] ss:$12 sps:$4 sm:$0xff]   ;;  %v6232_v29 = vld [vmem:[%s9464_s1 + $0x170] ss:$12 sps:$4 sm:$0xff]   ;;  %v6233_v30 = vld [vmem:[%s9464_s1 + $0xa8] ss:$12 sps:$4 sm:$0xff]  }
   0xb   :  { %1767 = vmatpush1.bf16.msra.mxu0 %v6208_v10  ;;  %5301 = vmatpush3.bf16.msra.mxu1 %v6209_v11  ;;  %v6230_v28 = vld [vmem:[%s9464_s1 + $0xac] ss:$12 sps:$4 sm:$0xff]   ;;  %v6237_v31 = vld [vmem:[%s9463_s0 + $0x4] ss:$28 sps:$4 sm:$0xff]   ;;  %v6234_v32 = vld [vmem:[%s9464_s1 + $0xb0] ss:$12 sps:$4 sm:$0xff]  }
   0xc   :  { %1768 = vmatprep.subr.bf16.mxu0 %v6210_v12  ;;  %5302 = vmatprep.subr.bf16.mxu1 %v6212_v13  ;;  %v6238_v33 = vld [vmem:[%s9464_s1 + $0xc4] ss:$12 sps:$4 sm:$0xff]   ;;  %v6235_v34 = vld [vmem:[%s9463_s0] ss:$28 sps:$4 sm:$0xff]   ;;  %v7027_v40 = vld [vmem:[%s9463_s0 + $0x38] ss:$28 sps:$4 sm:$0xff]  }
   0xd   :  { %2566 = vmatprep.mubr.bf16.mxu1 %v6237_v31  ;;  %1794 = vmatprep.mubr.bf16.mxu0 %v6237_v31  ;;  %v6240_v35 = vld [vmem:[%s9464_s1 + $0xc0] ss:$12 sps:$4 sm:$0xff]   ;;  %v6241_v36 = vld [vmem:[%s9464_s1 + $0xdc] ss:$12 sps:$4 sm:$0xff]   ;;  %v6243_v38 = vld [vmem:[%s9464_s1 + $0xd8] ss:$12 sps:$4 sm:$0xff]  }
   0xe   :  { %v6244_v37 = vld [vmem:[%s9463_s0 + $0x3c] ss:$28 sps:$4 sm:$0xff]   ;;  %v6246_v39 = vld [vmem:[%s9464_s1 + $0xf4] ss:$12 sps:$4 sm:$0xff]   ;;  %v6255_v45 = vld [vmem:[%s9464_s1 + $0x124] ss:$12 sps:$4 sm:$0xff]  }
   0xf   :  { %1769 = vmatpush1.bf16.msra.mxu0 %v6213_v14  ;;  %5303 = vmatpush3.bf16.msra.mxu1 %v6214_v15  ;;  %v6249_v41 = vld [vmem:[%s9464_s1 + $0xf0] ss:$12 sps:$4 sm:$0xff]   ;;  %v6250_v42 = vld [vmem:[%s9464_s1 + $0x10c] ss:$12 sps:$4 sm:$0xff]   ;;  %v6252_v44 = vld [vmem:[%s9464_s1 + $0x108] ss:$12 sps:$4 sm:$0xff]  }
  0x10   :  { %1770 = vmatprep.subr.bf16.mxu0 %v6215_v16  ;;  %5304 = vmatprep.subr.bf16.mxu1 %v6217_v17  ;;  %v6253_v43 = vld [vmem:[%s9463_s0 + $0x74] ss:$28 sps:$4 sm:$0xff]   ;;  %v6258_v47 = vld [vmem:[%s9464_s1 + $0x120] ss:$12 sps:$4 sm:$0xff]   ;;  %v6259_v48 = vld [vmem:[%s9464_s1 + $0x13c] ss:$12 sps:$4 sm:$0xff]  }
  0x11   :  { %v7048_v46 = vld [vmem:[%s9463_s0 + $0x70] ss:$28 sps:$4 sm:$0xff]   ;;  %v6261_v50 = vld [vmem:[%s9464_s1 + $0x138] ss:$12 sps:$4 sm:$0xff]   ;;  %v6264_v51 = vld [vmem:[%s9464_s1 + $0x154] ss:$12 sps:$4 sm:$0xff]  }
  0x12   :  { %v7059_v49 = vld [vmem:[%s9463_s0 + $0xac] ss:$28 sps:$4 sm:$0xff]   ;;  %v6267_v53 = vld [vmem:[%s9464_s1 + $0x150] ss:$12 sps:$4 sm:$0xff]   ;;  %v7083_v55 = vld [vmem:[%s9463_s0 + $0xe4] ss:$28 sps:$4 sm:$0xff]  }
  0x13   :  { %1771 = vmatpush1.bf16.msra.mxu0 %v6218_v18  ;;  %5305 = vmatpush3.bf16.msra.mxu1 %v6219_v19  ;;  %v7072_v52 = vld [vmem:[%s9463_s0 + $0xa8] ss:$28 sps:$4 sm:$0xff]   ;;  %v6268_v54 = vld [vmem:[%s9464_s1 + $0x16c] ss:$12 sps:$4 sm:$0xff]   ;;  %v7099_v59 = vld [vmem:[%s9463_s0 + $0xe0] ss:$28 sps:$4 sm:$0xff]  }
  0x14   :  { %1772 = vmatprep.subr.bf16.mxu0 %v6220_v20  ;;  %5306 = vmatprep.subr.bf16.mxu1 %v6222_v21  ;;  %v6270_v56 = vld [vmem:[%s9464_s1 + $0x168] ss:$12 sps:$4 sm:$0xff]   ;;  %v6275_v57 = vld [vmem:[%s9464_s1 + $0x184] ss:$12 sps:$4 sm:$0xff]   ;;  %v6273_v58 = vld [vmem:[%s9464_s1 + $0x180] ss:$12 sps:$4 sm:$0xff]  }
  0x15   :  { %v7104_v60 = vld [vmem:[%s9463_s0 + $0x11c] ss:$28 sps:$4 sm:$0xff]   ;;  %v6287_v63 = vld [vmem:[%s9464_s1 + $0x1b4] ss:$12 sps:$4 sm:$0xff]   ;;  %v6299_v12 = vld [vmem:[%s9464_s1 + $0x1e4] ss:$12 sps:$4 sm:$0xff]  }
  0x16   :  { %v6279_v61 = vld [vmem:[%s9464_s1 + $0x198] ss:$12 sps:$4 sm:$0xff]   ;;  %v6281_v62 = vld [vmem:[%s9464_s1 + $0x19c] ss:$12 sps:$4 sm:$0xff]   ;;  %v6327_v2 = vld [vmem:[%s9464_s1 + $0x260] ss:$12 sps:$4 sm:$0xff]  }
  0x17   :  { %1773 = vmatpush1.bf16.msra.mxu0 %v6223_v22  ;;  %5307 = vmatpush3.bf16.msra.mxu1 %v6224_v23  ;;  %v6325_v0 = vld [vmem:[%s9464_s1 + $0x248] ss:$12 sps:$4 sm:$0xff]   ;;  %v6328_v4 = vld [vmem:[%s9464_s1 + $0x1a0] ss:$12 sps:$4 sm:$0xff]   ;;  %v6285_v6 = vld [vmem:[%s9464_s1 + $0x1b0] ss:$12 sps:$4 sm:$0xff]  }
  0x18   :  { %1774 = vmatprep.subr.bf16.mxu0 %v6225_v24  ;;  %5308 = vmatprep.subr.bf16.mxu1 %v6227_v25  ;;  %v6326_v1 = vld [vmem:[%s9464_s1 + $0x188] ss:$12 sps:$4 sm:$0xff]   ;;  %v6293_v7 = vld [vmem:[%s9464_s1 + $0x1cc] ss:$12 sps:$4 sm:$0xff]   ;;  %v6337_v10 = vld [vmem:[%s9464_s1 + $0x290] ss:$12 sps:$4 sm:$0xff]  }
  0x19   :  { %v7129_v3 = vld [vmem:[%s9463_s0 + $0x118] ss:$28 sps:$4 sm:$0xff]   ;;  %v7166_v13 = vld [vmem:[%s9463_s0 + $0x150] ss:$28 sps:$4 sm:$0xff]   ;;  %v6305_v17 = vld [vmem:[%s9464_s1 + $0x1fc] ss:$12 sps:$4 sm:$0xff]  }
  0x1a   :  { %v7137_v5 = vld [vmem:[%s9463_s0 + $0x154] ss:$28 sps:$4 sm:$0xff]   ;;  %v6335_v8 = vld [vmem:[%s9464_s1 + $0x278] ss:$12 sps:$4 sm:$0xff]   ;;  %v7171_v14 = vld [vmem:[%s9463_s0 + $0x18c] ss:$28 sps:$4 sm:$0xff]  }
  0x1b   :  { %1775 = vmatpush1.bf16.msra.mxu0 %v6228_v26  ;;  %5309 = vmatpush3.bf16.msra.mxu1 %v6229_v27  ;;  %v6336_v9 = vld [vmem:[%s9464_s1 + $0x1b8] ss:$12 sps:$4 sm:$0xff]   ;;  %v6291_v11 = vld [vmem:[%s9464_s1 + $0x1c8] ss:$12 sps:$4 sm:$0xff]   ;;  %v6338_v15 = vld [vmem:[%s9464_s1 + $0x1d0] ss:$12 sps:$4 sm:$0xff]  }
  0x1c   :  { %1776 = vmatprep.subr.bf16.mxu0 %v6230_v28  ;;  %5310 = vmatprep.subr.bf16.mxu1 %v6232_v29  ;;  %v6297_v16 = vld [vmem:[%s9464_s1 + $0x1e0] ss:$12 sps:$4 sm:$0xff]   ;;  %v6345_v18 = vld [vmem:[%s9464_s1 + $0x2a8] ss:$12 sps:$4 sm:$0xff]   ;;  %v6303_v21 = vld [vmem:[%s9464_s1 + $0x1f8] ss:$12 sps:$4 sm:$0xff]  }
  0x1d   :  { %v6346_v19 = vld [vmem:[%s9464_s1 + $0x1e8] ss:$12 sps:$4 sm:$0xff]   ;;  %v6347_v20 = vld [vmem:[%s9464_s1 + $0x2c0] ss:$12 sps:$4 sm:$0xff]   ;;  %v6309_v26 = vld [vmem:[%s9464_s1 + $0x210] ss:$12 sps:$4 sm:$0xff]  }
  0x1e   :  { %v7201_v22 = vld [vmem:[%s9463_s0 + $0x188] ss:$28 sps:$4 sm:$0xff]   ;;  %v6311_v23 = vld [vmem:[%s9464_s1 + $0x214] ss:$12 sps:$4 sm:$0xff]   ;;  %v6317_v27 = vld [vmem:[%s9464_s1 + $0x22c] ss:$12 sps:$4 sm:$0xff]  }
  0x1f   :  { %1777 = vmatpush1.bf16.msra.mxu0 %v6233_v30  ;;  %5311 = vmatpush3.bf16.msra.mxu1 %v6234_v32  ;;  %v7209_v24 = vld [vmem:[%s9463_s0 + $0x1c4] ss:$28 sps:$4 sm:$0xff]   ;;  %v6357_v30 = vld [vmem:[%s9464_s1 + $0x2f0] ss:$12 sps:$4 sm:$0xff]   ;;  %v6315_v31 = vld [vmem:[%s9464_s1 + $0x228] ss:$12 sps:$4 sm:$0xff]  }
  0x20   :  { %1778 = vmatprep.subr.bf16.mxu0 %v6238_v33  ;;  %5408 = vmatprep.subr.bf16.mxu1 %v6325_v0  ;;  %v6348_v25 = vld [vmem:[%s9464_s1 + $0x200] ss:$12 sps:$4 sm:$0xff]   ;;  %v6355_v28 = vld [vmem:[%s9464_s1 + $0x2d8] ss:$12 sps:$4 sm:$0xff]  }
  0x21   :  { %v6356_v29 = vld [vmem:[%s9464_s1 + $0x218] ss:$12 sps:$4 sm:$0xff]   ;;  %v7242_v33 = vld [vmem:[%s9463_s0 + $0x1c0] ss:$28 sps:$4 sm:$0xff]   ;;  %v6349_v0 = vld [vmem:[%s9463_s0 + $0x34c] ss:$28 sps:$4 sm:$0xff]  }
  0x22   :  { %2567 = vmatmul.mubr.bf16.vlgmr.msra.gmra.mrb[0].mxu1 %v6235_v34  ;;  %v6323_v32 = vld [vmem:[%s9464_s1 + $0x244] ss:$12 sps:$4 sm:$0xff]  }
  0x23   :  { %1779 = vmatpush1.bf16.msra.mxu0 %v6240_v35  ;;  %2574 = vmatprep.mubr.bf16.mxu1 %v6244_v37  ;;  %v7250_v35 = vld [vmem:[%s9463_s0 + $0x1fc] ss:$28 sps:$4 sm:$0xff]  }
  0x24   :  { %1780 = vmatprep.subr.bf16.mxu0 %v6241_v36  ;;  %5409 = vmatpush3.bf16.msra.mxu1 %v6326_v1  ;;  %v6321_v36 = vld [vmem:[%s9464_s1 + $0x240] ss:$12 sps:$4 sm:$0xff]   ;;  %v6354_v1 = vld [vmem:[%s9463_s0 + $0x348] ss:$28 sps:$4 sm:$0xff]  }
  0x25   :  { %5410 = vmatprep.subr.bf16.mxu1 %v6327_v2  ;;  %v6361_v2 = vld [vmem:[%s9463_s0 + $0xc] ss:$28 sps:$4 sm:$0xff]  }
  0x27   :  { %1781 = vmatpush1.bf16.msra.mxu0 %v6243_v38  ;;  %v6331_v38 = vld [vmem:[%s9464_s1 + $0x258] ss:$12 sps:$4 sm:$0xff]  }
  0x28   :  { %1782 = vmatprep.subr.bf16.mxu0 %v6246_v39  ;;  %5411 = vmatpush3.bf16.msra.mxu1 %v6328_v4  ;;  %v6343_v39 = vld [vmem:[%s9464_s1 + $0x274] ss:$12 sps:$4 sm:$0xff]  }
  0x29   :  { %5412 = vmatprep.subr.bf16.mxu1 %v6335_v8  ;;  %v6365_v4 = vld [vmem:[%s9463_s0 + $0x44] ss:$28 sps:$4 sm:$0xff]  }
  0x2a   :  { %2575 = vmatmul.mubr.bf16.gmra.mrb[4].mxu1 %v7027_v40  ;;  %v6447_v8 = vld [vmem:[%s9464_s1 + $0x3f8] ss:$12 sps:$4 sm:$0xff]  }
  0x2b   :  { %1783 = vmatpush1.bf16.msra.mxu0 %v6249_v41  ;;  %2582 = vmatprep.mubr.bf16.mxu1 %v6253_v43  ;;  %v6307_v41 = vld [vmem:[%s9463_s0 + $0x234] ss:$28 sps:$4 sm:$0xff]  }
  0x2c   :  { %1784 = vmatprep.subr.bf16.mxu0 %v6250_v42  ;;  %5413 = vmatpush3.bf16.msra.mxu1 %v6336_v9  ;;  %v6341_v42 = vld [vmem:[%s9464_s1 + $0x270] ss:$12 sps:$4 sm:$0xff]  }
  0x2d   :  { %5414 = vmatprep.subr.bf16.mxu1 %v6337_v10  ;;  %v6370_v9 = vld [vmem:[%s9463_s0 + $0x40] ss:$28 sps:$4 sm:$0xff]  }
  0x2e   :  { %v6371_v10 = vld [vmem:[%s9463_s0 + $0x7c] ss:$28 sps:$4 sm:$0xff]  }
  0x2f   :  { %1785 = vmatpush1.bf16.msra.mxu0 %v6252_v44  ;;  %v6351_v44 = vld [vmem:[%s9464_s1 + $0x288] ss:$12 sps:$4 sm:$0xff]  }
  0x30   :  { %1786 = vmatprep.subr.bf16.mxu0 %v6255_v45  ;;  %5415 = vmatpush3.bf16.msra.mxu1 %v6338_v15  ;;  %v6364_v45 = vld [vmem:[%s9464_s1 + $0x2a4] ss:$12 sps:$4 sm:$0xff]   ;;  %v6376_v15 = vld [vmem:[%s9463_s0 + $0x78] ss:$28 sps:$4 sm:$0xff]  }
  0x31   :  { %5416 = vmatprep.subr.bf16.mxu1 %v6345_v18  ;;  %v6459_v18 = vld [vmem:[%s9464_s1 + $0x440] ss:$12 sps:$4 sm:$0xff]  }
  0x32   :  { %2583 = vmatmul.mubr.bf16.gmra.mrb[8].mxu1 %v7048_v46 }
  0x33   :  { %1787 = vmatpush1.bf16.msra.mxu0 %v6258_v47  ;;  %2590 = vmatprep.mubr.bf16.mxu1 %v7059_v49  ;;  %v6313_v47 = vld [vmem:[%s9463_s0 + $0x26c] ss:$28 sps:$4 sm:$0xff]  }
  0x34   :  { %1788 = vmatprep.subr.bf16.mxu0 %v6259_v48  ;;  %5417 = vmatpush3.bf16.msra.mxu1 %v6346_v19  ;;  %v6362_v48 = vld [vmem:[%s9464_s1 + $0x2a0] ss:$12 sps:$4 sm:$0xff]  }
  0x35   :  { %5418 = vmatprep.subr.bf16.mxu1 %v6347_v20  ;;  %v6460_v19 = vld [vmem:[%s9464_s1 + $0x380] ss:$12 sps:$4 sm:$0xff]   ;;  %v6467_v20 = vld [vmem:[%s9464_s1 + $0x458] ss:$12 sps:$4 sm:$0xff]  }
  0x37   :  { %1789 = vmatpush1.bf16.msra.mxu0 %v6261_v50  ;;  %v6367_v50 = vld [vmem:[%s9464_s1 + $0x2b8] ss:$12 sps:$4 sm:$0xff]  }
  0x38   :  { %1790 = vmatprep.subr.bf16.mxu0 %v6264_v51  ;;  %5419 = vmatpush3.bf16.msra.mxu1 %v6348_v25  ;;  %v6375_v51 = vld [vmem:[%s9464_s1 + $0x2d4] ss:$12 sps:$4 sm:$0xff]   ;;  %v6470_v25 = vld [vmem:[%s9464_s1 + $0x3b0] ss:$12 sps:$4 sm:$0xff]  }
  0x39   :  { %5420 = vmatprep.subr.bf16.mxu1 %v6355_v28  ;;  %v6389_v28 = vld [vmem:[%s9463_s0 + $0x124] ss:$28 sps:$4 sm:$0xff]  }
  0x3a   :  { %2591 = vmatmul.mubr.bf16.gmra.mrb[12].mxu1 %v7072_v52 }
  0x3b   :  { %1791 = vmatpush1.bf16.msra.mxu0 %v6267_v53  ;;  %2598 = vmatprep.mubr.bf16.mxu1 %v7083_v55  ;;  %v6319_v53 = vld [vmem:[%s9463_s0 + $0x2a4] ss:$28 sps:$4 sm:$0xff]  }
  0x3c   :  { %1792 = vmatprep.subr.bf16.mxu0 %v6268_v54  ;;  %5421 = vmatpush3.bf16.msra.mxu1 %v6356_v29  ;;  %v6373_v54 = vld [vmem:[%s9464_s1 + $0x2d0] ss:$12 sps:$4 sm:$0xff]  }
  0x3d   :  { %5422 = vmatprep.subr.bf16.mxu1 %v6357_v30  ;;  %v6393_v29 = vld [vmem:[%s9464_s1 + $0x31c] ss:$12 sps:$4 sm:$0xff]   ;;  %v6391_v30 = vld [vmem:[%s9464_s1 + $0x318] ss:$12 sps:$4 sm:$0xff]  }
  0x3f   :  { %1793 = vmatpush1.bf16.msra.mxu0 %v6270_v56  ;;  %v6379_v56 = vld [vmem:[%s9464_s1 + $0x2e8] ss:$12 sps:$4 sm:$0xff]  }
  0x40   :  { %1955 = vmatprep.subr.bf16.mxu0 %v6275_v57  ;;  %v6387_v57 = vld [vmem:[%s9464_s1 + $0x304] ss:$12 sps:$4 sm:$0xff]  }
  0x42   :  { %1795 = vmatmul.mubr.bf16.vlgmr.msra.gmra.mrb[0].mxu0 %v6235_v34  ;;  %2599 = vmatmul.mubr.bf16.gmra.mrb[16].mxu1 %v7099_v59  ;;  %v6358_v34 = vld [vmem:[%s9464_s1 + $0x230] ss:$12 sps:$4 sm:$0xff]  }
  0x43   :  { %1956 = vmatpush1.bf16.msra.mxu0 %v6273_v58  ;;  %1804 = vmatprep.mubr.bf16.mxu0 %v6244_v37  ;;  %v6333_v37 = vld [vmem:[%s9464_s1 + $0x25c] ss:$12 sps:$4 sm:$0xff]  }
  0x44   :  { %2606 = vmatprep.mubr.bf16.mxu1 %v7104_v60  ;;  %1957 = vmatprep.subr.bf16.mxu0 %v6281_v62  ;;  %v6324_v58 = vld [vmem:[%s9463_s0 + $0x2a0] ss:$28 sps:$4 sm:$0xff]   ;;  %v6339_v62 = vld [vmem:[%s9463_s0 + $0x314] ss:$28 sps:$4 sm:$0xff]  }
  0x45   :  { %5423 = vmatpush3.bf16.msra.mxu1 %v6358_v34 }
  0x47   :  { %1958 = vmatpush1.bf16.msra.mxu0 %v6279_v61  ;;  %v6334_v61 = vld [vmem:[%s9463_s0 + $0x2d8] ss:$28 sps:$4 sm:$0xff]  }
  0x48   :  { %1959 = vmatprep.subr.bf16.mxu0 %v6287_v63  ;;  %v6344_v63 = vld [vmem:[%s9463_s0 + $0x310] ss:$28 sps:$4 sm:$0xff]  }
  0x4a   :  { %1805 = vmatmul.mubr.bf16.gmra.mrb[4].mxu0 %v7027_v40  ;;  %2607 = vmatmul.mubr.bf16.gmra.mrb[20].mxu1 %v7129_v3  ;;  %v6306_v40 = vld [vmem:[%s9463_s0 + $0x1f8] ss:$28 sps:$4 sm:$0xff]  }
  0x4b   :  { %1814 = vmatprep.mubr.bf16.mxu0 %v6253_v43  ;;  %2614 = vmatprep.mubr.bf16.mxu1 %v7137_v5  ;;  %v6353_v43 = vld [vmem:[%s9464_s1 + $0x28c] ss:$12 sps:$4 sm:$0xff]  }
  0x4c   :  { %1960 = vmatpush1.bf16.msra.mxu0 %v6285_v6  ;;  %v6439_v6 = vld [vmem:[%s9464_s1 + $0x3e0] ss:$12 sps:$4 sm:$0xff]  }
  0x4d   :  { %1961 = vmatprep.subr.bf16.mxu0 %v6293_v7  ;;  %v6440_v7 = vld [vmem:[%s9464_s1 + $0x320] ss:$12 sps:$4 sm:$0xff]  }
  0x50   :  { %1962 = vmatpush1.bf16.msra.mxu0 %v6291_v11  ;;  %v6448_v11 = vld [vmem:[%s9464_s1 + $0x338] ss:$12 sps:$4 sm:$0xff]  }
  0x51   :  { %1963 = vmatprep.subr.bf16.mxu0 %v6299_v12  ;;  %v6449_v12 = vld [vmem:[%s9464_s1 + $0x410] ss:$12 sps:$4 sm:$0xff]  }
  0x52   :  { %1815 = vmatmul.mubr.bf16.gmra.mrb[8].mxu0 %v7048_v46  ;;  %2615 = vmatmul.mubr.bf16.gmra.mrb[24].mxu1 %v7166_v13  ;;  %v6312_v46 = vld [vmem:[%s9463_s0 + $0x230] ss:$28 sps:$4 sm:$0xff]  }
  0x53   :  { %1824 = vmatprep.mubr.bf16.mxu0 %v7059_v49  ;;  %2622 = vmatprep.mubr.bf16.mxu1 %v7171_v14  ;;  %v6369_v49 = vld [vmem:[%s9464_s1 + $0x2bc] ss:$12 sps:$4 sm:$0xff]  }
  0x54   :  { %1964 = vmatpush1.bf16.msra.mxu0 %v6297_v16  ;;  %v6377_v16 = vld [vmem:[%s9463_s0 + $0xb4] ss:$28 sps:$4 sm:$0xff]  }
  0x55   :  { %1965 = vmatprep.subr.bf16.mxu0 %v6305_v17  ;;  %v6458_v17 = vld [vmem:[%s9464_s1 + $0x368] ss:$12 sps:$4 sm:$0xff]  }
  0x58   :  { %1966 = vmatpush1.bf16.msra.mxu0 %v6303_v21  ;;  %v6382_v21 = vld [vmem:[%s9463_s0 + $0xb0] ss:$28 sps:$4 sm:$0xff]  }
  0x59   :  { %1967 = vmatprep.subr.bf16.mxu0 %v6311_v23  ;;  %v6468_v23 = vld [vmem:[%s9464_s1 + $0x398] ss:$12 sps:$4 sm:$0xff]  }
  0x5a   :  { %1825 = vmatmul.mubr.bf16.gmra.mrb[12].mxu0 %v7072_v52  ;;  %2623 = vmatmul.mubr.bf16.gmra.mrb[28].mxu1 %v7201_v22  ;;  %v6318_v52 = vld [vmem:[%s9463_s0 + $0x268] ss:$28 sps:$4 sm:$0xff]  }
  0x5b   :  { %1834 = vmatprep.mubr.bf16.mxu0 %v7083_v55  ;;  %2630 = vmatprep.mubr.bf16.mxu1 %v7209_v24  ;;  %v6381_v55 = vld [vmem:[%s9464_s1 + $0x2ec] ss:$12 sps:$4 sm:$0xff]  }
  0x5c   :  { %1968 = vmatpush1.bf16.msra.mxu0 %v6309_v26  ;;  %v6385_v26 = vld [vmem:[%s9464_s1 + $0x300] ss:$12 sps:$4 sm:$0xff]  }
  0x5d   :  { %1969 = vmatprep.subr.bf16.mxu0 %v6317_v27  ;;  %v6388_v27 = vld [vmem:[%s9463_s0 + $0xe8] ss:$28 sps:$4 sm:$0xff]  }
  0x60   :  { %1970 = vmatpush1.bf16.msra.mxu0 %v6315_v31  ;;  %v6399_v31 = vld [vmem:[%s9464_s1 + $0x334] ss:$12 sps:$4 sm:$0xff]  }
  0x61   :  { %1971 = vmatprep.subr.bf16.mxu0 %v6323_v32  ;;  %v6394_v32 = vld [vmem:[%s9463_s0 + $0x120] ss:$28 sps:$4 sm:$0xff]  }
  0x62   :  { %1835 = vmatmul.mubr.bf16.gmra.mrb[16].mxu0 %v7099_v59  ;;  %2631 = vmatmul.mubr.bf16.gmra.mrb[32].mxu1 %v7242_v33  ;;  %v6329_v59 = vld [vmem:[%s9463_s0 + $0x2dc] ss:$28 sps:$4 sm:$0xff]  }
  0x63   :  { %1844 = vmatprep.mubr.bf16.mxu0 %v7104_v60  ;;  %2638 = vmatprep.mubr.bf16.mxu1 %v7250_v35  ;;  %v6437_v60 = vld [vmem:[%s9464_s1 + $0x3c8] ss:$12 sps:$4 sm:$0xff]  }
  0x64   :  { %1972 = vmatpush1.bf16.msra.mxu0 %v6321_v36  ;;  %5520 = vmatprep.subr.bf16.mxu1 %v6437_v60 }
  0x65   :  { %1973 = vmatprep.subr.bf16.mxu0 %v6333_v37 }
  0x68   :  { %1974 = vmatpush1.bf16.msra.mxu0 %v6331_v38 }
  0x69   :  { %1975 = vmatprep.subr.bf16.mxu0 %v6343_v39 }
  0x6a   :  { %1845 = vmatmul.mubr.bf16.gmra.mrb[20].mxu0 %v7129_v3  ;;  %2639 = vmatmul.mubr.bf16.gmra.mrb[36].mxu1 %v6306_v40  ;;  %v6359_v3 = vld [vmem:[%s9463_s0 + $0x8] ss:$28 sps:$4 sm:$0xff]  }
  0x6b   :  { %1854 = vmatprep.mubr.bf16.mxu0 %v7137_v5  ;;  %2646 = vmatprep.mubr.bf16.mxu1 %v6307_v41  ;;  %v6438_v5 = vld [vmem:[%s9464_s1 + $0x308] ss:$12 sps:$4 sm:$0xff]  }
  0x6c   :  { %1976 = vmatpush1.bf16.msra.mxu0 %v6341_v42 }
  0x6d   :  { %1977 = vmatprep.subr.bf16.mxu0 %v6353_v43 }
  0x70   :  { %1978 = vmatpush1.bf16.msra.mxu0 %v6351_v44 }
  0x71   :  { %1979 = vmatprep.subr.bf16.mxu0 %v6364_v45 }
  0x72   :  { %1855 = vmatmul.mubr.bf16.gmra.mrb[24].mxu0 %v7166_v13  ;;  %2647 = vmatmul.mubr.bf16.gmra.mrb[40].mxu1 %v6312_v46  ;;  %v6450_v13 = vld [vmem:[%s9464_s1 + $0x350] ss:$12 sps:$4 sm:$0xff]  }
  0x73   :  { %1864 = vmatprep.mubr.bf16.mxu0 %v7171_v14  ;;  %2654 = vmatprep.mubr.bf16.mxu1 %v6313_v47  ;;  %v6457_v14 = vld [vmem:[%s9464_s1 + $0x428] ss:$12 sps:$4 sm:$0xff]  }
  0x74   :  { %1980 = vmatpush1.bf16.msra.mxu0 %v6362_v48 }
  0x75   :  { %1981 = vmatprep.subr.bf16.mxu0 %v6369_v49 }
  0x78   :  { %1982 = vmatpush1.bf16.msra.mxu0 %v6367_v50 }
  0x79   :  { %1983 = vmatprep.subr.bf16.mxu0 %v6375_v51 }
  0x7a   :  { %1865 = vmatmul.mubr.bf16.gmra.mrb[28].mxu0 %v7201_v22  ;;  %2655 = vmatmul.mubr.bf16.gmra.mrb[44].mxu1 %v6318_v52  ;;  %v6383_v22 = vld [vmem:[%s9463_s0 + $0xec] ss:$28 sps:$4 sm:$0xff]  }
  0x7b   :  { %1874 = vmatprep.mubr.bf16.mxu0 %v7209_v24  ;;  %2662 = vmatprep.mubr.bf16.mxu1 %v6319_v53  ;;  %v6469_v24 = vld [vmem:[%s9464_s1 + $0x470] ss:$12 sps:$4 sm:$0xff]  }
  0x7c   :  { %1984 = vmatpush1.bf16.msra.mxu0 %v6373_v54 }
  0x7d   :  { %1985 = vmatprep.subr.bf16.mxu0 %v6381_v55 }
  0x80   :  { %1986 = vmatpush1.bf16.msra.mxu0 %v6379_v56 }
  0x81   :  { %2148 = vmatprep.subr.bf16.mxu0 %v6387_v57 }
  0x82   :  { %1875 = vmatmul.mubr.bf16.gmra.mrb[32].mxu0 %v7242_v33  ;;  %2663 = vmatmul.mubr.bf16.gmra.mrb[48].mxu1 %v6324_v58 }
  0x83   :  { %1884 = vmatprep.mubr.bf16.mxu0 %v7250_v35  ;;  %2670 = vmatprep.mubr.bf16.mxu1 %v6329_v59 }
  0x8a   :  { %1885 = vmatmul.mubr.bf16.gmra.mrb[36].mxu0 %v6306_v40  ;;  %2671 = vmatmul.mubr.bf16.gmra.mrb[52].mxu1 %v6334_v61 }
  0x8b   :  { %1894 = vmatprep.mubr.bf16.mxu0 %v6307_v41  ;;  %2678 = vmatprep.mubr.bf16.mxu1 %v6339_v62 }
  0x92   :  { %1895 = vmatmul.mubr.bf16.gmra.mrb[40].mxu0 %v6312_v46  ;;  %2679 = vmatmul.mubr.bf16.gmra.mrb[56].mxu1 %v6344_v63 }
  0x93   :  { %1904 = vmatprep.mubr.bf16.mxu0 %v6313_v47  ;;  %2686 = vmatprep.mubr.bf16.mxu1 %v6349_v0 }
  0x9a   :  { %1905 = vmatmul.mubr.bf16.gmra.mrb[44].mxu0 %v6318_v52  ;;  %2687 = vmatmul.mubr.bf16.gmra.mrb[60].mxu1 %v6354_v1 }
  0x9b   :  { %1914 = vmatprep.mubr.bf16.mxu0 %v6319_v53  ;;  %2727 = vmatprep.mubr.bf16.mxu1 %v6361_v2 }
  0xa2   :  { %1915 = vmatmul.mubr.bf16.gmra.mrb[48].mxu0 %v6324_v58  ;;  %2728 = vmatmul.mubr.bf16.vlgmr.msra.gmra.mrb[64].mxu1 %v6359_v3 }
  0xa3   :  { %1924 = vmatprep.mubr.bf16.mxu0 %v6329_v59  ;;  %2735 = vmatprep.mubr.bf16.mxu1 %v6365_v4 }
  0xa4   :  { %5521 = vmatpush3.bf16.msra.mxu1 %v6438_v5 }
  0xa5   :  { %5522 = vmatprep.subr.bf16.mxu1 %v6439_v6 }
  0xa8   :  { %5523 = vmatpush3.bf16.msra.mxu1 %v6440_v7 }
  0xa9   :  { %5524 = vmatprep.subr.bf16.mxu1 %v6447_v8 }
  0xaa   :  { %1925 = vmatmul.mubr.bf16.gmra.mrb[52].mxu0 %v6334_v61  ;;  %2736 = vmatmul.mubr.bf16.gmra.mrb[68].mxu1 %v6370_v9 }
  0xab   :  { %1934 = vmatprep.mubr.bf16.mxu0 %v6339_v62  ;;  %2743 = vmatprep.mubr.bf16.mxu1 %v6371_v10 }
  0xac   :  { %5525 = vmatpush3.bf16.msra.mxu1 %v6448_v11 }
  0xad   :  { %5526 = vmatprep.subr.bf16.mxu1 %v6449_v12 }
  0xb0   :  { %5527 = vmatpush3.bf16.msra.mxu1 %v6450_v13 }
  0xb1   :  { %5528 = vmatprep.subr.bf16.mxu1 %v6457_v14 }
  0xb2   :  { %1935 = vmatmul.mubr.bf16.gmra.mrb[56].mxu0 %v6344_v63  ;;  %2744 = vmatmul.mubr.bf16.gmra.mrb[72].mxu1 %v6376_v15 }
  0xb3   :  { %1944 = vmatprep.mubr.bf16.mxu0 %v6349_v0  ;;  %2751 = vmatprep.mubr.bf16.mxu1 %v6377_v16 }
  0xb4   :  { %5529 = vmatpush3.bf16.msra.mxu1 %v6458_v17 }
  0xb5   :  { %5530 = vmatprep.subr.bf16.mxu1 %v6459_v18 }
  0xb8   :  { %5531 = vmatpush3.bf16.msra.mxu1 %v6460_v19 }
  0xb9   :  { %5532 = vmatprep.subr.bf16.mxu1 %v6467_v20 }
  0xba   :  { %1945 = vmatmul.mubr.bf16.gmra.mrb[60].mxu0 %v6354_v1  ;;  %2752 = vmatmul.mubr.bf16.gmra.mrb[76].mxu1 %v6382_v21 }
  0xbb   :  { %1987 = vmatprep.mubr.bf16.mxu0 %v6361_v2  ;;  %2759 = vmatprep.mubr.bf16.mxu1 %v6383_v22 }
  0xbc   :  { %5533 = vmatpush3.bf16.msra.mxu1 %v6468_v23 }
  0xbd   :  { %5534 = vmatprep.subr.bf16.mxu1 %v6469_v24 }
  0xc0   :  { %5535 = vmatpush3.bf16.msra.mxu1 %v6470_v25 }
  0xc2   :  { %1988 = vmatmul.mubr.bf16.vlgmr.msra.gmra.mrb[0].mxu0 %v6359_v3  ;;  %2760 = vmatmul.mubr.bf16.gmra.mrb[80].mxu1 %v6388_v27 }
  0xc3   :  { %2149 = vmatpush1.bf16.msra.mxu0 %v6385_v26  ;;  %1997 = vmatprep.mubr.bf16.mxu0 %v6365_v4 }
  0xc4   :  { %2767 = vmatprep.mubr.bf16.mxu1 %v6389_v28  ;;  %2150 = vmatprep.subr.bf16.mxu0 %v6393_v29 }
  0xc7   :  { %2151 = vmatpush1.bf16.msra.mxu0 %v6391_v30 }
  0xc8   :  { %12 = vsyncpa [#allocation3], 0  ;;  %v6395_v33 = vld [vmem:[%s9463_s0 + $0x15c] ss:$28 sps:$4 sm:$0xff]   ;;  %2152 = vmatprep.subr.bf16.mxu0 %v6399_v31  ;;  %v6403_v36 = vld [vmem:[%s9464_s1 + $0x348] ss:$12 sps:$4 sm:$0xff]  }
  0xc9   :  { %v6397_v34 = vld [vmem:[%s9464_s1 + $0x330] ss:$12 sps:$4 sm:$0xff]   ;;  %v6405_v35 = vld [vmem:[%s9464_s1 + $0x34c] ss:$12 sps:$4 sm:$0xff]   ;;  %v6423_v43 = vld [vmem:[%s9464_s1 + $0x394] ss:$12 sps:$4 sm:$0xff]  }
  0xca   :  { %1998 = vmatmul.mubr.bf16.gmra.mrb[4].mxu0 %v6370_v9  ;;  %2768 = vmatmul.mubr.bf16.gmra.mrb[84].mxu1 %v6394_v32  ;;  %v6411_v37 = vld [vmem:[%s9464_s1 + $0x364] ss:$12 sps:$4 sm:$0xff]   ;;  %v6400_v38 = vld [vmem:[%s9463_s0 + $0x158] ss:$28 sps:$4 sm:$0xff]   ;;  %v6409_v40 = vld [vmem:[%s9464_s1 + $0x360] ss:$12 sps:$4 sm:$0xff]  }
  0xcb   :  { %2007 = vmatprep.mubr.bf16.mxu0 %v6371_v10  ;;  %2775 = vmatprep.mubr.bf16.mxu1 %v6395_v33  ;;  %v6401_v39 = vld [vmem:[%s9463_s0 + $0x194] ss:$28 sps:$4 sm:$0xff]   ;;  %v6417_v41 = vld [vmem:[%s9464_s1 + $0x37c] ss:$12 sps:$4 sm:$0xff]   ;;  %v6415_v42 = vld [vmem:[%s9464_s1 + $0x378] ss:$12 sps:$4 sm:$0xff]  }
  0xcc   :  { %2153 = vmatpush1.bf16.msra.mxu0 %v6397_v34  ;;  %v7483_v44 = vld [vmem:[%s9463_s0 + $0x190] ss:$28 sps:$4 sm:$0xff]   ;;  %v6427_v48 = vld [vmem:[%s9464_s1 + $0x3a8] ss:$12 sps:$4 sm:$0xff]   ;;  %v7512_v51 = vld [vmem:[%s9463_s0 + $0x204] ss:$28 sps:$4 sm:$0xff]  }
  0xcd   :  { %2154 = vmatprep.subr.bf16.mxu0 %v6405_v35  ;;  %v7488_v45 = vld [vmem:[%s9463_s0 + $0x1cc] ss:$28 sps:$4 sm:$0xff]   ;;  %v6421_v46 = vld [vmem:[%s9464_s1 + $0x390] ss:$12 sps:$4 sm:$0xff]   ;;  %v6443_v54 = vld [vmem:[%s9464_s1 + $0x3d8] ss:$12 sps:$4 sm:$0xff]  }
  0xce   :  { %v6429_v47 = vld [vmem:[%s9464_s1 + $0x3ac] ss:$12 sps:$4 sm:$0xff]   ;;  %v6435_v49 = vld [vmem:[%s9464_s1 + $0x3c4] ss:$12 sps:$4 sm:$0xff]   ;;  %v6445_v53 = vld [vmem:[%s9464_s1 + $0x3dc] ss:$12 sps:$4 sm:$0xff]  }
  0xcf   :  { %v7507_v50 = vld [vmem:[%s9463_s0 + $0x1c8] ss:$28 sps:$4 sm:$0xff]   ;;  %v6433_v52 = vld [vmem:[%s9464_s1 + $0x3c0] ss:$12 sps:$4 sm:$0xff]   ;;  %v7536_v57 = vld [vmem:[%s9463_s0 + $0x23c] ss:$28 sps:$4 sm:$0xff]  }
  0xd0   :  { %2155 = vmatpush1.bf16.msra.mxu0 %v6403_v36  ;;  %v6455_v55 = vld [vmem:[%s9464_s1 + $0x3f4] ss:$12 sps:$4 sm:$0xff]   ;;  %v6453_v58 = vld [vmem:[%s9464_s1 + $0x3f0] ss:$12 sps:$4 sm:$0xff]   ;;  %v6465_v59 = vld [vmem:[%s9464_s1 + $0x40c] ss:$12 sps:$4 sm:$0xff]  }
  0xd1   :  { %2156 = vmatprep.subr.bf16.mxu0 %v6411_v37  ;;  %v7531_v56 = vld [vmem:[%s9463_s0 + $0x200] ss:$28 sps:$4 sm:$0xff]   ;;  %v6463_v60 = vld [vmem:[%s9464_s1 + $0x408] ss:$12 sps:$4 sm:$0xff]   ;;  %v6476_v61 = vld [vmem:[%s9464_s1 + $0x424] ss:$12 sps:$4 sm:$0xff]  }
  0xd2   :  { %2008 = vmatmul.mubr.bf16.gmra.mrb[8].mxu0 %v6376_v15  ;;  %2776 = vmatmul.mubr.bf16.gmra.mrb[88].mxu1 %v6400_v38  ;;  %v7555_v62 = vld [vmem:[%s9463_s0 + $0x238] ss:$28 sps:$4 sm:$0xff]   ;;  %v6474_v0 = vld [vmem:[%s9464_s1 + $0x420] ss:$12 sps:$4 sm:$0xff]   ;;  %v6481_v1 = vld [vmem:[%s9464_s1 + $0x43c] ss:$12 sps:$4 sm:$0xff]  }
  0xd3   :  { %2017 = vmatprep.mubr.bf16.mxu0 %v6377_v16  ;;  %2783 = vmatprep.mubr.bf16.mxu1 %v6401_v39  ;;  %v7560_v63 = vld [vmem:[%s9463_s0 + $0x274] ss:$28 sps:$4 sm:$0xff]   ;;  %v6479_v2 = vld [vmem:[%s9464_s1 + $0x438] ss:$12 sps:$4 sm:$0xff]   ;;  %v7584_v7 = vld [vmem:[%s9463_s0 + $0x2ac] ss:$28 sps:$4 sm:$0xff]  }
  0xd4   :  { %2157 = vmatpush1.bf16.msra.mxu0 %v6409_v40  ;;  %v6487_v3 = vld [vmem:[%s9464_s1 + $0x454] ss:$12 sps:$4 sm:$0xff]   ;;  %v7579_v5 = vld [vmem:[%s9463_s0 + $0x270] ss:$28 sps:$4 sm:$0xff]   ;;  %v6436_v17 = vld [vmem:[%s9463_s0 + $0x2a8] ss:$28 sps:$4 sm:$0xff]  }
  0xd5   :  { %2158 = vmatprep.subr.bf16.mxu0 %v6417_v41  ;;  %v6485_v8 = vld [vmem:[%s9464_s1 + $0x450] ss:$12 sps:$4 sm:$0xff]   ;;  %v6493_v12 = vld [vmem:[%s9464_s1 + $0x46c] ss:$12 sps:$4 sm:$0xff]   ;;  %v6491_v14 = vld [vmem:[%s9464_s1 + $0x468] ss:$12 sps:$4 sm:$0xff]  }
  0xd6   :  { %v6499_v15 = vld [vmem:[%s9464_s1 + $0x484] ss:$12 sps:$4 sm:$0xff]   ;;  %v6525_v24 = vld [vmem:[%s9464_s1 + $0x488] ss:$12 sps:$4 sm:$0xff]   ;;  %v6446_v26 = vld [vmem:[%s9463_s0 + $0x2e0] ss:$28 sps:$4 sm:$0xff]  }
  0xd7   :  { %v6441_v19 = vld [vmem:[%s9463_s0 + $0x2e4] ss:$28 sps:$4 sm:$0xff]   ;;  %5805 = vmatprep.subr.bf16.mxu1 %v6525_v24  ;;  %v6456_v34 = vld [vmem:[%s9463_s0 + $0x318] ss:$28 sps:$4 sm:$0xff]   ;;  %vm1713_vm0 = vcmask 130048   ;;  %vm3930_vm1 = vcmask 523264  }
  0xd8   :  { %2159 = vmatpush1.bf16.msra.mxu0 %v6415_v42  ;;  %v6461_v36 = vld [vmem:[%s9463_s0 + $0x354] ss:$28 sps:$4 sm:$0xff]  }
  0xd9   :  { %2160 = vmatprep.subr.bf16.mxu0 %v6423_v43  ;;  %v6466_v42 = vld [vmem:[%s9463_s0 + $0x350] ss:$28 sps:$4 sm:$0xff]  }
  0xda   :  { %2018 = vmatmul.mubr.bf16.gmra.mrb[12].mxu0 %v6382_v21  ;;  %2784 = vmatmul.mubr.bf16.gmra.mrb[92].mxu1 %v7483_v44 }
  0xdb   :  { %2027 = vmatprep.mubr.bf16.mxu0 %v6383_v22  ;;  %2791 = vmatprep.mubr.bf16.mxu1 %v7488_v45 }
  0xdc   :  { %2161 = vmatpush1.bf16.msra.mxu0 %v6421_v46 }
  0xdd   :  { %2162 = vmatprep.subr.bf16.mxu0 %v6429_v47 }
  0xe0   :  { %2163 = vmatpush1.bf16.msra.mxu0 %v6427_v48 }
  0xe1   :  { %2164 = vmatprep.subr.bf16.mxu0 %v6435_v49 }
  0xe2   :  { %2028 = vmatmul.mubr.bf16.gmra.mrb[16].mxu0 %v6388_v27  ;;  %2792 = vmatmul.mubr.bf16.gmra.mrb[96].mxu1 %v7507_v50 }
  0xe3   :  { %2037 = vmatprep.mubr.bf16.mxu0 %v6389_v28  ;;  %2799 = vmatprep.mubr.bf16.mxu1 %v7512_v51  ;;  %v6451_v28 = vld [vmem:[%s9463_s0 + $0x31c] ss:$28 sps:$4 sm:$0xff]  }
  0xe4   :  { %2165 = vmatpush1.bf16.msra.mxu0 %v6433_v52  ;;  %v6477_v52 = vld [vmem:[%s9463_s0 + $0x4c] ss:$28 sps:$4 sm:$0xff]  }
  0xe5   :  { %2166 = vmatprep.subr.bf16.mxu0 %v6445_v53 }
  0xe8   :  { %2167 = vmatpush1.bf16.msra.mxu0 %v6443_v54 }
  0xe9   :  { %2168 = vmatprep.subr.bf16.mxu0 %v6455_v55 }
  0xea   :  { %2038 = vmatmul.mubr.bf16.gmra.mrb[20].mxu0 %v6394_v32  ;;  %2800 = vmatmul.mubr.bf16.gmra.mrb[100].mxu1 %v7531_v56 }
  0xeb   :  { %2047 = vmatprep.mubr.bf16.mxu0 %v6395_v33  ;;  %2807 = vmatprep.mubr.bf16.mxu1 %v7536_v57 }
  0xec   :  { %2169 = vmatpush1.bf16.msra.mxu0 %v6453_v58  ;;  %v6482_v58 = vld [vmem:[%s9463_s0 + $0x48] ss:$28 sps:$4 sm:$0xff]  }
  0xed   :  { %2170 = vmatprep.subr.bf16.mxu0 %v6465_v59 }
  0xf0   :  { %2171 = vmatpush1.bf16.msra.mxu0 %v6463_v60  ;;  %v6483_v60 = vld [vmem:[%s9463_s0 + $0x84] ss:$28 sps:$4 sm:$0xff]  }
  0xf1   :  { %2172 = vmatprep.subr.bf16.mxu0 %v6476_v61 }
  0xf2   :  { %2048 = vmatmul.mubr.bf16.gmra.mrb[24].mxu0 %v6400_v38  ;;  %2808 = vmatmul.mubr.bf16.gmra.mrb[104].mxu1 %v7555_v62 }
  0xf3   :  { %2057 = vmatprep.mubr.bf16.mxu0 %v6401_v39  ;;  %2815 = vmatprep.mubr.bf16.mxu1 %v7560_v63 }
  0xf4   :  { %2173 = vmatpush1.bf16.msra.mxu0 %v6474_v0 }
  0xf5   :  { %2174 = vmatprep.subr.bf16.mxu0 %v6481_v1  ;;  %v5312_v4 = vpop.f32.mrb[0].mxu1 }
  0xf6   :  { %v5313_v6 = vpop.f32.mrb[1].mxu1 }
  0xf7   :  { %v7589_v9 = vadd.f32 %v5313_v6, %v5312_v4  ;;  %v5315_v10 = vpop.f32.mrb[2].mxu1  ;;  %v6489_v4 = vld [vmem:[%s9463_s0 + $0xbc] ss:$28 sps:$4 sm:$0xff]  }
  0xf8   :  { %2175 = vmatpush1.bf16.msra.mxu0 %v6479_v2  ;;  %v5316_v11 = vpop.f32.mrb[3].mxu1  ;;  %v6488_v2 = vld [vmem:[%s9463_s0 + $0x80] ss:$28 sps:$4 sm:$0xff]  }
  0xf9   :  { %2176 = vmatprep.subr.bf16.mxu0 %v6487_v3  ;;  %v7595_v13 = vadd.f32 %v5316_v11, %v5315_v10  ;;  %v6494_v11 = vld [vmem:[%s9463_s0 + $0xb8] ss:$28 sps:$4 sm:$0xff]  }
  0xfa   :  { %2058 = vmatmul.mubr.bf16.gmra.mrb[28].mxu0 %v7483_v44  ;;  %2816 = vmatmul.mubr.bf16.gmra.mrb[108].mxu1 %v7579_v5  ;;  %v6473_v44 = vld [vmem:[%s9463_s0 + $0x14] ss:$28 sps:$4 sm:$0xff]  }
  0xfb   :  { %2067 = vmatprep.mubr.bf16.mxu0 %v7488_v45  ;;  %2823 = vmatprep.mubr.bf16.mxu1 %v7584_v7 }
  0xfc   :  { %2177 = vmatpush1.bf16.msra.mxu0 %v6485_v8 }
  0xfd   :  { %2178 = vmatprep.subr.bf16.mxu0 %v6493_v12  ;;  %v5318_v16 = vpop.f32.mrb[4].mxu1 }
  0xfe   :  { %v5319_v18 = vpop.f32.mrb[5].mxu1 }
  0xff   :  { %v7612_v20 = vadd.f32 %v5319_v18, %v5318_v16  ;;  %v5321_v21 = vpop.f32.mrb[6].mxu1 }
 0x100   :  { %2179 = vmatpush1.bf16.msra.mxu0 %v6491_v14  ;;  %v5322_v22 = vpop.f32.mrb[7].mxu1  ;;  %v6495_v14 = vld [vmem:[%s9463_s0 + $0xf4] ss:$28 sps:$4 sm:$0xff]  }
 0x101   :  { %2341 = vmatprep.subr.bf16.mxu0 %v6499_v15  ;;  %v7615_v23 = vadd.f32 %v5322_v22, %v5321_v21  ;;  %v6497_v21 = vld [vmem:[%s9464_s1 + $0x480] ss:$12 sps:$4 sm:$0xff]  }
 0x102   :  { %2068 = vmatmul.mubr.bf16.gmra.mrb[32].mxu0 %v7507_v50  ;;  %2824 = vmatmul.mubr.bf16.gmra.mrb[112].mxu1 %v6436_v17  ;;  %v6471_v50 = vld [vmem:[%s9463_s0 + $0x10] ss:$28 sps:$4 sm:$0xff]  }
 0x103   :  { %2077 = vmatprep.mubr.bf16.mxu0 %v7512_v51  ;;  %2831 = vmatprep.mubr.bf16.mxu1 %v6441_v19  ;;  %v6500_v22 = vld [vmem:[%s9463_s0 + $0xf0] ss:$28 sps:$4 sm:$0xff]  }
 0x105   :  { %v5324_v25 = vpop.f32.mrb[8].mxu1 }
 0x106   :  { %v5325_v27 = vpop.f32.mrb[9].mxu1 }
 0x107   :  { %v7627_v29 = vadd.f32 %v5325_v27, %v5324_v25  ;;  %v5327_v30 = vpop.f32.mrb[10].mxu1  ;;  %v6501_v25 = vld [vmem:[%s9463_s0 + $0x12c] ss:$28 sps:$4 sm:$0xff]  }
 0x108   :  { %v5328_v31 = vpop.f32.mrb[11].mxu1 }
 0x109   :  { %v7630_v32 = vadd.f32 %v5328_v31, %v5327_v30 }
 0x10a   :  { %2078 = vmatmul.mubr.bf16.gmra.mrb[36].mxu0 %v7531_v56  ;;  %2832 = vmatmul.mubr.bf16.gmra.mrb[116].mxu1 %v6446_v26 }
 0x10b   :  { %2087 = vmatprep.mubr.bf16.mxu0 %v7536_v57  ;;  %2839 = vmatprep.mubr.bf16.mxu1 %v6451_v28 }
 0x10d   :  { %v5330_v33 = vpop.f32.mrb[12].mxu1 }
 0x10e   :  { %v5331_v35 = vpop.f32.mrb[13].mxu1 }
 0x10f   :  { %v7639_v37 = vadd.f32 %v5331_v35, %v5330_v33  ;;  %v5333_v38 = vpop.f32.mrb[14].mxu1  ;;  %v6503_v33 = vld [vmem:[%s9463_s0 + $0x128] ss:$28 sps:$4 sm:$0xff]  }
 0x110   :  { %v5334_v39 = vpop.f32.mrb[15].mxu1  ;;  %v6504_v35 = vld [vmem:[%s9463_s0 + $0x164] ss:$28 sps:$4 sm:$0xff]  }
 0x111   :  { %v7642_v40 = vadd.f32 %v5334_v39, %v5333_v38 }
 0x112   :  { %2088 = vmatmul.mubr.bf16.gmra.mrb[40].mxu0 %v7555_v62  ;;  %2840 = vmatmul.mubr.bf16.gmra.mrb[120].mxu1 %v6456_v34 }
 0x113   :  { %2097 = vmatprep.mubr.bf16.mxu0 %v7560_v63  ;;  %2847 = vmatprep.mubr.bf16.mxu1 %v6461_v36 }
 0x115   :  { %v5336_v41 = vpop.f32.mrb[16].mxu1 }
 0x116   :  { %v5337_v43 = vpop.f32.mrb[17].mxu1 }
 0x117   :  { %v7651_v45 = vadd.f32 %v5337_v43, %v5336_v41  ;;  %v5339_v46 = vpop.f32.mrb[18].mxu1  ;;  %v6506_v43 = vld [vmem:[%s9463_s0 + $0x160] ss:$28 sps:$4 sm:$0xff]  }
 0x118   :  { %v5340_v47 = vpop.f32.mrb[19].mxu1 }
 0x119   :  { %v7654_v48 = vadd.f32 %v5340_v47, %v5339_v46  ;;  %v6507_v46 = vld [vmem:[%s9463_s0 + $0x19c] ss:$28 sps:$4 sm:$0xff]  }
 0x11a   :  { %2098 = vmatmul.mubr.bf16.gmra.mrb[44].mxu0 %v7579_v5  ;;  %2848 = vmatmul.mubr.bf16.gmra.mrb[124].mxu1 %v6466_v42 }
 0x11b   :  { %2107 = vmatprep.mubr.bf16.mxu0 %v7584_v7  ;;  %2888 = vmatprep.mubr.bf16.mxu1 %v6473_v44 }
 0x11d   :  { %v5342_v49 = vpop.f32.mrb[20].mxu1 }
 0x11e   :  { %v5343_v51 = vpop.f32.mrb[21].mxu1 }
 0x11f   :  { %v7663_v53 = vadd.f32 %v5343_v51, %v5342_v49  ;;  %v5345_v54 = vpop.f32.mrb[22].mxu1 }
 0x120   :  { %v5346_v55 = vpop.f32.mrb[23].mxu1 }
 0x121   :  { %v7665_v56 = vadd.f32 %v5346_v55, %v5345_v54  ;;  %v7733_v54 = vld [vmem:[%s9463_s0 + $0x198] ss:$28 sps:$4 sm:$0xff]  }
 0x122   :  { %2108 = vmatmul.mubr.bf16.gmra.mrb[48].mxu0 %v6436_v17  ;;  %2889 = vmatmul.mubr.bf16.vlgmr.msra.gmra.mrb[128].mxu1 %v6471_v50 }
 0x123   :  { %2117 = vmatprep.mubr.bf16.mxu0 %v6441_v19  ;;  %2896 = vmatprep.mubr.bf16.mxu1 %v6477_v52 }
 0x124   :  { %5806 = vmatpush3.bf16.msra.mxu1 %v6525_v24 }
 0x125   :  { %v5348_v57 = vpop.f32.mrb[24].mxu1 }
 0x126   :  { %v5349_v59 = vpop.f32.mrb[25].mxu1 }
 0x127   :  { %v7673_v61 = vadd.f32 %v5349_v59, %v5348_v57  ;;  %v5351_v62 = vpop.f32.mrb[26].mxu1  ;;  %v6510_v57 = vld [vmem:[%s9463_s0 + $0x1d4] ss:$28 sps:$4 sm:$0xff]  }
 0x128   :  { %v5352_v63 = vpop.f32.mrb[27].mxu1 }
 0x129   :  { %v7675_v0 = vadd.f32 %v5352_v63, %v5351_v62 }
 0x12a   :  { %2118 = vmatmul.mubr.bf16.gmra.mrb[52].mxu0 %v6446_v26  ;;  %2897 = vmatmul.mubr.bf16.gmra.mrb[132].mxu1 %v6482_v58 }
 0x12b   :  { %2127 = vmatprep.mubr.bf16.mxu0 %v6451_v28  ;;  %2904 = vmatprep.mubr.bf16.mxu1 %v6483_v60 }
 0x12d   :  { %v5354_v1 = vpop.f32.mrb[28].mxu1 }
 0x12e   :  { %v5355_v3 = vpop.f32.mrb[29].mxu1 }
 0x12f   :  { %v7683_v5 = vadd.f32 %v5355_v3, %v5354_v1  ;;  %v5357_v6 = vpop.f32.mrb[30].mxu1  ;;  %v7746_v1 = vld [vmem:[%s9463_s0 + $0x1d0] ss:$28 sps:$4 sm:$0xff]  }
 0x130   :  { %v5358_v7 = vpop.f32.mrb[31].mxu1  ;;  %v7751_v3 = vld [vmem:[%s9463_s0 + $0x20c] ss:$28 sps:$4 sm:$0xff]  }
 0x131   :  { %v7685_v8 = vadd.f32 %v5358_v7, %v5357_v6 }
 0x132   :  { %2128 = vmatmul.mubr.bf16.gmra.mrb[56].mxu0 %v6456_v34  ;;  %2905 = vmatmul.mubr.bf16.gmra.mrb[136].mxu1 %v6488_v2 }
 0x133   :  { %2137 = vmatprep.mubr.bf16.mxu0 %v6461_v36  ;;  %2912 = vmatprep.mubr.bf16.mxu1 %v6489_v4 }
 0x135   :  { %v5360_v10 = vpop.f32.mrb[32].mxu1 }
 0x136   :  { %v5361_v12 = vpop.f32.mrb[33].mxu1 }
 0x137   :  { %v7693_v15 = vadd.f32 %v5361_v12, %v5360_v10  ;;  %v5363_v16 = vpop.f32.mrb[34].mxu1  ;;  %v7762_v12 = vld [vmem:[%s9463_s0 + $0x208] ss:$28 sps:$4 sm:$0xff]  }
 0x138   :  { %v5364_v17 = vpop.f32.mrb[35].mxu1 }
 0x139   :  { %v7695_v18 = vadd.f32 %v5364_v17, %v5363_v16  ;;  %v354_v16 = vlaneseq }
 0x13a   :  { %2138 = vmatmul.mubr.bf16.gmra.mrb[60].mxu0 %v6466_v42  ;;  %2913 = vmatmul.mubr.bf16.gmra.mrb[140].mxu1 %v6494_v11 }
 0x13b   :  { %2180 = vmatprep.mubr.bf16.mxu0 %v6473_v44  ;;  %2920 = vmatprep.mubr.bf16.mxu1 %v6495_v14 }
 0x13d   :  { %v5366_v19 = vpop.f32.mrb[36].mxu1 }
 0x13e   :  { %v5367_v24 = vpop.f32.mrb[37].mxu1 }
 0x13f   :  { %v7706_v26 = vadd.f32 %v5367_v24, %v5366_v19  ;;  %v5369_v27 = vpop.f32.mrb[38].mxu1 }
 0x140   :  { %v5370_v28 = vpop.f32.mrb[39].mxu1 }
 0x141   :  { %v7708_v30 = vadd.f32 %v5370_v28, %v5369_v27 }
 0x142   :  { %2181 = vmatmul.mubr.bf16.vlgmr.msra.gmra.mrb[0].mxu0 %v6471_v50  ;;  %2921 = vmatmul.mubr.bf16.gmra.mrb[144].mxu1 %v6500_v22 }
 0x143   :  { %2342 = vmatpush1.bf16.msra.mxu0 %v6497_v21  ;;  %2190 = vmatprep.mubr.bf16.mxu0 %v6477_v52  ;;  %v7769_v21 = vld [vmem:[%s9463_s0 + $0x244] ss:$28 sps:$4 sm:$0xff]  }
 0x144   :  { %2928 = vmatprep.mubr.bf16.mxu1 %v6501_v25 }
 0x145   :  { %v5372_v31 = vpop.f32.mrb[40].mxu1 }
 0x146   :  { %v5373_v34 = vpop.f32.mrb[41].mxu1 }
 0x147   :  { %v7716_v36 = vadd.f32 %v5373_v34, %v5372_v31  ;;  %v5375_v38 = vpop.f32.mrb[42].mxu1  ;;  %v7781_v31 = vld [vmem:[%s9463_s0 + $0x240] ss:$28 sps:$4 sm:$0xff]  }
 0x148   :  { %v5376_v39 = vpop.f32.mrb[43].mxu1 }
 0x149   :  { %v7718_v41 = vadd.f32 %v5376_v39, %v5375_v38  ;;  %v7794_v39 = vld [vmem:[%s9465_s2] sm:$0x7] }
 0x14a   :  { %2191 = vmatmul.mubr.bf16.gmra.mrb[4].mxu0 %v6482_v58  ;;  %2929 = vmatmul.mubr.bf16.gmra.mrb[148].mxu1 %v6503_v33 }
 0x14b   :  { %2200 = vmatprep.mubr.bf16.mxu0 %v6483_v60  ;;  %2936 = vmatprep.mubr.bf16.mxu1 %v6504_v35 }
 0x14d   :  { %v5378_v42 = vpop.f32.mrb[44].mxu1 }
 0x14e   :  { %v5379_v44 = vpop.f32.mrb[45].mxu1 }
 0x14f   :  { %v7726_v47 = vadd.f32 %v5379_v44, %v5378_v42  ;;  %v5381_v49 = vpop.f32.mrb[46].mxu1 }
 0x150   :  { %v5382_v50 = vpop.f32.mrb[47].mxu1 }
 0x151   :  { %v7728_v51 = vadd.f32 %v5382_v50, %v5381_v49 }
 0x152   :  { %2201 = vmatmul.mubr.bf16.gmra.mrb[8].mxu0 %v6488_v2  ;;  %2937 = vmatmul.mubr.bf16.gmra.mrb[152].mxu1 %v6506_v43 }
 0x153   :  { %2210 = vmatprep.mubr.bf16.mxu0 %v6489_v4  ;;  %2944 = vmatprep.mubr.bf16.mxu1 %v6507_v46 }
 0x155   :  { %v5384_v52 = vpop.f32.mrb[48].mxu1 }
 0x156   :  { %v5385_v55 = vpop.f32.mrb[49].mxu1 }
 0x157   :  { %v7738_v58 = vadd.f32 %v5385_v55, %v5384_v52  ;;  %v5387_v59 = vpop.f32.mrb[50].mxu1  ;;  %v7806_v55 = vld [vmem:[%s9463_s0 + $0x278] ss:$28 sps:$4 sm:$0xff]  }
 0x158   :  { %v5388_v60 = vpop.f32.mrb[51].mxu1 }
 0x159   :  { %v7740_v62 = vadd.f32 %v5388_v60, %v5387_v59 }
 0x15a   :  { %2211 = vmatmul.mubr.bf16.gmra.mrb[12].mxu0 %v6494_v11  ;;  %2945 = vmatmul.mubr.bf16.gmra.mrb[156].mxu1 %v7733_v54 }
 0x15b   :  { %2220 = vmatprep.mubr.bf16.mxu0 %v6495_v14  ;;  %2952 = vmatprep.mubr.bf16.mxu1 %v6510_v57 }
 0x15d   :  { %v5390_v63 = vpop.f32.mrb[52].mxu1 }
 0x15e   :  { %v5391_v2 = vpop.f32.mrb[53].mxu1 }
 0x15f   :  { %v7753_v4 = vadd.f32 %v5391_v2, %v5390_v63  ;;  %v5393_v6 = vpop.f32.mrb[54].mxu1 }
 0x160   :  { %v5394_v7 = vpop.f32.mrb[55].mxu1 }
 0x161   :  { %v7755_v10 = vadd.f32 %v5394_v7, %v5393_v6 }
 0x162   :  { %2221 = vmatmul.mubr.bf16.gmra.mrb[16].mxu0 %v6500_v22  ;;  %2953 = vmatmul.mubr.bf16.gmra.mrb[160].mxu1 %v7746_v1 }
 0x163   :  { %2230 = vmatprep.mubr.bf16.mxu0 %v6501_v25  ;;  %2960 = vmatprep.mubr.bf16.mxu1 %v7751_v3  ;;  %v7775_v25 = vshrl.u32 %v354_v16, 7 }
 0x165   :  { %v5396_v11 = vpop.f32.mrb[56].mxu1  ;;  %v364_v34 = vsub.s32 2, %v7775_v25 }
 0x166   :  { %v5397_v14 = vpop.f32.mrb[57].mxu1 }
 0x167   :  { %v7764_v17 = vadd.f32 %v5397_v14, %v5396_v11  ;;  %v5399_v19 = vpop.f32.mrb[58].mxu1  ;;  %v7800_v49 = vrot.slane %v7794_v39, %v364_v34 }
 0x168   :  { %v5400_v22 = vpop.f32.mrb[59].mxu1 }
 0x169   :  { %v7771_v24 = vadd.f32 %v5400_v22, %v5399_v19  ;;  %v2572_v6 = vadd.f32 %v7595_v13, %v7800_v49  ;;  %v7827_v19 = vld [vmem:[%s9463_s0 + $0x2b0] ss:$28 sps:$4 sm:$0xff]   ;;  %v2577_v13 = vadd.f32 %v7612_v20, %v7800_v49  ;;  %v2580_v34 = vadd.f32 %v7615_v23, %v7800_v49 }
 0x16a   :  { %2231 = vmatmul.mubr.bf16.gmra.mrb[20].mxu0 %v6503_v33  ;;  %2961 = vmatmul.mubr.bf16.gmra.mrb[164].mxu1 %v7762_v12  ;;  %v2585_v23 = vadd.f32 %v7627_v29, %v7800_v49 }
 0x16b   :  { %2240 = vmatprep.mubr.bf16.mxu0 %v6504_v35  ;;  %2968 = vmatprep.mubr.bf16.mxu1 %v7769_v21  ;;  %v7789_v35 = vld [vmem:[%s9463_s0 + $0x27c] ss:$28 sps:$4 sm:$0xff]  }
 0x16d   :  { %v5402_v27 = vpop.f32.mrb[60].mxu1 }
 0x16e   :  { %v5403_v28 = vpop.f32.mrb[61].mxu1 }
 0x16f   :  { %v7784_v33 = vadd.f32 %v5403_v28, %v5402_v27  ;;  %v5405_v38 = vpop.f32.mrb[62].mxu1 }
 0x170   :  { %v5406_v42 = vpop.f32.mrb[63].mxu1 }
 0x171   :  { %v7796_v44 = vadd.f32 %v5406_v42, %v5405_v38 }
 0x172   :  { %2241 = vmatmul.mubr.bf16.gmra.mrb[24].mxu0 %v6506_v43  ;;  %2969 = vmatmul.mubr.bf16.gmra.mrb[168].mxu1 %v7781_v31  ;;  %v2569_v43 = vadd.f32 %v7589_v9, %v7800_v49 }
 0x173   :  { %2250 = vmatprep.mubr.bf16.mxu0 %v6507_v46  ;;  %2976 = vmatprep.mubr.bf16.mxu1 %v7789_v35  ;;  %v7813_v46 = vld [vmem:[%s9463_s0 + $0x2b4] ss:$28 sps:$4 sm:$0xff]  }
 0x175   :  { %v5424_v50 = vpop.f32.mrb[64].mxu1 }
 0x176   :  { %v5425_v52 = vpop.f32.mrb[65].mxu1 }
 0x177   :  { %v5426_v59 = vadd.f32 %v5425_v52, %v5424_v50  ;;  %v5427_v60 = vpop.f32.mrb[66].mxu1  ;;  %v7849_v52 = vld [vmem:[%s9463_s0 + $0x2e8] ss:$28 sps:$4 sm:$0xff]  }
 0x178   :  { %v5428_v63 = vpop.f32.mrb[67].mxu1 }
 0x179   :  { %v7815_v2 = vadd.f32 %v5426_v59, %v2569_v43  ;;  %v5429_v7 = vadd.f32 %v5428_v63, %v5427_v60  ;;  %v2588_v63 = vadd.f32 %v7630_v32, %v7800_v49  ;;  %v2593_v32 = vadd.f32 %v7639_v37, %v7800_v49 }
 0x17a   :  { %2251 = vmatmul.mubr.bf16.gmra.mrb[28].mxu0 %v7733_v54  ;;  %2977 = vmatmul.mubr.bf16.gmra.mrb[172].mxu1 %v7806_v55  ;;  %v7834_v54 = vld [vmem:[%s9463_s0 + $0x2ec] ss:$28 sps:$4 sm:$0xff]  }
 0x17b   :  { %2260 = vmatprep.mubr.bf16.mxu0 %v6510_v57  ;;  %v7821_v9 = vadd.f32 %v5429_v7, %v2572_v6  ;;  %2984 = vmatprep.mubr.bf16.mxu1 %v7813_v46 }
 0x17d   :  { %v5430_v11 = vpop.f32.mrb[68].mxu1 }
 0x17e   :  { %v5431_v14 = vpop.f32.mrb[69].mxu1 }
 0x17f   :  { %v5432_v22 = vadd.f32 %v5431_v14, %v5430_v11  ;;  %v5433_v27 = vpop.f32.mrb[70].mxu1  ;;  %v7871_v14 = vld [vmem:[%s9463_s0 + $0x320] ss:$28 sps:$4 sm:$0xff]  }
 0x180   :  { %v5434_v57 = vpop.f32.mrb[71].mxu1 }
 0x181   :  { %v7836_v28 = vadd.f32 %v5432_v22, %v2577_v13  ;;  %v5435_v38 = vadd.f32 %v5434_v57, %v5433_v27  ;;  %v2596_v57 = vadd.f32 %v7642_v40, %v7800_v49  ;;  %v2601_v40 = vadd.f32 %v7651_v45, %v7800_v49 }
 0x182   :  { %2261 = vmatmul.mubr.bf16.gmra.mrb[32].mxu0 %v7746_v1  ;;  %2985 = vmatmul.mubr.bf16.gmra.mrb[176].mxu1 %v7827_v19 }
 0x183   :  { %2270 = vmatprep.mubr.bf16.mxu0 %v7751_v3  ;;  %v7843_v20 = vadd.f32 %v5435_v38, %v2580_v34  ;;  %2992 = vmatprep.mubr.bf16.mxu1 %v7834_v54  ;;  %v7856_v3 = vld [vmem:[%s9463_s0 + $0x324] ss:$28 sps:$4 sm:$0xff]  }
 0x185   :  { %v5436_v42 = vpop.f32.mrb[72].mxu1 }
 0x186   :  { %v5437_v50 = vpop.f32.mrb[73].mxu1 }
 0x187   :  { %v5438_v43 = vadd.f32 %v5437_v50, %v5436_v42  ;;  %v5439_v1 = vpop.f32.mrb[74].mxu1  ;;  %v7893_v50 = vld [vmem:[%s9463_s0 + $0x358] ss:$28 sps:$4 sm:$0xff]  }
 0x188   :  { %v5440_v59 = vpop.f32.mrb[75].mxu1 }
 0x189   :  { %v7858_v60 = vadd.f32 %v5438_v43, %v2585_v23  ;;  %v5441_v6 = vadd.f32 %v5440_v59, %v5439_v1  ;;  %v2604_v59 = vadd.f32 %v7654_v48, %v7800_v49  ;;  %v2609_v48 = vadd.f32 %v7663_v53, %v7800_v49 }
 0x18a   :  { %2271 = vmatmul.mubr.bf16.gmra.mrb[36].mxu0 %v7762_v12  ;;  %2993 = vmatmul.mubr.bf16.gmra.mrb[180].mxu1 %v7849_v52 }
 0x18b   :  { %2280 = vmatprep.mubr.bf16.mxu0 %v7769_v21  ;;  %v7865_v29 = vadd.f32 %v5441_v6, %v2588_v63  ;;  %3000 = vmatprep.mubr.bf16.mxu1 %v7856_v3  ;;  %v7878_v21 = vld [vmem:[%s9463_s0 + $0x35c] ss:$28 sps:$4 sm:$0xff]  }
 0x18d   :  { %v5442_v7 = vpop.f32.mrb[76].mxu1 }
 0x18e   :  { %v5443_v11 = vpop.f32.mrb[77].mxu1 }
 0x18f   :  { %v5444_v13 = vadd.f32 %v5443_v11, %v5442_v7  ;;  %v5445_v12 = vpop.f32.mrb[78].mxu1  ;;  %v7916_v11 = vld [vmem:[%s9463_s0 + $0x50] ss:$28 sps:$4 sm:$0xff]  }
 0x190   :  { %v5446_v22 = vpop.f32.mrb[79].mxu1 }
 0x191   :  { %v7880_v27 = vadd.f32 %v5444_v13, %v2593_v32  ;;  %v5447_v34 = vadd.f32 %v5446_v22, %v5445_v12  ;;  %v2612_v22 = vadd.f32 %v7665_v56, %v7800_v49  ;;  %v2617_v56 = vadd.f32 %v7673_v61, %v7800_v49 }
 0x192   :  { %2281 = vmatmul.mubr.bf16.gmra.mrb[40].mxu0 %v7781_v31  ;;  %3001 = vmatmul.mubr.bf16.gmra.mrb[184].mxu1 %v7871_v14 }
 0x193   :  { %2290 = vmatprep.mubr.bf16.mxu0 %v7789_v35  ;;  %v7887_v37 = vadd.f32 %v5447_v34, %v2596_v57  ;;  %3008 = vmatprep.mubr.bf16.mxu1 %v7878_v21  ;;  %v7900_v35 = vld [vmem:[%s9463_s0 + $0x18] ss:$28 sps:$4 sm:$0xff]  }
 0x195   :  { %v5448_v38 = vpop.f32.mrb[80].mxu1 }
 0x196   :  { %v5449_v42 = vpop.f32.mrb[81].mxu1 }
 0x197   :  { %v5450_v23 = vadd.f32 %v5449_v42, %v5448_v38  ;;  %v5451_v31 = vpop.f32.mrb[82].mxu1  ;;  %v7940_v42 = vld [vmem:[%s9463_s0 + $0xc0] ss:$28 sps:$4 sm:$0xff]  }
 0x198   :  { %v5452_v43 = vpop.f32.mrb[83].mxu1 }
 0x199   :  { %v7902_v1 = vadd.f32 %v5450_v23, %v2601_v40  ;;  %v5453_v63 = vadd.f32 %v5452_v43, %v5451_v31  ;;  %v2620_v43 = vadd.f32 %v7675_v0, %v7800_v49  ;;  %v2625_v0 = vadd.f32 %v7683_v5, %v7800_v49 }
 0x19a   :  { %2291 = vmatmul.mubr.bf16.gmra.mrb[44].mxu0 %v7806_v55  ;;  %3009 = vmatmul.mubr.bf16.gmra.mrb[188].mxu1 %v7893_v50 }
 0x19b   :  { %2300 = vmatprep.mubr.bf16.mxu0 %v7813_v46  ;;  %v7909_v45 = vadd.f32 %v5453_v63, %v2604_v59  ;;  %5807 = vmatprep.mubr.msk.bf16.mxu1 %vm1713_vm0, %v7900_v35  ;;  %v7923_v46 = vld [vmem:[%s9463_s0 + $0x88] ss:$28 sps:$4 sm:$0xff]  }
 0x19d   :  { %v5454_v6 = vpop.f32.mrb[84].mxu1 }
 0x19e   :  { %v5455_v7 = vpop.f32.mrb[85].mxu1 }
 0x19f   :  { %v5456_v55 = vadd.f32 %v5455_v7, %v5454_v6  ;;  %v5457_v32 = vpop.f32.mrb[86].mxu1  ;;  %v7964_v7 = vld [vmem:[%s9463_s0 + $0x130] ss:$28 sps:$4 sm:$0xff]  }
 0x1a0   :  { %v5458_v13 = vpop.f32.mrb[87].mxu1 }
 0x1a1   :  { %v7925_v12 = vadd.f32 %v5456_v55, %v2609_v48  ;;  %v5459_v57 = vadd.f32 %v5458_v13, %v5457_v32  ;;  %v2628_v13 = vadd.f32 %v7685_v8, %v7800_v49  ;;  %v2633_v8 = vadd.f32 %v7693_v15, %v7800_v49 }
 0x1a2   :  { %2301 = vmatmul.mubr.bf16.gmra.mrb[48].mxu0 %v7827_v19  ;;  %5808 = vmatmul.mubr.msk.bf16.vlgmr.msra.gmra.mrb[192].mxu1 %vm1713_vm0, %v7916_v11  ;;  %v6860_v15 = vmov 0  }
 0x1a3   :  { %2310 = vmatprep.mubr.bf16.mxu0 %v7834_v54  ;;  %v7933_v53 = vadd.f32 %v5459_v57, %v2612_v22  ;;  %5811 = vmatprep.mubr.msk.bf16.mxu1 %vm1713_vm0, %v7923_v46  ;;  %v7947_v54 = vld [vmem:[%s9463_s0 + $0xf8] ss:$28 sps:$4 sm:$0xff]  }
 0x1a5   :  { %v5460_v34 = vpop.f32.mrb[88].mxu1 }
 0x1a6   :  { %v5461_v38 = vpop.f32.mrb[89].mxu1 }
 0x1a7   :  { %v5462_v19 = vadd.f32 %v5461_v38, %v5460_v34  ;;  %v5463_v40 = vpop.f32.mrb[90].mxu1  ;;  %v7988_v38 = vld [vmem:[%s9463_s0 + $0x1a0] ss:$28 sps:$4 sm:$0xff]  }
 0x1a8   :  { %v5464_v23 = vpop.f32.mrb[91].mxu1 }
 0x1a9   :  { %v7949_v31 = vadd.f32 %v5462_v19, %v2617_v56  ;;  %v5465_v59 = vadd.f32 %v5464_v23, %v5463_v40  ;;  %v2636_v23 = vadd.f32 %v7695_v18, %v7800_v49  ;;  %v8012_v18 = vld [vmem:[%s9463_s0 + $0x210] ss:$28 sps:$4 sm:$0xff]  }
 0x1aa   :  { %2311 = vmatmul.mubr.bf16.gmra.mrb[52].mxu0 %v7849_v52  ;;  %5812 = vmatmul.mubr.msk.bf16.gmra.mrb[196].mxu1 %vm1713_vm0, %v7940_v42 }
 0x1ab   :  { %2320 = vmatprep.mubr.bf16.mxu0 %v7856_v3  ;;  %v7957_v61 = vadd.f32 %v5465_v59, %v2620_v43  ;;  %5815 = vmatprep.mubr.msk.bf16.mxu1 %vm1713_vm0, %v7947_v54  ;;  %v7971_v3 = vld [vmem:[%s9463_s0 + $0x168] ss:$28 sps:$4 sm:$0xff]  }
 0x1ad   :  { %v5466_v63 = vpop.f32.mrb[92].mxu1 }
 0x1ae   :  { %v5467_v6 = vpop.f32.mrb[93].mxu1 }
 0x1af   :  { %v5468_v52 = vadd.f32 %v5467_v6, %v5466_v63  ;;  %v5469_v48 = vpop.f32.mrb[94].mxu1 }
 0x1b0   :  { %v5470_v55 = vpop.f32.mrb[95].mxu1 }
 0x1b1   :  { %v7973_v32 = vadd.f32 %v5468_v52, %v2625_v0  ;;  %v5471_v22 = vadd.f32 %v5470_v55, %v5469_v48  ;;  %v8019_v48 = vld [vmem:[%s9463_s0 + $0x248] ss:$28 sps:$4 sm:$0xff]  }
 0x1b2   :  { %2321 = vmatmul.mubr.bf16.gmra.mrb[56].mxu0 %v7871_v14  ;;  %5816 = vmatmul.mubr.msk.bf16.gmra.mrb[200].mxu1 %vm1713_vm0, %v7964_v7 }
 0x1b3   :  { %2330 = vmatprep.mubr.bf16.mxu0 %v7878_v21  ;;  %v7981_v5 = vadd.f32 %v5471_v22, %v2628_v13  ;;  %5819 = vmatprep.mubr.msk.bf16.mxu1 %vm1713_vm0, %v7971_v3  ;;  %v7995_v21 = vld [vmem:[%s9463_s0 + $0x1d8] ss:$28 sps:$4 sm:$0xff]   ;;  %v2644_v22 = vadd.f32 %v7708_v30, %v7800_v49  ;;  %v8037_v30 = vld [vmem:[%s9463_s0 + $0x280] ss:$28 sps:$4 sm:$0xff]  }
 0x1b5   :  { %v5472_v57 = vpop.f32.mrb[96].mxu1 }
 0x1b6   :  { %v5473_v34 = vpop.f32.mrb[97].mxu1 }
 0x1b7   :  { %v5474_v14 = vadd.f32 %v5473_v34, %v5472_v57  ;;  %v5475_v56 = vpop.f32.mrb[98].mxu1 }
 0x1b8   :  { %v5476_v19 = vpop.f32.mrb[99].mxu1 }
 0x1b9   :  { %v7997_v40 = vadd.f32 %v5474_v14, %v2633_v8  ;;  %v5477_v43 = vadd.f32 %v5476_v19, %v5475_v56  ;;  %v8044_v19 = vld [vmem:[%s9463_s0 + $0x2b8] ss:$28 sps:$4 sm:$0xff]  }
 0x1ba   :  { %2331 = vmatmul.mubr.bf16.gmra.mrb[60].mxu0 %v7893_v50  ;;  %5820 = vmatmul.mubr.msk.bf16.gmra.mrb[204].mxu1 %vm1713_vm0, %v7988_v38  ;;  %v2641_v50 = vadd.f32 %v7706_v26, %v7800_v49 }
 0x1bb   :  { %2373 = vmatprep.mubr.bf16.mxu0 %v6860_v15  ;;  %v8005_v59 = vadd.f32 %v5477_v43, %v2636_v23  ;;  %5823 = vmatprep.mubr.msk.bf16.mxu1 %vm1713_vm0, %v7995_v21 }
 0x1bd   :  { %v5478_v63 = vpop.f32.mrb[100].mxu1 }
 0x1be   :  { %v5479_v6 = vpop.f32.mrb[101].mxu1 }
 0x1bf   :  { %v5480_v0 = vadd.f32 %v5479_v6, %v5478_v63  ;;  %v5481_v52 = vpop.f32.mrb[102].mxu1  ;;  %v2652_v63 = vadd.f32 %v7718_v41, %v7800_v49  ;;  %v8062_v41 = vld [vmem:[%s9463_s0 + $0x2f0] ss:$28 sps:$4 sm:$0xff]  }
 0x1c0   :  { %v5482_v55 = vpop.f32.mrb[103].mxu1 }
 0x1c1   :  { %v8021_v13 = vadd.f32 %v5480_v0, %v2641_v50  ;;  %v5483_v57 = vadd.f32 %v5482_v55, %v5481_v52 }
 0x1c2   :  { %5218 = vmatmul.mubr.msk.bf16.vlgmr.msra.gmra.mrb[0].mxu0 %vm1713_vm0, %v7900_v35  ;;  %5824 = vmatmul.mubr.msk.bf16.gmra.mrb[208].mxu1 %vm1713_vm0, %v8012_v18  ;;  %v2649_v35 = vadd.f32 %v7716_v36, %v7800_v49 }
 0x1c3   :  { %2383 = vmatprep.mubr.bf16.mxu0 %v6860_v15  ;;  %v8030_v26 = vadd.f32 %v5483_v57, %v2644_v22  ;;  %5827 = vmatprep.mubr.msk.bf16.mxu1 %vm1713_vm0, %v8019_v48  ;;  %v8069_v22 = vld [vmem:[%s9463_s0 + $0x328] ss:$28 sps:$4 sm:$0xff]  }
 0x1c5   :  { %v5484_v34 = vpop.f32.mrb[104].mxu1 }
 0x1c6   :  { %v5485_v8 = vpop.f32.mrb[105].mxu1 }
 0x1c7   :  { %v5486_v14 = vadd.f32 %v5485_v8, %v5484_v34  ;;  %v5487_v56 = vpop.f32.mrb[106].mxu1  ;;  %v2660_v8 = vadd.f32 %v7728_v51, %v7800_v49  ;;  %v8087_v51 = vld [vmem:[%s9463_s0 + $0x360] ss:$28 sps:$4 sm:$0xff]  }
 0x1c8   :  { %v5488_v23 = vpop.f32.mrb[107].mxu1 }
 0x1c9   :  { %v8046_v43 = vadd.f32 %v5486_v14, %v2649_v35  ;;  %v5489_v6 = vadd.f32 %v5488_v23, %v5487_v56 }
 0x1ca   :  { %5219 = vmatmul.mubr.msk.bf16.gmra.mrb[4].mxu0 %vm1713_vm0, %v7916_v11  ;;  %5828 = vmatmul.mubr.msk.bf16.gmra.mrb[212].mxu1 %vm1713_vm0, %v8037_v30  ;;  %v2657_v11 = vadd.f32 %v7726_v47, %v7800_v49 }
 0x1cb   :  { %2393 = vmatprep.mubr.bf16.mxu0 %v6860_v15  ;;  %v8055_v36 = vadd.f32 %v5489_v6, %v2652_v63  ;;  %5831 = vmatprep.mubr.msk.bf16.mxu1 %vm1713_vm0, %v8044_v19 }
 0x1cd   :  { %v5490_v50 = vpop.f32.mrb[108].mxu1 }
 0x1ce   :  { %v5491_v0 = vpop.f32.mrb[109].mxu1 }
 0x1cf   :  { %v5492_v52 = vadd.f32 %v5491_v0, %v5490_v50  ;;  %v5493_v55 = vpop.f32.mrb[110].mxu1  ;;  %v2668_v0 = vadd.f32 %v7740_v62, %v7800_v49  ;;  %v2673_v62 = vadd.f32 %v7753_v4, %v7800_v49  ;;  %v6553_v4 = vld [vmem:[%s9466_s3] sm:$0xff]  }
 0x1d0   :  { %v5494_v57 = vpop.f32.mrb[111].mxu1 }
 0x1d1   :  { %v8071_v34 = vadd.f32 %v5492_v52, %v2657_v11  ;;  %v5495_v35 = vadd.f32 %v5494_v57, %v5493_v55  ;;  %v6552_v57 = vld [vmem:[%s9466_s3 + $0x80] sm:$0xff]  }
 0x1d2   :  { %5220 = vmatmul.mubr.msk.bf16.gmra.mrb[8].mxu0 %vm1713_vm0, %v7923_v46  ;;  %5832 = vmatmul.mubr.msk.bf16.gmra.mrb[216].mxu1 %vm1713_vm0, %v8062_v41  ;;  %v2665_v46 = vadd.f32 %v7738_v58, %v7800_v49 }
 0x1d3   :  { %2403 = vmatprep.mubr.bf16.mxu0 %v6860_v15  ;;  %v8080_v47 = vadd.f32 %v5495_v35, %v2660_v8  ;;  %5835 = vmatprep.mubr.msk.bf16.mxu1 %vm1713_vm0, %v8069_v22 }
 0x1d4   :  { %5839 = vmatprep.subr.bf16.mxu0 %v6552_v57 }
 0x1d5   :  { %v5496_v14 = vpop.f32.mrb[112].mxu1  ;;  %5840 = vmatpush3.bf16.msra.mxu0 %v6552_v57  ;;  %v2684_v57 = vadd.f32 %v7771_v24, %v7800_v49 }
 0x1d6   :  { %v5497_v56 = vpop.f32.mrb[113].mxu1 }
 0x1d7   :  { %v5498_v23 = vadd.f32 %v5497_v56, %v5496_v14  ;;  %v5499_v63 = vpop.f32.mrb[114].mxu1  ;;  %v2676_v56 = vadd.f32 %v7755_v10, %v7800_v49 }
 0x1d8   :  { %v5500_v6 = vpop.f32.mrb[115].mxu1 }
 0x1d9   :  { %v8091_v50 = vadd.f32 %v5498_v23, %v2665_v46  ;;  %v5501_v11 = vadd.f32 %v5500_v6, %v5499_v63  ;;  %v6551_v23 = vld [vmem:[%s9466_s3 + $0x40] sm:$0xff]   ;;  %v6554_v63 = vld [vmem:[%s9466_s3 + $0x88] sm:$0xff]  }
 0x1da   :  { %5221 = vmatmul.mubr.msk.bf16.gmra.mrb[12].mxu0 %vm1713_vm0, %v7940_v42  ;;  %5836 = vmatmul.mubr.msk.bf16.gmra.mrb[220].mxu1 %vm1713_vm0, %v8087_v51 }
 0x1db   :  { %2413 = vmatprep.mubr.bf16.mxu0 %v6860_v15  ;;  %v8100_v52 = vadd.f32 %v5501_v11, %v2668_v0  ;;  %5649 = vmatprep.subr.bf16.mxu1 %v6551_v23  ;;  %v6556_v0 = vld [vmem:[%s9466_s3 + $0x90] sm:$0xff]   ;;  %v2681_v11 = vadd.f32 %v7764_v17, %v7800_v49  ;;  %v6557_v17 = vld [vmem:[%s9466_s3 + $0x8] sm:$0xff]   ;;  %v6560_v23 = vld [vmem:[%s9466_s3 + $0xa0] sm:$0xff]  }
 0x1dc   :  { %5841 = vmatprep.subr.bf16.mxu0 %v6554_v63  ;;  %5650 = vmatpush3.bf16.msra.mxu1 %v6553_v4  ;;  %v2689_v4 = vadd.f32 %v7784_v33, %v7800_v49  ;;  %v6561_v33 = vld [vmem:[%s9466_s3 + $0x10] sm:$0xff]  }
 0x1dd   :  { %v5502_v58 = vpop.f32.mrb[116].mxu1  ;;  %5842 = vmatpush3.bf16.msra.mxu0 %v6554_v63 }
 0x1de   :  { %v5503_v55 = vpop.f32.mrb[117].mxu1  ;;  %5843 = vmatprep.subr.bf16.mxu0 %v6556_v0 }
 0x1df   :  { %v5504_v8 = vadd.f32 %v5503_v55, %v5502_v58  ;;  %v5505_v35 = vpop.f32.mrb[118].mxu1 }
 0x1e0   :  { %v5506_v14 = vpop.f32.mrb[119].mxu1 }
 0x1e1   :  { %v8107_v42 = vadd.f32 %v5504_v8, %v2673_v62  ;;  %v5507_v46 = vadd.f32 %v5506_v14, %v5505_v35  ;;  %v6555_v14 = vld [vmem:[%s9466_s3 + $0x48] sm:$0xff]   ;;  %5844 = vmatpush3.bf16.msra.mxu0 %v6556_v0  ;;  %v2692_v0 = vadd.f32 %v7796_v44, %v7800_v49 }
 0x1e2   :  { %5222 = vmatmul.mubr.msk.bf16.gmra.mrb[16].mxu0 %vm1713_vm0, %v7947_v54  ;;  %5651 = vmatprep.subr.bf16.mxu1 %v6555_v14 }
 0x1e3   :  { %2423 = vmatprep.mubr.bf16.mxu0 %v6860_v15  ;;  %v8123_v10 = vadd.f32 %v5507_v46, %v2676_v56  ;;  %v6558_v56 = vld [vmem:[%s9466_s3 + $0x98] sm:$0xff]   ;;  %5652 = vmatpush3.bf16.msra.mxu1 %v6557_v17 }
 0x1e4   :  { %5845 = vmatprep.subr.bf16.mxu0 %v6558_v56 }
 0x1e5   :  { %v5508_v54 = vpop.f32.mrb[120].mxu1  ;;  %5846 = vmatpush3.bf16.msra.mxu0 %v6558_v56 }
 0x1e6   :  { %v5509_v6 = vpop.f32.mrb[121].mxu1  ;;  %5847 = vmatprep.subr.bf16.mxu0 %v6560_v23 }
 0x1e7   :  { %v5510_v58 = vadd.f32 %v5509_v6, %v5508_v54  ;;  %v5511_v55 = vpop.f32.mrb[122].mxu1 }
 0x1e8   :  { %v5512_v62 = vpop.f32.mrb[123].mxu1 }
 0x1e9   :  { %v8132_v8 = vadd.f32 %v5510_v58, %v2681_v11  ;;  %v5513_v35 = vadd.f32 %v5512_v62, %v5511_v55  ;;  %v6559_v55 = vld [vmem:[%s9466_s3 + $0x50] sm:$0xff]   ;;  %v6562_v62 = vld [vmem:[%s9466_s3 + $0xa8] sm:$0xff]   ;;  %5848 = vmatpush3.bf16.msra.mxu0 %v6560_v23 }
 0x1ea   :  { %5223 = vmatmul.mubr.msk.bf16.gmra.mrb[20].mxu0 %vm1713_vm0, %v7964_v7  ;;  %5653 = vmatprep.subr.bf16.mxu1 %v6559_v55 }
 0x1eb   :  { %2433 = vmatprep.mubr.bf16.mxu0 %v6860_v15  ;;  %v8146_v24 = vadd.f32 %v5513_v35, %v2684_v57  ;;  %5849 = vmatprep.subr.bf16.mxu0 %v6562_v62  ;;  %v6564_v57 = vld [vmem:[%s9466_s3 + $0xb0] sm:$0xff]  }
 0x1ec   :  { %5654 = vmatpush3.bf16.msra.mxu1 %v6561_v33 }
 0x1ed   :  { %v5514_v7 = vpop.f32.mrb[124].mxu1  ;;  %5850 = vmatpush3.bf16.msra.mxu0 %v6562_v62  ;;  %v6567_v62 = vld [vmem:[%s9466_s3 + $0x60] sm:$0xff]  }
 0x1ee   :  { %v5515_v46 = vpop.f32.mrb[125].mxu1  ;;  %5851 = vmatprep.subr.bf16.mxu0 %v6564_v57 }
 0x1ef   :  { %v5516_v63 = vadd.f32 %v5515_v46, %v5514_v7  ;;  %v5517_v54 = vpop.f32.mrb[126].mxu1  ;;  %v6566_v46 = vld [vmem:[%s9466_s3 + $0xb8] sm:$0xff]  }
 0x1f0   :  { %v5518_v6 = vpop.f32.mrb[127].mxu1 }
 0x1f1   :  { %v8155_v11 = vadd.f32 %v5516_v63, %v2689_v4  ;;  %v5519_v58 = vadd.f32 %v5518_v6, %v5517_v54  ;;  %5852 = vmatpush3.bf16.msra.mxu0 %v6564_v57  ;;  %v6563_v63 = vld [vmem:[%s9466_s3 + $0x58] sm:$0xff]  }
 0x1f2   :  { %5224 = vmatmul.mubr.msk.bf16.gmra.mrb[24].mxu0 %vm1713_vm0, %v7971_v3  ;;  %5853 = vmatprep.subr.bf16.mxu0 %v6566_v46 }
 0x1f3   :  { %2443 = vmatprep.mubr.bf16.mxu0 %v6860_v15  ;;  %v8169_v44 = vadd.f32 %v5519_v58, %v2692_v0  ;;  %5655 = vmatprep.subr.bf16.mxu1 %v6563_v63 }
 0x1f5   :  { %v5536_v49 = vpop.f32.mrb[128].mxu1  ;;  %5854 = vmatpush3.bf16.msra.mxu0 %v6566_v46  ;;  %v6570_v46 = vld [vmem:[%s9466_s3 + $0x28] sm:$0xff]  }
 0x1f6   :  { %v5537_v3 = vpop.f32.mrb[129].mxu1 }
 0x1f7   :  { %v5538_v35 = vadd.f32 %v5537_v3, %v5536_v49  ;;  %v5539_v14 = vpop.f32.mrb[130].mxu1  ;;  %v6568_v49 = vld [vmem:[%s9466_s3 + $0x20] sm:$0xff]  }
 0x1f8   :  { %v5540_v17 = vpop.f32.mrb[131].mxu1 }
 0x1f9   :  { %v5541_v56 = vadd.f32 %v5540_v17, %v5539_v14  ;;  %v8177_v7 = vadd.f32 %v5538_v35, %v7815_v2  ;;  %v6565_v2 = vld [vmem:[%s9466_s3 + $0x18] sm:$0xff]  }
 0x1fa   :  { %5225 = vmatmul.mubr.msk.bf16.gmra.mrb[28].mxu0 %vm1713_vm0, %v7988_v38  ;;  %5656 = vmatpush3.bf16.msra.mxu1 %v6565_v2 }
 0x1fb   :  { %2453 = vmatprep.mubr.bf16.mxu0 %v6860_v15  ;;  %v8184_v23 = vadd.f32 %v5541_v56, %v7821_v9  ;;  %5657 = vmatprep.subr.bf16.mxu1 %v6567_v62  ;;  %v6569_v56 = vld [vmem:[%s9466_s3 + $0x68] sm:$0xff]  }
 0x1fd   :  { %v5542_v4 = vpop.f32.mrb[132].mxu1 }
 0x1fe   :  { %v5543_v38 = vpop.f32.mrb[133].mxu1  ;;  %5658 = vmatpush3.bf16.msra.mxu1 %v6568_v49  ;;  %v6573_v49 = vld [vmem:[%s9466_s3 + $0x78] sm:$0xff]  }
 0x1ff   :  { %v5544_v54 = vadd.f32 %v5543_v38, %v5542_v4  ;;  %v5545_v6 = vpop.f32.mrb[134].mxu1  ;;  %5659 = vmatprep.subr.bf16.mxu1 %v6569_v56 }
 0x200   :  { %v5546_v0 = vpop.f32.mrb[135].mxu1 }
 0x201   :  { %v5547_v58 = vadd.f32 %v5546_v0, %v5545_v6  ;;  %v8195_v9 = vadd.f32 %v5544_v54, %v7836_v28  ;;  %v6571_v6 = vld [vmem:[%s9466_s3 + $0x70] sm:$0xff]  }
 0x202   :  { %5226 = vmatmul.mubr.msk.bf16.gmra.mrb[32].mxu0 %vm1713_vm0, %v7995_v21  ;;  %5660 = vmatpush3.bf16.msra.mxu1 %v6570_v46  ;;  %v6572_v0 = vld [vmem:[%s9466_s3 + $0x30] sm:$0xff]  }
 0x203   :  { %2463 = vmatprep.mubr.bf16.mxu0 %v6860_v15  ;;  %v8199_v55 = vadd.f32 %v5547_v58, %v7843_v20  ;;  %5661 = vmatprep.subr.bf16.mxu1 %v6571_v6 }
 0x205   :  { %v5548_v33 = vpop.f32.mrb[136].mxu1 }
 0x206   :  { %v5549_v3 = vpop.f32.mrb[137].mxu1  ;;  %5662 = vmatpush3.bf16.msra.mxu1 %v6572_v0 }
 0x207   :  { %v5550_v57 = vadd.f32 %v5549_v3, %v5548_v33  ;;  %v5551_v21 = vpop.f32.mrb[138].mxu1  ;;  %5663 = vmatprep.subr.bf16.mxu1 %v6573_v49 }
 0x208   :  { %v5552_v28 = vpop.f32.mrb[139].mxu1 }
 0x209   :  { %v5553_v35 = vadd.f32 %v5552_v28, %v5551_v21  ;;  %v8210_v20 = vadd.f32 %v5550_v57, %v7858_v60  ;;  %v6574_v57 = vld [vmem:[%s9466_s3 + $0x38] sm:$0xff]  }
 0x20a   :  { %5227 = vmatmul.mubr.msk.bf16.gmra.mrb[36].mxu0 %vm1713_vm0, %v8012_v18  ;;  %5664 = vmatpush3.bf16.msra.mxu1 %v6574_v57 }
 0x20b   :  { %2473 = vmatprep.mubr.bf16.mxu0 %v6860_v15  ;;  %v8214_v14 = vadd.f32 %v5553_v35, %v7865_v29 }
 0x20d   :  { %v5554_v17 = vpop.f32.mrb[140].mxu1 }
 0x20e   :  { %v5555_v4 = vpop.f32.mrb[141].mxu1 }
 0x20f   :  { %v5556_v63 = vadd.f32 %v5555_v4, %v5554_v17  ;;  %v5557_v18 = vpop.f32.mrb[142].mxu1 }
 0x210   :  { %v5558_v60 = vpop.f32.mrb[143].mxu1 }
 0x211   :  { %v5559_v2 = vadd.f32 %v5558_v60, %v5557_v18  ;;  %v8225_v29 = vadd.f32 %v5556_v63, %v7880_v27 }
 0x212   :  { %5228 = vmatmul.mubr.msk.bf16.gmra.mrb[40].mxu0 %vm1713_vm0, %v8019_v48 }
 0x213   :  { %2483 = vmatprep.mubr.bf16.mxu0 %v6860_v15  ;;  %v8229_v38 = vadd.f32 %v5559_v2, %v7887_v37 }
 0x215   :  { %v5560_v54 = vpop.f32.mrb[144].mxu1 }
 0x216   :  { %v5561_v58 = vpop.f32.mrb[145].mxu1 }
 0x217   :  { %v5562_v33 = vadd.f32 %v5561_v58, %v5560_v54  ;;  %v5563_v48 = vpop.f32.mrb[146].mxu1 }
 0x218   :  { %v5564_v27 = vpop.f32.mrb[147].mxu1 }
 0x219   :  { %v5565_v62 = vadd.f32 %v5564_v27, %v5563_v48  ;;  %v8240_v37 = vadd.f32 %v5562_v33, %v7902_v1 }
 0x21a   :  { %5229 = vmatmul.mubr.msk.bf16.gmra.mrb[44].mxu0 %vm1713_vm0, %v8037_v30 }
 0x21b   :  { %2493 = vmatprep.mubr.bf16.mxu0 %v6860_v15  ;;  %v8247_v3 = vadd.f32 %v5565_v62, %v7909_v45 }
 0x21d   :  { %v5566_v21 = vpop.f32.mrb[148].mxu1 }
 0x21e   :  { %v5567_v30 = vpop.f32.mrb[149].mxu1 }
 0x21f   :  { %v5568_v28 = vadd.f32 %v5567_v30, %v5566_v21  ;;  %v5569_v1 = vpop.f32.mrb[150].mxu1 }
 0x220   :  { %v5570_v35 = vpop.f32.mrb[151].mxu1 }
 0x221   :  { %v5571_v17 = vadd.f32 %v5570_v35, %v5569_v1  ;;  %v8255_v56 = vadd.f32 %v5568_v28, %v7925_v12 }
 0x222   :  { %5230 = vmatmul.mubr.msk.bf16.gmra.mrb[48].mxu0 %vm1713_vm0, %v8044_v19 }
 0x223   :  { %2503 = vmatprep.mubr.bf16.mxu0 %v6860_v15  ;;  %v8259_v45 = vadd.f32 %v5571_v17, %v7933_v53 }
 0x225   :  { %v5572_v46 = vpop.f32.mrb[152].mxu1 }
 0x226   :  { %v5573_v4 = vpop.f32.mrb[153].mxu1 }
 0x227   :  { %v5574_v63 = vadd.f32 %v5573_v4, %v5572_v46  ;;  %v5575_v18 = vpop.f32.mrb[154].mxu1 }
 0x228   :  { %v5576_v60 = vpop.f32.mrb[155].mxu1 }
 0x229   :  { %v5577_v2 = vadd.f32 %v5576_v60, %v5575_v18  ;;  %v8264_v54 = vadd.f32 %v5574_v63, %v7949_v31 }
 0x22a   :  { %5231 = vmatmul.mubr.msk.bf16.gmra.mrb[52].mxu0 %vm1713_vm0, %v8062_v41 }
 0x22b   :  { %2513 = vmatprep.mubr.bf16.mxu0 %v6860_v15  ;;  %v8268_v12 = vadd.f32 %v5577_v2, %v7957_v61 }
 0x22d   :  { %v5578_v19 = vpop.f32.mrb[156].mxu1 }
 0x22e   :  { %v5579_v53 = vpop.f32.mrb[157].mxu1 }
 0x22f   :  { %v5580_v6 = vadd.f32 %v5579_v53, %v5578_v19  ;;  %v5581_v0 = vpop.f32.mrb[158].mxu1 }
 0x230   :  { %v5582_v58 = vpop.f32.mrb[159].mxu1 }
 0x231   :  { %v5583_v33 = vadd.f32 %v5582_v58, %v5581_v0  ;;  %v8273_v48 = vadd.f32 %v5580_v6, %v7973_v32 }
 0x232   :  { %5232 = vmatmul.mubr.msk.bf16.gmra.mrb[56].mxu0 %vm1713_vm0, %v8069_v22 }
 0x233   :  { %2523 = vmatprep.mubr.bf16.mxu0 %v6860_v15  ;;  %v8277_v31 = vadd.f32 %v5583_v33, %v7981_v5 }
 0x235   :  { %v5584_v41 = vpop.f32.mrb[160].mxu1 }
 0x236   :  { %v5585_v61 = vpop.f32.mrb[161].mxu1 }
 0x237   :  { %v5586_v27 = vadd.f32 %v5585_v61, %v5584_v41  ;;  %v5587_v62 = vpop.f32.mrb[162].mxu1 }
 0x238   :  { %v5588_v49 = vpop.f32.mrb[163].mxu1 }
 0x239   :  { %v5589_v57 = vadd.f32 %v5588_v49, %v5587_v62  ;;  %v8282_v21 = vadd.f32 %v5586_v27, %v7997_v40 }
 0x23a   :  { %5233 = vmatmul.mubr.msk.bf16.gmra.mrb[60].mxu0 %vm1713_vm0, %v8087_v51 }
 0x23b   :  { %v8285_v32 = vadd.f32 %v5589_v57, %v8005_v59 }
 0x23d   :  { %v5590_v22 = vpop.f32.mrb[164].mxu1 }
 0x23e   :  { %v5591_v15 = vpop.f32.mrb[165].mxu1 }
 0x23f   :  { %v5592_v30 = vadd.f32 %v5591_v15, %v5590_v22  ;;  %v5593_v5 = vpop.f32.mrb[166].mxu1 }
 0x240   :  { %v5594_v28 = vpop.f32.mrb[167].mxu1 }
 0x241   :  { %v5595_v1 = vadd.f32 %v5594_v28, %v5593_v5  ;;  %v8288_v35 = vadd.f32 %v5592_v30, %v8021_v13 }
 0x243   :  { %v8291_v17 = vadd.f32 %v5595_v1, %v8030_v26 }
 0x245   :  { %v5596_v46 = vpop.f32.mrb[168].mxu1 }
 0x246   :  { %v5597_v51 = vpop.f32.mrb[169].mxu1 }
 0x247   :  { %v5598_v4 = vadd.f32 %v5597_v51, %v5596_v46  ;;  %v5599_v40 = vpop.f32.mrb[170].mxu1 }
 0x248   :  { %v5600_v63 = vpop.f32.mrb[171].mxu1 }
 0x249   :  { %v5601_v18 = vadd.f32 %v5600_v63, %v5599_v40  ;;  %v8294_v59 = vadd.f32 %v5598_v4, %v8046_v43 }
 0x24b   :  { %v8297_v60 = vadd.f32 %v5601_v18, %v8055_v36 }
 0x24d   :  { %v5602_v2 = vpop.f32.mrb[172].mxu1 }
 0x24e   :  { %v5603_v19 = vpop.f32.mrb[173].mxu1 }
 0x24f   :  { %v5604_v53 = vadd.f32 %v5603_v19, %v5602_v2  ;;  %v5605_v13 = vpop.f32.mrb[174].mxu1 }
 0x250   :  { %v5606_v6 = vpop.f32.mrb[175].mxu1 }
 0x251   :  { %v5607_v0 = vadd.f32 %v5606_v6, %v5605_v13  ;;  %v8300_v26 = vadd.f32 %v5604_v53, %v8071_v34 }
 0x253   :  { %v8303_v58 = vadd.f32 %v5607_v0, %v8080_v47 }
 0x255   :  { %v5608_v33 = vpop.f32.mrb[176].mxu1 }
 0x256   :  { %v5609_v41 = vpop.f32.mrb[177].mxu1 }
 0x257   :  { %v5610_v61 = vadd.f32 %v5609_v41, %v5608_v33  ;;  %v5611_v43 = vpop.f32.mrb[178].mxu1 }
 0x258   :  { %v5612_v27 = vpop.f32.mrb[179].mxu1 }
 0x259   :  { %v5613_v62 = vadd.f32 %v5612_v27, %v5611_v43  ;;  %v8306_v36 = vadd.f32 %v5610_v61, %v8091_v50 }
 0x25b   :  { %v8309_v49 = vadd.f32 %v5613_v62, %v8100_v52 }
 0x25d   :  { %v5614_v57 = vpop.f32.mrb[180].mxu1 }
 0x25e   :  { %v5615_v22 = vpop.f32.mrb[181].mxu1 }
 0x25f   :  { %v5616_v15 = vadd.f32 %v5615_v22, %v5614_v57  ;;  %v5617_v34 = vpop.f32.mrb[182].mxu1 }
 0x260   :  { %v5618_v30 = vpop.f32.mrb[183].mxu1 }
 0x261   :  { %v5619_v5 = vadd.f32 %v5618_v30, %v5617_v34  ;;  %v8312_v47 = vadd.f32 %v5616_v15, %v8107_v42 }
 0x263   :  { %v8315_v28 = vadd.f32 %v5619_v5, %v8123_v10 }
 0x265   :  { %v5620_v1 = vpop.f32.mrb[184].mxu1 }
 0x266   :  { %v5621_v46 = vpop.f32.mrb[185].mxu1 }
 0x267   :  { %v5622_v51 = vadd.f32 %v5621_v46, %v5620_v1  ;;  %v5623_v50 = vpop.f32.mrb[186].mxu1 }
 0x268   :  { %v5624_v4 = vpop.f32.mrb[187].mxu1 }
 0x269   :  { %v5625_v40 = vadd.f32 %v5624_v4, %v5623_v50  ;;  %v8318_v52 = vadd.f32 %v5622_v51, %v8132_v8 }
 0x26b   :  { %v8321_v63 = vadd.f32 %v5625_v40, %v8146_v24 }
 0x26d   :  { %v5626_v18 = vpop.f32.mrb[188].mxu1 }
 0x26e   :  { %v5627_v2 = vpop.f32.mrb[189].mxu1 }
 0x26f   :  { %v5628_v19 = vadd.f32 %v5627_v2, %v5626_v18  ;;  %v5629_v42 = vpop.f32.mrb[190].mxu1 }
 0x270   :  { %v5630_v53 = vpop.f32.mrb[191].mxu1 }
 0x271   :  { %v5631_v13 = vadd.f32 %v5630_v53, %v5629_v42  ;;  %v8324_v10 = vadd.f32 %v5628_v19, %v8155_v11 }
 0x273   :  { %v8327_v6 = vadd.f32 %v5631_v13, %v8169_v44 }
 0x275   :  { %v5809_v0 = vpop.f32.mrb[192].mxu1 }
 0x276   :  { %v3060_v33 = vadd.f32 %v5809_v0, %v8195_v9  ;;  %v3051_v8 = vpop.f32.mrb[193].mxu1 }
 0x277   :  { %v3052_v41 = vadd.f32 %v3051_v8, %v8177_v7  ;;  %v5810_v24 = vpop.f32.mrb[194].mxu1 }
 0x278   :  { %v3063_v61 = vadd.f32 %v5810_v24, %v8199_v55  ;;  %v3054_v43 = vpop.f32.mrb[195].mxu1  ;;  %v3186_v62 = vmax.f32 %v3060_v33, 0.0 }
 0x279   :  { %v3055_v27 = vadd.f32 %v3054_v43, %v8184_v23  ;;  %v3180_v22 = vmax.f32 %v3052_v41, 0.0 }
 0x27a   :  { %v3189_v57 = vmax.f32 %v3063_v61, 0.0 }
 0x27b   :  { %v3183_v11 = vmax.f32 %v3055_v27, 0.0  ;;  %v360_v27 = vsub.s32 1, %v7775_v25 }
 0x27c   :  { %v3279_v15 = vpack.c.bf16 %v3189_v57, %v3186_v62 }
 0x27d   :  { %v3276_v34 = vpack.c.bf16 %v3183_v11, %v3180_v22  ;;  %v5813_v44 = vpop.f32.mrb[196].mxu1 }
 0x27e   :  { %v3076_v30 = vadd.f32 %v5813_v44, %v8225_v29  ;;  %v3067_v5 = vpop.f32.mrb[197].mxu1 }
 0x27f   :  { %v3068_v9 = vadd.f32 %v3067_v5, %v8210_v20  ;;  %v5814_v1 = vpop.f32.mrb[198].mxu1  ;;  %5855 = vmatprep.mubr.bf16.mxu0 %v3276_v34 }
 0x280   :  { %v3079_v7 = vadd.f32 %v5814_v1, %v8229_v38  ;;  %v3070_v55 = vpop.f32.mrb[199].mxu1  ;;  %5856 = vmatmul.mubr.bf16.vlgmr.msra.gmra.mrb[64].mxu0 %v3279_v15  ;;  %v3198_v46 = vmax.f32 %v3076_v30, 0.0 }
 0x281   :  { %v3071_v23 = vadd.f32 %v3070_v55, %v8214_v14  ;;  %v3192_v50 = vmax.f32 %v3068_v9, 0.0 }
 0x282   :  { %v3201_v51 = vmax.f32 %v3079_v7, 0.0 }
 0x283   :  { %v3195_v4 = vmax.f32 %v3071_v23, 0.0 }
 0x284   :  { %v3285_v40 = vpack.c.bf16 %v3201_v51, %v3198_v46 }
 0x285   :  { %v3282_v18 = vpack.c.bf16 %v3195_v4, %v3192_v50  ;;  %v5817_v2 = vpop.f32.mrb[200].mxu1 }
 0x286   :  { %v3092_v29 = vadd.f32 %v5817_v2, %v8255_v56  ;;  %v3083_v19 = vpop.f32.mrb[201].mxu1  ;;  %v356_v56 = vsub.s32 0, %v7775_v25 }
 0x287   :  { %v3084_v20 = vadd.f32 %v3083_v19, %v8240_v37  ;;  %v5818_v42 = vpop.f32.mrb[202].mxu1  ;;  %5859 = vmatprep.mubr.bf16.mxu0 %v3282_v18 }
 0x288   :  { %v3095_v38 = vadd.f32 %v5818_v42, %v8259_v45  ;;  %v3086_v53 = vpop.f32.mrb[203].mxu1  ;;  %5860 = vmatmul.mubr.bf16.gmra.mrb[68].mxu0 %v3285_v40  ;;  %v3210_v13 = vmax.f32 %v3092_v29, 0.0  ;;  %v8348_v11 = vrot.slane %v7794_v39, %v356_v56  ;;  %v6575_v40 = vld [vmem:[%s9468_s5] sm:$0xff]  }
 0x289   :  { %v3087_v14 = vadd.f32 %v3086_v53, %v8247_v3  ;;  %v3204_v33 = vmax.f32 %v3084_v20, 0.0  ;;  %5927 = vmatprep.subr.bf16.mxu1 %v6575_v40  ;;  %5887 = vmatprep.subr.bf16.mxu0 %v6575_v40 }
 0x28a   :  { %v3213_v0 = vmax.f32 %v3095_v38, 0.0  ;;  %5888 = vmatpush3.bf16.msra.mxu0 %v6575_v40 }
 0x28b   :  { %v3207_v8 = vmax.f32 %v3087_v14, 0.0 }
 0x28c   :  { %v3291_v41 = vpack.c.bf16 %v3213_v0, %v3210_v13 }
 0x28d   :  { %v3288_v24 = vpack.c.bf16 %v3207_v8, %v3204_v33  ;;  %v5821_v61 = vpop.f32.mrb[204].mxu1 }
 0x28e   :  { %v3108_v43 = vadd.f32 %v5821_v61, %v8273_v48  ;;  %v3099_v37 = vpop.f32.mrb[205].mxu1  ;;  %v6835_v48 = vld [vmem:[%s9465_s2] sm:$0x7] }
 0x28f   :  { %v3100_v45 = vadd.f32 %v3099_v37, %v8264_v54  ;;  %v5822_v62 = vpop.f32.mrb[206].mxu1  ;;  %5863 = vmatprep.mubr.bf16.mxu0 %v3288_v24  ;;  %v8353_v25 = vrot.slane %v6835_v48, %v360_v27 }
 0x290   :  { %v3111_v3 = vadd.f32 %v5822_v62, %v8277_v31  ;;  %v3102_v57 = vpop.f32.mrb[207].mxu1  ;;  %5864 = vmatmul.mubr.bf16.gmra.mrb[72].mxu0 %v3291_v41  ;;  %v3222_v15 = vmax.f32 %v3108_v43, 0.0 }
 0x291   :  { %v3103_v22 = vadd.f32 %v3102_v57, %v8268_v12  ;;  %v3216_v54 = vmax.f32 %v3100_v45, 0.0 }
 0x292   :  { %v3225_v34 = vmax.f32 %v3111_v3, 0.0 }
 0x293   :  { %v3219_v44 = vmax.f32 %v3103_v22, 0.0 }
 0x294   :  { %v3297_v30 = vpack.c.bf16 %v3225_v34, %v3222_v15 }
 0x295   :  { %v2375_v5 = vpop.f32.mrb[0].mxu0  ;;  %v3294_v31 = vpack.c.bf16 %v3219_v44, %v3216_v54  ;;  %v5825_v1 = vpop.f32.mrb[208].mxu1 }
 0x296   :  { %v5935_v9 = vadd.f32 %v2375_v5, %v8348_v11  ;;  %v2377_v12 = vpop.f32.mrb[1].mxu0  ;;  %v3124_v39 = vadd.f32 %v5825_v1, %v8288_v35  ;;  %v3115_v55 = vpop.f32.mrb[209].mxu1 }
 0x297   :  { %v5936_v7 = vadd.f32 %v2377_v12, %v8353_v25  ;;  %v2379_v23 = vpop.f32.mrb[2].mxu0  ;;  %v3116_v46 = vadd.f32 %v3115_v55, %v8282_v21  ;;  %v5826_v50 = vpop.f32.mrb[210].mxu1  ;;  %5867 = vmatprep.mubr.bf16.mxu0 %v3294_v31 }
 0x298   :  { %v5937_v51 = vadd.f32 %v2379_v23, %v8348_v11  ;;  %v2381_v4 = vpop.f32.mrb[3].mxu0  ;;  %v3127_v18 = vadd.f32 %v5826_v50, %v8291_v17  ;;  %v3118_v35 = vpop.f32.mrb[211].mxu1  ;;  %5868 = vmatmul.mubr.bf16.gmra.mrb[76].mxu0 %v3297_v30  ;;  %v3178_v29 = vmax.f32 %v5935_v9, 0.0  ;;  %v3234_v21 = vmax.f32 %v3124_v39, 0.0 }
 0x299   :  { %v5938_v2 = vadd.f32 %v2381_v4, %v8353_v25  ;;  %v3119_v20 = vadd.f32 %v3118_v35, %v8285_v32  ;;  %v3179_v42 = vmax.f32 %v5936_v7, 0.0  ;;  %v3228_v14 = vmax.f32 %v3116_v46, 0.0 }
 0x29a   :  { %v3181_v19 = vmax.f32 %v5937_v51, 0.0  ;;  %v3237_v38 = vmax.f32 %v3127_v18, 0.0 }
 0x29b   :  { %v3182_v53 = vmax.f32 %v5938_v2, 0.0  ;;  %v3231_v0 = vmax.f32 %v3119_v20, 0.0 }
 0x29c   :  { %v3274_v13 = vpack.c.bf16 %v3181_v19, %v3178_v29  ;;  %v3303_v33 = vpack.c.bf16 %v3237_v38, %v3234_v21 }
 0x29d   :  { %v3275_v17 = vpack.c.bf16 %v3182_v53, %v3179_v42  ;;  %v2385_v8 = vpop.f32.mrb[4].mxu0  ;;  %v3300_v41 = vpack.c.bf16 %v3231_v0, %v3228_v14  ;;  %v5829_v61 = vpop.f32.mrb[212].mxu1 }
 0x29e   :  { %v5939_v24 = vadd.f32 %v2385_v8, %v8348_v11  ;;  %v2387_v56 = vpop.f32.mrb[5].mxu0  ;;  %v3140_v32 = vadd.f32 %v5829_v61, %v8300_v26  ;;  %v3131_v37 = vpop.f32.mrb[213].mxu1 }
 0x29f   :  { %v5940_v43 = vadd.f32 %v2387_v56, %v8353_v25  ;;  %v2389_v27 = vpop.f32.mrb[6].mxu0  ;;  %3553 = vmatprep.mubr.bf16.mxu1 %v3275_v17  ;;  %v3132_v45 = vadd.f32 %v3131_v37, %v8294_v59  ;;  %v5830_v3 = vpop.f32.mrb[214].mxu1  ;;  %5871 = vmatprep.mubr.bf16.mxu0 %v3300_v41 }
 0x2a0   :  { %v5941_v62 = vadd.f32 %v2389_v27, %v8348_v11  ;;  %v2391_v57 = vpop.f32.mrb[7].mxu0  ;;  %3554 = vmatmul.mubr.bf16.vlgmr.msra.gmra.mrb[224].mxu1 %v3274_v13  ;;  %v3143_v22 = vadd.f32 %v5830_v3, %v8303_v58  ;;  %v3134_v34 = vpop.f32.mrb[215].mxu1  ;;  %5872 = vmatmul.mubr.bf16.gmra.mrb[80].mxu0 %v3303_v33  ;;  %v3184_v26 = vmax.f32 %v5939_v24, 0.0  ;;  %v3246_v44 = vmax.f32 %v3140_v32, 0.0 }
 0x2a1   :  { %v5942_v15 = vadd.f32 %v2391_v57, %v8353_v25  ;;  %5931 = vmatpush3.bf16.msra.mxu1 %v6575_v40  ;;  %v3135_v54 = vadd.f32 %v3134_v34, %v8297_v60  ;;  %v3185_v30 = vmax.f32 %v5940_v43, 0.0  ;;  %v3240_v31 = vmax.f32 %v3132_v45, 0.0 }
 0x2a2   :  { %v3187_v48 = vmax.f32 %v5941_v62, 0.0  ;;  %v3249_v59 = vmax.f32 %v3143_v22, 0.0 }
 0x2a3   :  { %v3188_v5 = vmax.f32 %v5942_v15, 0.0  ;;  %v3243_v1 = vmax.f32 %v3135_v54, 0.0 }
 0x2a4   :  { %v3277_v9 = vpack.c.bf16 %v3187_v48, %v3184_v26  ;;  %v3309_v12 = vpack.c.bf16 %v3249_v59, %v3246_v44 }
 0x2a5   :  { %v3278_v39 = vpack.c.bf16 %v3188_v5, %v3185_v30  ;;  %v2395_v7 = vpop.f32.mrb[8].mxu0  ;;  %v3306_v58 = vpack.c.bf16 %v3243_v1, %v3240_v31  ;;  %v5833_v23 = vpop.f32.mrb[216].mxu1 }
 0x2a6   :  { %v5943_v55 = vadd.f32 %v2395_v7, %v8348_v11  ;;  %v2397_v46 = vpop.f32.mrb[9].mxu0  ;;  %v3156_v51 = vadd.f32 %v5833_v23, %v8312_v47  ;;  %v3147_v60 = vpop.f32.mrb[217].mxu1 }
 0x2a7   :  { %v5944_v50 = vadd.f32 %v2397_v46, %v8353_v25  ;;  %v2399_v4 = vpop.f32.mrb[10].mxu0  ;;  %3561 = vmatprep.mubr.bf16.mxu1 %v3278_v39  ;;  %v3148_v40 = vadd.f32 %v3147_v60, %v8306_v36  ;;  %v5834_v2 = vpop.f32.mrb[218].mxu1  ;;  %5875 = vmatprep.mubr.bf16.mxu0 %v3306_v58 }
 0x2a8   :  { %v5945_v18 = vadd.f32 %v2399_v4, %v8348_v11  ;;  %v2401_v35 = vpop.f32.mrb[11].mxu0  ;;  %3562 = vmatmul.mubr.bf16.gmra.mrb[228].mxu1 %v3277_v9  ;;  %v3159_v29 = vadd.f32 %v5834_v2, %v8315_v28  ;;  %v3150_v20 = vpop.f32.mrb[219].mxu1  ;;  %5876 = vmatmul.mubr.bf16.gmra.mrb[84].mxu0 %v3309_v12  ;;  %v3190_v47 = vmax.f32 %v5943_v55, 0.0  ;;  %v3258_v38 = vmax.f32 %v3156_v51, 0.0 }
 0x2a9   :  { %v5946_v19 = vadd.f32 %v2401_v35, %v8353_v25  ;;  %v3151_v42 = vadd.f32 %v3150_v20, %v8309_v49  ;;  %v3191_v53 = vmax.f32 %v5944_v50, 0.0  ;;  %v3252_v13 = vmax.f32 %v3148_v40, 0.0 }
 0x2aa   :  { %v3193_v21 = vmax.f32 %v5945_v18, 0.0  ;;  %v3261_v14 = vmax.f32 %v3159_v29, 0.0 }
 0x2ab   :  { %v3194_v36 = vmax.f32 %v5946_v19, 0.0  ;;  %v3255_v33 = vmax.f32 %v3151_v42, 0.0 }
 0x2ac   :  { %v3280_v0 = vpack.c.bf16 %v3193_v21, %v3190_v47  ;;  %v3315_v17 = vpack.c.bf16 %v3261_v14, %v3258_v38 }
 0x2ad   :  { %v3281_v8 = vpack.c.bf16 %v3194_v36, %v3191_v53  ;;  %v2405_v41 = vpop.f32.mrb[12].mxu0  ;;  %v3312_v24 = vpack.c.bf16 %v3255_v33, %v3252_v13  ;;  %v5837_v61 = vpop.f32.mrb[220].mxu1 }
 0x2ae   :  { %v5947_v28 = vadd.f32 %v2405_v41, %v8348_v11  ;;  %v2407_v56 = vpop.f32.mrb[13].mxu0  ;;  %v3172_v32 = vadd.f32 %v5837_v61, %v8324_v10  ;;  %v3163_v49 = vpop.f32.mrb[221].mxu1 }
 0x2af   :  { %v5948_v43 = vadd.f32 %v2407_v56, %v8353_v25  ;;  %v2409_v37 = vpop.f32.mrb[14].mxu0  ;;  %3569 = vmatprep.mubr.bf16.mxu1 %v3281_v8  ;;  %v3164_v27 = vadd.f32 %v3163_v49, %v8318_v52  ;;  %v5838_v62 = vpop.f32.mrb[222].mxu1  ;;  %5879 = vmatprep.mubr.bf16.mxu0 %v3312_v24 }
 0x2b0   :  { %v5949_v45 = vadd.f32 %v2409_v37, %v8348_v11  ;;  %v2411_v3 = vpop.f32.mrb[15].mxu0  ;;  %3570 = vmatmul.mubr.bf16.gmra.mrb[232].mxu1 %v3280_v0  ;;  %v3175_v57 = vadd.f32 %v5838_v62, %v8327_v6  ;;  %v3166_v15 = vpop.f32.mrb[223].mxu1  ;;  %5880 = vmatmul.mubr.bf16.gmra.mrb[88].mxu0 %v3315_v17  ;;  %v3196_v10 = vmax.f32 %v5947_v28, 0.0  ;;  %v3270_v48 = vmax.f32 %v3172_v32, 0.0 }
 0x2b1   :  { %v5950_v22 = vadd.f32 %v2411_v3, %v8353_v25  ;;  %v3167_v26 = vadd.f32 %v3166_v15, %v8321_v63  ;;  %v3197_v54 = vmax.f32 %v5948_v43, 0.0  ;;  %v3264_v30 = vmax.f32 %v3164_v27, 0.0 }
 0x2b2   :  { %v3199_v34 = vmax.f32 %v5949_v45, 0.0  ;;  %v3273_v44 = vmax.f32 %v3175_v57, 0.0 }
 0x2b3   :  { %v3200_v52 = vmax.f32 %v5950_v22, 0.0  ;;  %v3267_v5 = vmax.f32 %v3167_v26, 0.0 }
 0x2b4   :  { %v3283_v59 = vpack.c.bf16 %v3199_v34, %v3196_v10  ;;  %v3321_v31 = vpack.c.bf16 %v3273_v44, %v3270_v48 }
 0x2b5   :  { %v3284_v9 = vpack.c.bf16 %v3200_v52, %v3197_v54  ;;  %v2415_v1 = vpop.f32.mrb[16].mxu0  ;;  %v3318_v12 = vpack.c.bf16 %v3267_v5, %v3264_v30 }
 0x2b6   :  { %v5951_v6 = vadd.f32 %v2415_v1, %v8348_v11  ;;  %v2417_v39 = vpop.f32.mrb[17].mxu0 }
 0x2b7   :  { %v5952_v7 = vadd.f32 %v2417_v39, %v8353_v25  ;;  %v2419_v58 = vpop.f32.mrb[18].mxu0  ;;  %3577 = vmatprep.mubr.bf16.mxu1 %v3284_v9  ;;  %5883 = vmatprep.mubr.bf16.mxu0 %v3318_v12 }
 0x2b8   :  { %v5953_v63 = vadd.f32 %v2419_v58, %v8348_v11  ;;  %v2421_v55 = vpop.f32.mrb[19].mxu0  ;;  %3578 = vmatmul.mubr.bf16.gmra.mrb[236].mxu1 %v3283_v59  ;;  %5884 = vmatmul.mubr.bf16.gmra.mrb[92].mxu0 %v3321_v31  ;;  %v3202_v46 = vmax.f32 %v5951_v6, 0.0 }
 0x2b9   :  { %v5954_v23 = vadd.f32 %v2421_v55, %v8353_v25  ;;  %v3203_v50 = vmax.f32 %v5952_v7, 0.0 }
 0x2ba   :  { %v3205_v51 = vmax.f32 %v5953_v63, 0.0 }
 0x2bb   :  { %v3206_v60 = vmax.f32 %v5954_v23, 0.0 }
 0x2bc   :  { %v3286_v4 = vpack.c.bf16 %v3205_v51, %v3202_v46 }
 0x2bd   :  { %v3287_v40 = vpack.c.bf16 %v3206_v60, %v3203_v50  ;;  %v2425_v18 = vpop.f32.mrb[20].mxu0 }
 0x2be   :  { %v5955_v2 = vadd.f32 %v2425_v18, %v8348_v11  ;;  %v2427_v35 = vpop.f32.mrb[21].mxu0 }
 0x2bf   :  { %v5956_v29 = vadd.f32 %v2427_v35, %v8353_v25  ;;  %v2429_v19 = vpop.f32.mrb[22].mxu0  ;;  %3585 = vmatprep.mubr.bf16.mxu1 %v3287_v40 }
 0x2c0   :  { %v5957_v20 = vadd.f32 %v2429_v19, %v8348_v11  ;;  %v2431_v47 = vpop.f32.mrb[23].mxu0  ;;  %3586 = vmatmul.mubr.bf16.gmra.mrb[240].mxu1 %v3286_v4  ;;  %v3208_v42 = vmax.f32 %v5955_v2, 0.0 }
 0x2c1   :  { %v5958_v21 = vadd.f32 %v2431_v47, %v8353_v25  ;;  %v3209_v53 = vmax.f32 %v5956_v29, 0.0 }
 0x2c2   :  { %v3211_v38 = vmax.f32 %v5957_v20, 0.0 }
 0x2c3   :  { %v3212_v14 = vmax.f32 %v5958_v21, 0.0 }
 0x2c4   :  { %v3289_v36 = vpack.c.bf16 %v3211_v38, %v3208_v42 }
 0x2c5   :  { %v3290_v13 = vpack.c.bf16 %v3212_v14, %v3209_v53  ;;  %v2435_v0 = vpop.f32.mrb[24].mxu0 }
 0x2c6   :  { %v5959_v33 = vadd.f32 %v2435_v0, %v8348_v11  ;;  %v2437_v17 = vpop.f32.mrb[25].mxu0 }
 0x2c7   :  { %v5960_v8 = vadd.f32 %v2437_v17, %v8353_v25  ;;  %v2439_v41 = vpop.f32.mrb[26].mxu0  ;;  %3593 = vmatprep.mubr.bf16.mxu1 %v3290_v13 }
 0x2c8   :  { %v5961_v24 = vadd.f32 %v2439_v41, %v8348_v11  ;;  %v2441_v28 = vpop.f32.mrb[27].mxu0  ;;  %3594 = vmatmul.mubr.bf16.gmra.mrb[244].mxu1 %v3289_v36  ;;  %v3214_v56 = vmax.f32 %v5959_v33, 0.0 }
 0x2c9   :  { %v5962_v61 = vadd.f32 %v2441_v28, %v8353_v25  ;;  %v3215_v43 = vmax.f32 %v5960_v8, 0.0 }
 0x2ca   :  { %v3217_v32 = vmax.f32 %v5961_v24, 0.0 }
 0x2cb   :  { %v3218_v49 = vmax.f32 %v5962_v61, 0.0 }
 0x2cc   :  { %v3292_v37 = vpack.c.bf16 %v3217_v32, %v3214_v56 }
 0x2cd   :  { %v3293_v27 = vpack.c.bf16 %v3218_v49, %v3215_v43  ;;  %v2445_v45 = vpop.f32.mrb[28].mxu0 }
 0x2ce   :  { %v5963_v62 = vadd.f32 %v2445_v45, %v8348_v11  ;;  %v2447_v3 = vpop.f32.mrb[29].mxu0  ;;  %v6576_v45 = vld [vmem:[%s9468_s5 + $0x8] sm:$0xff]  }
 0x2cf   :  { %v5964_v57 = vadd.f32 %v2447_v3, %v8353_v25  ;;  %v2449_v22 = vpop.f32.mrb[30].mxu0  ;;  %3601 = vmatprep.mubr.bf16.mxu1 %v3293_v27  ;;  %5928 = vmatprep.subr.bf16.mxu1 %v6576_v45 }
 0x2d0   :  { %v5965_v15 = vadd.f32 %v2449_v22, %v8348_v11  ;;  %v2451_v10 = vpop.f32.mrb[31].mxu0  ;;  %3602 = vmatmul.mubr.bf16.gmra.mrb[248].mxu1 %v3292_v37  ;;  %v3220_v26 = vmax.f32 %v5963_v62, 0.0  ;;  %5889 = vmatprep.subr.bf16.mxu0 %v6576_v45 }
 0x2d1   :  { %v5966_v34 = vadd.f32 %v2451_v10, %v8353_v25  ;;  %v3221_v54 = vmax.f32 %v5964_v57, 0.0  ;;  %5932 = vmatpush3.bf16.msra.mxu1 %v6576_v45  ;;  %5890 = vmatpush3.bf16.msra.mxu0 %v6576_v45 }
 0x2d2   :  { %v3223_v48 = vmax.f32 %v5965_v15, 0.0 }
 0x2d3   :  { %v3224_v44 = vmax.f32 %v5966_v34, 0.0 }
 0x2d4   :  { %v3295_v52 = vpack.c.bf16 %v3223_v48, %v3220_v26 }
 0x2d5   :  { %v3296_v30 = vpack.c.bf16 %v3224_v44, %v3221_v54  ;;  %v2455_v59 = vpop.f32.mrb[32].mxu0 }
 0x2d6   :  { %v5967_v5 = vadd.f32 %v2455_v59, %v8348_v11  ;;  %v2457_v31 = vpop.f32.mrb[33].mxu0 }
 0x2d7   :  { %v5968_v9 = vadd.f32 %v2457_v31, %v8353_v25  ;;  %v2459_v1 = vpop.f32.mrb[34].mxu0  ;;  %3609 = vmatprep.mubr.bf16.mxu1 %v3296_v30 }
 0x2d8   :  { %v5969_v12 = vadd.f32 %v2459_v1, %v8348_v11  ;;  %v2461_v6 = vpop.f32.mrb[35].mxu0  ;;  %3610 = vmatmul.mubr.bf16.gmra.mrb[252].mxu1 %v3295_v52  ;;  %v3226_v7 = vmax.f32 %v5967_v5, 0.0 }
 0x2d9   :  { %v5970_v39 = vadd.f32 %v2461_v6, %v8353_v25  ;;  %v3227_v63 = vmax.f32 %v5968_v9, 0.0 }
 0x2da   :  { %v3229_v58 = vmax.f32 %v5969_v12, 0.0 }
 0x2db   :  { %v3230_v55 = vmax.f32 %v5970_v39, 0.0 }
 0x2dc   :  { %v3298_v23 = vpack.c.bf16 %v3229_v58, %v3226_v7 }
 0x2dd   :  { %v3299_v46 = vpack.c.bf16 %v3230_v55, %v3227_v63  ;;  %v2465_v51 = vpop.f32.mrb[36].mxu0 }
 0x2de   :  { %v5971_v50 = vadd.f32 %v2465_v51, %v8348_v11  ;;  %v2467_v60 = vpop.f32.mrb[37].mxu0 }
 0x2df   :  { %v5972_v4 = vadd.f32 %v2467_v60, %v8353_v25  ;;  %v2469_v40 = vpop.f32.mrb[38].mxu0  ;;  %3617 = vmatprep.mubr.bf16.mxu1 %v3299_v46 }
 0x2e0   :  { %v5973_v18 = vadd.f32 %v2469_v40, %v8348_v11  ;;  %v2471_v2 = vpop.f32.mrb[39].mxu0  ;;  %3618 = vmatmul.mubr.bf16.gmra.mrb[0].mxu1 %v3298_v23  ;;  %v3232_v29 = vmax.f32 %v5971_v50, 0.0 }
 0x2e1   :  { %v5974_v35 = vadd.f32 %v2471_v2, %v8353_v25  ;;  %v3233_v20 = vmax.f32 %v5972_v4, 0.0  ;;  %v6577_v4 = vld [vmem:[%s9468_s5 + $0x10] sm:$0xff]  }
 0x2e2   :  { %v3235_v19 = vmax.f32 %v5973_v18, 0.0  ;;  %5891 = vmatprep.subr.bf16.mxu0 %v6577_v4  ;;  %5929 = vmatprep.subr.bf16.mxu1 %v6577_v4 }
 0x2e3   :  { %v3236_v47 = vmax.f32 %v5974_v35, 0.0  ;;  %5892 = vmatpush3.bf16.msra.mxu0 %v6577_v4  ;;  %5933 = vmatpush3.bf16.msra.mxu1 %v6577_v4 }
 0x2e4   :  { %v3301_v21 = vpack.c.bf16 %v3235_v19, %v3232_v29 }
 0x2e5   :  { %v3302_v42 = vpack.c.bf16 %v3236_v47, %v3233_v20  ;;  %v2475_v38 = vpop.f32.mrb[40].mxu0  ;;  %v6578_v20 = vld [vmem:[%s9468_s5 + $0x18] sm:$0xff]  }
 0x2e6   :  { %v5975_v53 = vadd.f32 %v2475_v38, %v8348_v11  ;;  %v2477_v14 = vpop.f32.mrb[41].mxu0  ;;  %5893 = vmatprep.subr.bf16.mxu0 %v6578_v20  ;;  %5930 = vmatprep.subr.bf16.mxu1 %v6578_v20 }
 0x2e7   :  { %v5976_v36 = vadd.f32 %v2477_v14, %v8353_v25  ;;  %v2479_v13 = vpop.f32.mrb[42].mxu0  ;;  %3625 = vmatprep.mubr.bf16.mxu1 %v3302_v42  ;;  %5894 = vmatpush3.bf16.msra.mxu0 %v6578_v20 }
 0x2e8   :  { %v5977_v0 = vadd.f32 %v2479_v13, %v8348_v11  ;;  %v2481_v33 = vpop.f32.mrb[43].mxu0  ;;  %3626 = vmatmul.mubr.bf16.gmra.mrb[4].mxu1 %v3301_v21  ;;  %v3238_v8 = vmax.f32 %v5975_v53, 0.0 }
 0x2e9   :  { %v5978_v17 = vadd.f32 %v2481_v33, %v8353_v25  ;;  %v3239_v24 = vmax.f32 %v5976_v36, 0.0  ;;  %5934 = vmatpush3.bf16.msra.mxu1 %v6578_v20 }
 0x2ea   :  { %v3241_v41 = vmax.f32 %v5977_v0, 0.0 }
 0x2eb   :  { %v3242_v28 = vmax.f32 %v5978_v17, 0.0 }
 0x2ec   :  { %v3304_v61 = vpack.c.bf16 %v3241_v41, %v3238_v8 }
 0x2ed   :  { %v3305_v56 = vpack.c.bf16 %v3242_v28, %v3239_v24  ;;  %v2485_v32 = vpop.f32.mrb[44].mxu0 }
 0x2ee   :  { %v5979_v43 = vadd.f32 %v2485_v32, %v8348_v11  ;;  %v2487_v49 = vpop.f32.mrb[45].mxu0 }
 0x2ef   :  { %v5980_v37 = vadd.f32 %v2487_v49, %v8353_v25  ;;  %v2489_v27 = vpop.f32.mrb[46].mxu0  ;;  %3633 = vmatprep.mubr.bf16.mxu1 %v3305_v56 }
 0x2f0   :  { %v5981_v62 = vadd.f32 %v2489_v27, %v8348_v11  ;;  %v2491_v3 = vpop.f32.mrb[47].mxu0  ;;  %3634 = vmatmul.mubr.bf16.gmra.mrb[8].mxu1 %v3304_v61  ;;  %v3244_v22 = vmax.f32 %v5979_v43, 0.0 }
 0x2f1   :  { %v5982_v57 = vadd.f32 %v2491_v3, %v8353_v25  ;;  %v3245_v10 = vmax.f32 %v5980_v37, 0.0 }
 0x2f2   :  { %v3247_v15 = vmax.f32 %v5981_v62, 0.0 }
 0x2f3   :  { %v3248_v34 = vmax.f32 %v5982_v57, 0.0 }
 0x2f4   :  { %v3307_v26 = vpack.c.bf16 %v3247_v15, %v3244_v22 }
 0x2f5   :  { %v3308_v48 = vpack.c.bf16 %v3248_v34, %v3245_v10  ;;  %v2495_v54 = vpop.f32.mrb[48].mxu0 }
 0x2f6   :  { %v5983_v44 = vadd.f32 %v2495_v54, %v8348_v11  ;;  %v2497_v52 = vpop.f32.mrb[49].mxu0 }
 0x2f7   :  { %v5984_v30 = vadd.f32 %v2497_v52, %v8353_v25  ;;  %v2499_v59 = vpop.f32.mrb[50].mxu0  ;;  %3641 = vmatprep.mubr.bf16.mxu1 %v3308_v48 }
 0x2f8   :  { %v5985_v5 = vadd.f32 %v2499_v59, %v8348_v11  ;;  %v2501_v31 = vpop.f32.mrb[51].mxu0  ;;  %3642 = vmatmul.mubr.bf16.gmra.mrb[12].mxu1 %v3307_v26  ;;  %v3250_v1 = vmax.f32 %v5983_v44, 0.0 }
 0x2f9   :  { %v5986_v9 = vadd.f32 %v2501_v31, %v8353_v25  ;;  %v3251_v6 = vmax.f32 %v5984_v30, 0.0 }
 0x2fa   :  { %v3253_v12 = vmax.f32 %v5985_v5, 0.0 }
 0x2fb   :  { %v3254_v39 = vmax.f32 %v5986_v9, 0.0 }
 0x2fc   :  { %v3310_v7 = vpack.c.bf16 %v3253_v12, %v3250_v1 }
 0x2fd   :  { %v3311_v58 = vpack.c.bf16 %v3254_v39, %v3251_v6  ;;  %v2505_v63 = vpop.f32.mrb[52].mxu0 }
 0x2fe   :  { %v5987_v55 = vadd.f32 %v2505_v63, %v8348_v11  ;;  %v2507_v23 = vpop.f32.mrb[53].mxu0 }
 0x2ff   :  { %v5988_v46 = vadd.f32 %v2507_v23, %v8353_v25  ;;  %v2509_v51 = vpop.f32.mrb[54].mxu0  ;;  %3649 = vmatprep.mubr.bf16.mxu1 %v3311_v58  ;;  %v8472_v58 = vld [vmem:[%s9467_s4] ss:$0 sm:$0xff] }
 0x300   :  { %v5989_v50 = vadd.f32 %v2509_v51, %v8348_v11  ;;  %v2511_v60 = vpop.f32.mrb[55].mxu0  ;;  %3650 = vmatmul.mubr.bf16.gmra.mrb[16].mxu1 %v3310_v7  ;;  %v3256_v18 = vmax.f32 %v5987_v55, 0.0 }
 0x301   :  { %v5990_v40 = vadd.f32 %v2511_v60, %v8353_v25  ;;  %v3257_v35 = vmax.f32 %v5988_v46, 0.0 }
 0x302   :  { %v3259_v2 = vmax.f32 %v5989_v50, 0.0 }
 0x303   :  { %v3260_v29 = vmax.f32 %v5990_v40, 0.0 }
 0x304   :  { %v3313_v19 = vpack.c.bf16 %v3259_v2, %v3256_v18 }
 0x305   :  { %v3314_v47 = vpack.c.bf16 %v3260_v29, %v3257_v35  ;;  %v2515_v21 = vpop.f32.mrb[56].mxu0 }
 0x306   :  { %v5991_v42 = vadd.f32 %v2515_v21, %v8348_v11  ;;  %v2517_v38 = vpop.f32.mrb[57].mxu0 }
 0x307   :  { %v5992_v53 = vadd.f32 %v2517_v38, %v8353_v25  ;;  %v2519_v14 = vpop.f32.mrb[58].mxu0  ;;  %3657 = vmatprep.mubr.bf16.mxu1 %v3314_v47 }
 0x308   :  { %v5993_v36 = vadd.f32 %v2519_v14, %v8348_v11  ;;  %v2521_v13 = vpop.f32.mrb[59].mxu0  ;;  %3658 = vmatmul.mubr.bf16.gmra.mrb[20].mxu1 %v3313_v19  ;;  %v3262_v33 = vmax.f32 %v5991_v42, 0.0 }
 0x309   :  { %v5994_v0 = vadd.f32 %v2521_v13, %v8353_v25  ;;  %v3263_v8 = vmax.f32 %v5992_v53, 0.0 }
 0x30a   :  { %v3265_v17 = vmax.f32 %v5993_v36, 0.0 }
 0x30b   :  { %v3266_v41 = vmax.f32 %v5994_v0, 0.0 }
 0x30c   :  { %v3316_v24 = vpack.c.bf16 %v3265_v17, %v3262_v33 }
 0x30d   :  { %v3317_v28 = vpack.c.bf16 %v3266_v41, %v3263_v8  ;;  %v2525_v61 = vpop.f32.mrb[60].mxu0 }
 0x30e   :  { %v5995_v56 = vadd.f32 %v2525_v61, %v8348_v11  ;;  %v2527_v32 = vpop.f32.mrb[61].mxu0 }
 0x30f   :  { %v5996_v43 = vadd.f32 %v2527_v32, %v8353_v25  ;;  %v2529_v49 = vpop.f32.mrb[62].mxu0  ;;  %3665 = vmatprep.mubr.bf16.mxu1 %v3317_v28 }
 0x310   :  { %v5997_v37 = vadd.f32 %v2529_v49, %v8348_v11  ;;  %v2531_v27 = vpop.f32.mrb[63].mxu0  ;;  %3666 = vmatmul.mubr.bf16.gmra.mrb[24].mxu1 %v3316_v24  ;;  %v3268_v62 = vmax.f32 %v5995_v56, 0.0 }
 0x311   :  { %v5998_v45 = vadd.f32 %v2531_v27, %v8353_v25  ;;  %v3269_v57 = vmax.f32 %v5996_v43, 0.0 }
 0x312   :  { %v3271_v3 = vmax.f32 %v5997_v37, 0.0 }
 0x313   :  { %v3272_v22 = vmax.f32 %v5998_v45, 0.0 }
 0x314   :  { %v3319_v15 = vpack.c.bf16 %v3271_v3, %v3268_v62 }
 0x315   :  { %v3320_v10 = vpack.c.bf16 %v3272_v22, %v3269_v57 }
 0x317   :  { %3673 = vmatprep.mubr.bf16.mxu1 %v3320_v10 }
 0x318   :  { %3674 = vmatmul.mubr.bf16.gmra.mrb[28].mxu1 %v3319_v15 }
 0x353   :  { %v5857_v34 = vpop.f32.mrb[64].mxu0 }
 0x354   :  { %v3716_v26 = vpop.f32.mrb[65].mxu0 }
 0x355   :  { %v5858_v48 = vpop.f32.mrb[66].mxu0 }
 0x356   :  { %v3719_v54 = vpop.f32.mrb[67].mxu0 }
 0x35b   :  { %v8447_v44 = vpop.f32.mrb[68].mxu0 }
 0x35c   :  { %v3732_v52 = vpop.f32.mrb[69].mxu0 }
 0x35d   :  { %v8449_v11 = vpop.f32.mrb[70].mxu0 }
 0x35e   :  { %v3735_v30 = vpop.f32.mrb[71].mxu0 }
 0x363   :  { %v8451_v59 = vpop.f32.mrb[72].mxu0 }
 0x364   :  { %v8453_v25 = vpop.f32.mrb[73].mxu0 }
 0x365   :  { %v8455_v5 = vpop.f32.mrb[74].mxu0 }
 0x366   :  { %v8457_v31 = vpop.f32.mrb[75].mxu0 }
 0x36b   :  { %v8459_v9 = vpop.f32.mrb[76].mxu0 }
 0x36c   :  { %v8461_v1 = vpop.f32.mrb[77].mxu0 }
 0x36d   :  { %v8463_v12 = vpop.f32.mrb[78].mxu0 }
 0x36e   :  { %v8465_v6 = vpop.f32.mrb[79].mxu0 }
 0x373   :  { %v5665_v39 = vpop.f32.mrb[224].mxu1  ;;  %v8467_v7 = vpop.f32.mrb[80].mxu0 }
 0x374   :  { %v5666_v63 = vpop.f32.mrb[225].mxu1  ;;  %v8474_v23 = vpop.f32.mrb[81].mxu0 }
 0x375   :  { %v5667_v55 = vadd.f32 %v5666_v63, %v5665_v39  ;;  %v5668_v46 = vpop.f32.mrb[226].mxu1  ;;  %v8476_v51 = vpop.f32.mrb[82].mxu0 }
 0x376   :  { %v5669_v50 = vpop.f32.mrb[227].mxu1  ;;  %v8479_v40 = vpop.f32.mrb[83].mxu0 }
 0x377   :  { %v3556_v60 = vadd.f32 %v5667_v55, %v8472_v58  ;;  %v5670_v4 = vadd.f32 %v5669_v50, %v5668_v46 }
 0x379   :  { %v3717_v18 = vadd.f32 %v3716_v26, %v3556_v60  ;;  %v3559_v2 = vadd.f32 %v5670_v4, %v8472_v58 }
 0x37b   :  { %v3720_v35 = vadd.f32 %v3719_v54, %v3559_v2  ;;  %v5671_v29 = vpop.f32.mrb[228].mxu1  ;;  %v8482_v19 = vpop.f32.mrb[84].mxu0  ;;  %v3843_v47 = vmax.f32 %v3717_v18, 0.0 }
 0x37c   :  { %v5672_v20 = vpop.f32.mrb[229].mxu1  ;;  %v8484_v38 = vpop.f32.mrb[85].mxu0 }
 0x37d   :  { %v3844_v21 = vmax.f32 %v3720_v35, 0.0  ;;  %v5673_v42 = vadd.f32 %v5672_v20, %v5671_v29  ;;  %v5674_v53 = vpop.f32.mrb[230].mxu1  ;;  %v8486_v14 = vpop.f32.mrb[86].mxu0 }
 0x37e   :  { %v5675_v36 = vpop.f32.mrb[231].mxu1  ;;  %v8489_v17 = vpop.f32.mrb[87].mxu0 }
 0x37f   :  { %v3875_v13 = vpack.c.bf16 %v3844_v21, %v3843_v47  ;;  %v3564_v0 = vadd.f32 %v5673_v42, %v8472_v58  ;;  %v5676_v33 = vadd.f32 %v5675_v36, %v5674_v53 }
 0x381   :  { %v3725_v8 = vadd.f32 %v5857_v34, %v3564_v0  ;;  %v3567_v41 = vadd.f32 %v5676_v33, %v8472_v58  ;;  %5895 = vmatprep.mubr.msk.bf16.mxu0 %vm3930_vm1, %v3875_v13 }
 0x383   :  { %v3728_v24 = vadd.f32 %v5858_v48, %v3567_v41  ;;  %v5677_v28 = vpop.f32.mrb[232].mxu1  ;;  %v8493_v61 = vpop.f32.mrb[88].mxu0  ;;  %v3845_v32 = vmax.f32 %v3725_v8, 0.0 }
 0x384   :  { %v5678_v56 = vpop.f32.mrb[233].mxu1  ;;  %v8495_v37 = vpop.f32.mrb[89].mxu0 }
 0x385   :  { %v3846_v43 = vmax.f32 %v3728_v24, 0.0  ;;  %v5679_v49 = vadd.f32 %v5678_v56, %v5677_v28  ;;  %v5680_v27 = vpop.f32.mrb[234].mxu1  ;;  %v8497_v45 = vpop.f32.mrb[90].mxu0 }
 0x386   :  { %v5681_v62 = vpop.f32.mrb[235].mxu1  ;;  %v8500_v15 = vpop.f32.mrb[91].mxu0 }
 0x387   :  { %v3876_v3 = vpack.c.bf16 %v3846_v43, %v3845_v32  ;;  %v3572_v57 = vadd.f32 %v5679_v49, %v8472_v58  ;;  %v5682_v22 = vadd.f32 %v5681_v62, %v5680_v27 }
 0x389   :  { %v3733_v10 = vadd.f32 %v3732_v52, %v3572_v57  ;;  %v3575_v34 = vadd.f32 %v5682_v22, %v8472_v58  ;;  %5896 = vmatmul.mubr.msk.bf16.vlgmr.msra.gmra.mrb[96].mxu0 %vm3930_vm1, %v3876_v3 }
 0x38b   :  { %v3736_v26 = vadd.f32 %v3735_v30, %v3575_v34  ;;  %v5683_v48 = vpop.f32.mrb[236].mxu1  ;;  %v8504_v54 = vpop.f32.mrb[92].mxu0  ;;  %v3847_v63 = vmax.f32 %v3733_v10, 0.0 }
 0x38c   :  { %v5684_v39 = vpop.f32.mrb[237].mxu1  ;;  %v8506_v50 = vpop.f32.mrb[93].mxu0 }
 0x38d   :  { %v3848_v55 = vmax.f32 %v3736_v26, 0.0  ;;  %v5685_v46 = vadd.f32 %v5684_v39, %v5683_v48  ;;  %v5686_v60 = vpop.f32.mrb[238].mxu1  ;;  %v8508_v4 = vpop.f32.mrb[94].mxu0 }
 0x38e   :  { %v5687_v18 = vpop.f32.mrb[239].mxu1  ;;  %v8511_v29 = vpop.f32.mrb[95].mxu0 }
 0x38f   :  { %v3877_v2 = vpack.c.bf16 %v3848_v55, %v3847_v63  ;;  %v3580_v52 = vadd.f32 %v5685_v46, %v8472_v58  ;;  %v5688_v35 = vadd.f32 %v5687_v18, %v5686_v60 }
 0x391   :  { %v3741_v30 = vadd.f32 %v8447_v44, %v3580_v52  ;;  %v3583_v20 = vadd.f32 %v5688_v35, %v8472_v58  ;;  %5899 = vmatprep.mubr.msk.bf16.mxu0 %vm3930_vm1, %v3877_v2 }
 0x393   :  { %v3744_v47 = vadd.f32 %v8449_v11, %v3583_v20  ;;  %v5689_v21 = vpop.f32.mrb[240].mxu1  ;;  %v3849_v53 = vmax.f32 %v3741_v30, 0.0 }
 0x394   :  { %v5690_v42 = vpop.f32.mrb[241].mxu1 }
 0x395   :  { %v3850_v36 = vmax.f32 %v3744_v47, 0.0  ;;  %v5691_v13 = vadd.f32 %v5690_v42, %v5689_v21  ;;  %v5692_v0 = vpop.f32.mrb[242].mxu1 }
 0x396   :  { %v5693_v33 = vpop.f32.mrb[243].mxu1 }
 0x397   :  { %v3878_v8 = vpack.c.bf16 %v3850_v36, %v3849_v53  ;;  %v3588_v41 = vadd.f32 %v5691_v13, %v8472_v58  ;;  %v5694_v24 = vadd.f32 %v5693_v33, %v5692_v0 }
 0x399   :  { %v3749_v28 = vadd.f32 %v8453_v25, %v3588_v41  ;;  %v3591_v44 = vadd.f32 %v5694_v24, %v8472_v58  ;;  %5900 = vmatmul.mubr.msk.bf16.gmra.mrb[100].mxu0 %vm3930_vm1, %v3878_v8 }
 0x39b   :  { %v3752_v56 = vadd.f32 %v8457_v31, %v3591_v44  ;;  %v5695_v11 = vpop.f32.mrb[244].mxu1  ;;  %v3851_v43 = vmax.f32 %v3749_v28, 0.0 }
 0x39c   :  { %v5696_v32 = vpop.f32.mrb[245].mxu1 }
 0x39d   :  { %v3852_v49 = vmax.f32 %v3752_v56, 0.0  ;;  %v5697_v27 = vadd.f32 %v5696_v32, %v5695_v11  ;;  %v5698_v62 = vpop.f32.mrb[246].mxu1 }
 0x39e   :  { %v5699_v3 = vpop.f32.mrb[247].mxu1 }
 0x39f   :  { %v3879_v57 = vpack.c.bf16 %v3852_v49, %v3851_v43  ;;  %v3596_v22 = vadd.f32 %v5697_v27, %v8472_v58  ;;  %v5700_v10 = vadd.f32 %v5699_v3, %v5698_v62 }
 0x3a1   :  { %v3757_v34 = vadd.f32 %v8451_v59, %v3596_v22  ;;  %v3599_v25 = vadd.f32 %v5700_v10, %v8472_v58  ;;  %5903 = vmatprep.mubr.msk.bf16.mxu1 %vm3930_vm1, %v3879_v57 }
 0x3a3   :  { %v3760_v26 = vadd.f32 %v8455_v5, %v3599_v25  ;;  %v5701_v31 = vpop.f32.mrb[248].mxu1  ;;  %v3853_v39 = vmax.f32 %v3757_v34, 0.0 }
 0x3a4   :  { %v5702_v48 = vpop.f32.mrb[249].mxu1 }
 0x3a5   :  { %v3854_v63 = vmax.f32 %v3760_v26, 0.0  ;;  %v5703_v55 = vadd.f32 %v5702_v48, %v5701_v31  ;;  %v5704_v46 = vpop.f32.mrb[250].mxu1 }
 0x3a6   :  { %v5705_v60 = vpop.f32.mrb[251].mxu1 }
 0x3a7   :  { %v3880_v18 = vpack.c.bf16 %v3854_v63, %v3853_v39  ;;  %v3604_v2 = vadd.f32 %v5703_v55, %v8472_v58  ;;  %v5706_v52 = vadd.f32 %v5705_v60, %v5704_v46 }
 0x3a9   :  { %v3765_v35 = vadd.f32 %v8461_v1, %v3604_v2  ;;  %v3607_v59 = vadd.f32 %v5706_v52, %v8472_v58  ;;  %5904 = vmatmul.mubr.msk.bf16.vlgmr.msra.gmra.mrb[32].mxu1 %vm3930_vm1, %v3880_v18 }
 0x3ab   :  { %v3768_v30 = vadd.f32 %v8465_v6, %v3607_v59  ;;  %v5707_v5 = vpop.f32.mrb[252].mxu1  ;;  %v3855_v47 = vmax.f32 %v3765_v35, 0.0 }
 0x3ac   :  { %v5708_v20 = vpop.f32.mrb[253].mxu1 }
 0x3ad   :  { %v3856_v21 = vmax.f32 %v3768_v30, 0.0  ;;  %v5709_v42 = vadd.f32 %v5708_v20, %v5707_v5  ;;  %v5710_v53 = vpop.f32.mrb[254].mxu1 }
 0x3ae   :  { %v5711_v36 = vpop.f32.mrb[255].mxu1 }
 0x3af   :  { %v3881_v13 = vpack.c.bf16 %v3856_v21, %v3855_v47  ;;  %v3612_v0 = vadd.f32 %v5709_v42, %v8472_v58  ;;  %v5712_v33 = vadd.f32 %v5711_v36, %v5710_v53 }
 0x3b1   :  { %v3773_v8 = vadd.f32 %v8459_v9, %v3612_v0  ;;  %v3615_v1 = vadd.f32 %v5712_v33, %v8472_v58  ;;  %5907 = vmatprep.mubr.msk.bf16.mxu1 %vm3930_vm1, %v3881_v13 }
 0x3b3   :  { %v3776_v41 = vadd.f32 %v8463_v12, %v3615_v1  ;;  %v5713_v6 = vpop.f32.mrb[0].mxu1  ;;  %v3857_v28 = vmax.f32 %v3773_v8, 0.0 }
 0x3b4   :  { %v5714_v24 = vpop.f32.mrb[1].mxu1 }
 0x3b5   :  { %v3858_v44 = vmax.f32 %v3776_v41, 0.0  ;;  %v5715_v56 = vadd.f32 %v5714_v24, %v5713_v6  ;;  %v5716_v11 = vpop.f32.mrb[2].mxu1 }
 0x3b6   :  { %v5717_v32 = vpop.f32.mrb[3].mxu1 }
 0x3b7   :  { %v3882_v43 = vpack.c.bf16 %v3858_v44, %v3857_v28  ;;  %v3620_v49 = vadd.f32 %v5715_v56, %v8472_v58  ;;  %v5718_v27 = vadd.f32 %v5717_v32, %v5716_v11 }
 0x3b9   :  { %v3781_v62 = vadd.f32 %v8474_v23, %v3620_v49  ;;  %v3623_v9 = vadd.f32 %v5718_v27, %v8472_v58  ;;  %5908 = vmatmul.mubr.msk.bf16.gmra.mrb[36].mxu1 %vm3930_vm1, %v3882_v43 }
 0x3bb   :  { %v3784_v3 = vadd.f32 %v8479_v40, %v3623_v9  ;;  %v5719_v12 = vpop.f32.mrb[4].mxu1  ;;  %v3859_v22 = vmax.f32 %v3781_v62, 0.0 }
 0x3bc   :  { %v5720_v57 = vpop.f32.mrb[5].mxu1 }
 0x3bd   :  { %v3860_v10 = vmax.f32 %v3784_v3, 0.0  ;;  %v5721_v34 = vadd.f32 %v5720_v57, %v5719_v12  ;;  %v5722_v25 = vpop.f32.mrb[6].mxu1 }
 0x3be   :  { %v5723_v26 = vpop.f32.mrb[7].mxu1 }
 0x3bf   :  { %v3883_v31 = vpack.c.bf16 %v3860_v10, %v3859_v22  ;;  %v3628_v48 = vadd.f32 %v5721_v34, %v8472_v58  ;;  %v5724_v39 = vadd.f32 %v5723_v26, %v5722_v25 }
 0x3c1   :  { %v3789_v63 = vadd.f32 %v8467_v7, %v3628_v48  ;;  %v3631_v23 = vadd.f32 %v5724_v39, %v8472_v58  ;;  %5911 = vmatprep.mubr.msk.bf16.mxu1 %vm3930_vm1, %v3883_v31 }
 0x3c3   :  { %v3792_v55 = vadd.f32 %v8476_v51, %v3631_v23  ;;  %v5725_v40 = vpop.f32.mrb[8].mxu1  ;;  %v3861_v60 = vmax.f32 %v3789_v63, 0.0 }
 0x3c4   :  { %v5726_v46 = vpop.f32.mrb[9].mxu1 }
 0x3c5   :  { %v3862_v18 = vmax.f32 %v3792_v55, 0.0  ;;  %v5727_v2 = vadd.f32 %v5726_v46, %v5725_v40  ;;  %v5728_v52 = vpop.f32.mrb[10].mxu1 }
 0x3c6   :  { %v5729_v35 = vpop.f32.mrb[11].mxu1 }
 0x3c7   :  { %v3884_v59 = vpack.c.bf16 %v3862_v18, %v3861_v60  ;;  %v3636_v30 = vadd.f32 %v5727_v2, %v8472_v58  ;;  %v5730_v5 = vadd.f32 %v5729_v35, %v5728_v52 }
 0x3c9   :  { %v3797_v20 = vadd.f32 %v8484_v38, %v3636_v30  ;;  %v3639_v7 = vadd.f32 %v5730_v5, %v8472_v58  ;;  %5912 = vmatmul.mubr.msk.bf16.gmra.mrb[40].mxu1 %vm3930_vm1, %v3884_v59 }
 0x3cb   :  { %v3800_v47 = vadd.f32 %v8489_v17, %v3639_v7  ;;  %v5731_v51 = vpop.f32.mrb[12].mxu1  ;;  %v3863_v42 = vmax.f32 %v3797_v20, 0.0 }
 0x3cc   :  { %v5732_v21 = vpop.f32.mrb[13].mxu1 }
 0x3cd   :  { %v3864_v53 = vmax.f32 %v3800_v47, 0.0  ;;  %v5733_v36 = vadd.f32 %v5732_v21, %v5731_v51  ;;  %v5734_v13 = vpop.f32.mrb[14].mxu1 }
 0x3ce   :  { %v5735_v0 = vpop.f32.mrb[15].mxu1 }
 0x3cf   :  { %v3885_v33 = vpack.c.bf16 %v3864_v53, %v3863_v42  ;;  %v3644_v8 = vadd.f32 %v5733_v36, %v8472_v58  ;;  %v5736_v1 = vadd.f32 %v5735_v0, %v5734_v13 }
 0x3d1   :  { %v3805_v41 = vadd.f32 %v8482_v19, %v3644_v8  ;;  %v3647_v38 = vadd.f32 %v5736_v1, %v8472_v58  ;;  %5915 = vmatprep.mubr.msk.bf16.mxu1 %vm3930_vm1, %v3885_v33  ;;  %v8579_v8 = vand.u32 127, %v354_v16  ;;  %v8584_v1 = vld [vmem:[%s9469_s6] ss:$0 sm:$0xff]  ;;  %s6861_s6 = smov [#allocation2]  }
 0x3d2   :  { %s4948_s18 = sshll.u32 %s6861_s6, 4  ;;  %s4949_s18 = int_to_ptr.vmem [resolvable:$true] %s4948_s18 }
 0x3d3   :  { %v3808_v6 = vadd.f32 %v8486_v14, %v3647_v38  ;;  %v5737_v17 = vpop.f32.mrb[16].mxu1  ;;  %v3865_v28 = vmax.f32 %v3805_v41, 0.0  ;;  %vm4174_vm2 = vcmp.lt.s32.totalorder %v8579_v8, 10  ;;  %s6836_s19 = scalar_lea.vmem %s4949_s18, 4096  ;;  %p6841_p1 = scmp.lt.s32.totalorder %s4949_s18, %s4949_s18 }
 0x3d4   :  { %v5738_v24 = vpop.f32.mrb[17].mxu1  ;;  %p6837_p0 = scmp.ne.s32.totalorder %s4949_s18, %s6836_s19  ;;  %p6842_p2 = scmp.lt.s32.totalorder %s6836_s19, %s6836_s19 }
 0x3d5   :  { %v3866_v44 = vmax.f32 %v3808_v6, 0.0  ;;  %v5739_v56 = vadd.f32 %v5738_v24, %v5737_v17  ;;  %v5740_v11 = vpop.f32.mrb[18].mxu1 }
 0x3d6   :  { %v5741_v32 = vpop.f32.mrb[19].mxu1  ;;  %p6843_p3 = por %p6842_p2, %p6841_p1 }
 0x3d7   :  { %v3886_v43 = vpack.c.bf16 %v3866_v44, %v3865_v28  ;;  %v3652_v49 = vadd.f32 %v5739_v56, %v8472_v58  ;;  %v5742_v27 = vadd.f32 %v5741_v32, %v5740_v11 }
 0x3d8   :  { %p6844_p4 = pnand %p6843_p3, %p6837_p0 }
 0x3d9   :  { %v3813_v62 = vadd.f32 %v8495_v37, %v3652_v49  ;;  %v3655_v19 = vadd.f32 %v5742_v27, %v8472_v58  ;;  %5916 = vmatmul.mubr.msk.bf16.gmra.mrb[44].mxu1 %vm3930_vm1, %v3886_v43 }
 0x3db   :  { %v3816_v9 = vadd.f32 %v8500_v15, %v3655_v19  ;;  %v5743_v14 = vpop.f32.mrb[20].mxu1  ;;  %v3867_v12 = vmax.f32 %v3813_v62, 0.0 }
 0x3dc   :  { %v5744_v3 = vpop.f32.mrb[21].mxu1 }
 0x3dd   :  { %v3868_v57 = vmax.f32 %v3816_v9, 0.0  ;;  %v5745_v22 = vadd.f32 %v5744_v3, %v5743_v14  ;;  %v5746_v10 = vpop.f32.mrb[22].mxu1 }
 0x3de   :  { %v5747_v34 = vpop.f32.mrb[23].mxu1 }
 0x3df   :  { %v3887_v25 = vpack.c.bf16 %v3868_v57, %v3867_v12  ;;  %v3660_v26 = vadd.f32 %v5745_v22, %v8472_v58  ;;  %v5748_v31 = vadd.f32 %v5747_v34, %v5746_v10 }
 0x3e1   :  { %v3821_v48 = vadd.f32 %v8493_v61, %v3660_v26  ;;  %v3663_v37 = vadd.f32 %v5748_v31, %v8472_v58  ;;  %5919 = vmatprep.mubr.msk.bf16.mxu1 %vm3930_vm1, %v3887_v25 }
 0x3e3   :  { %v3824_v39 = vadd.f32 %v8497_v45, %v3663_v37  ;;  %v5749_v15 = vpop.f32.mrb[24].mxu1  ;;  %v3869_v23 = vmax.f32 %v3821_v48, 0.0 }
 0x3e4   :  { %v5750_v63 = vpop.f32.mrb[25].mxu1 }
 0x3e5   :  { %v3870_v55 = vmax.f32 %v3824_v39, 0.0  ;;  %v5751_v40 = vadd.f32 %v5750_v63, %v5749_v15  ;;  %v5752_v46 = vpop.f32.mrb[26].mxu1 }
 0x3e6   :  { %v5753_v60 = vpop.f32.mrb[27].mxu1 }
 0x3e7   :  { %v3888_v18 = vpack.c.bf16 %v3870_v55, %v3869_v23  ;;  %v3668_v2 = vadd.f32 %v5751_v40, %v8472_v58  ;;  %v5754_v52 = vadd.f32 %v5753_v60, %v5752_v46 }
 0x3e9   :  { %v3829_v35 = vadd.f32 %v8506_v50, %v3668_v2  ;;  %v3671_v61 = vadd.f32 %v5754_v52, %v8472_v58  ;;  %5920 = vmatmul.mubr.msk.bf16.gmra.mrb[48].mxu1 %vm3930_vm1, %v3888_v18 }
 0x3eb   :  { %v3832_v59 = vadd.f32 %v8511_v29, %v3671_v61  ;;  %v5755_v45 = vpop.f32.mrb[28].mxu1  ;;  %v3871_v5 = vmax.f32 %v3829_v35, 0.0 }
 0x3ec   :  { %v5756_v30 = vpop.f32.mrb[29].mxu1 }
 0x3ed   :  { %v3872_v20 = vmax.f32 %v3832_v59, 0.0  ;;  %v5757_v7 = vadd.f32 %v5756_v30, %v5755_v45  ;;  %v5758_v47 = vpop.f32.mrb[30].mxu1 }
 0x3ee   :  { %v5759_v51 = vpop.f32.mrb[31].mxu1 }
 0x3ef   :  { %v3889_v21 = vpack.c.bf16 %v3872_v20, %v3871_v5  ;;  %v3676_v42 = vadd.f32 %v5757_v7, %v8472_v58  ;;  %v5760_v53 = vadd.f32 %v5759_v51, %v5758_v47 }
 0x3f1   :  { %v3837_v36 = vadd.f32 %v8504_v54, %v3676_v42  ;;  %v3679_v50 = vadd.f32 %v5760_v53, %v8472_v58  ;;  %5923 = vmatprep.mubr.msk.bf16.mxu1 %vm3930_vm1, %v3889_v21 }
 0x3f3   :  { %v3840_v13 = vadd.f32 %v8508_v4, %v3679_v50  ;;  %v3873_v29 = vmax.f32 %v3837_v36, 0.0 }
 0x3f5   :  { %v3874_v0 = vmax.f32 %v3840_v13, 0.0 }
 0x3f7   :  { %v3890_v33 = vpack.c.bf16 %v3874_v0, %v3873_v29 }
 0x3f9   :  { %5924 = vmatmul.mubr.msk.bf16.gmra.mrb[52].mxu1 %vm3930_vm1, %v3890_v33 }
 0x45c   :  { %v5897_v54 = vpop.f32.mrb[96].mxu0 }
 0x45d   :  { %v4022_v58 = vadd.f32 %v5897_v54, %v8584_v1  ;;  %v4013_v41 = vpop.f32.mrb[97].mxu0 }
 0x45e   :  { %v4014_v4 = vadd.f32 %v8584_v1, %v4013_v41  ;;  %v5898_v38 = vpop.f32.mrb[98].mxu0 }
 0x45f   :  { %v4142_v6 = vmax.f32 %v4022_v58, 0.0  ;;  %v4025_v17 = vadd.f32 %v5898_v38, %v8584_v1  ;;  %v4016_v24 = vpop.f32.mrb[99].mxu0 }
 0x460   :  { %v4140_v16 = vmax.f32 %v4014_v4, 0.0  ;;  %v4017_v28 = vadd.f32 %v8584_v1, %v4016_v24 }
 0x461   :  { %v4143_v44 = vmax.f32 %v4025_v17, 0.0  ;;  %v8593_v56 = vsel %vm4174_vm2, %v4142_v6, -inf }
 0x462   :  { %v4141_v11 = vmax.f32 %v4017_v28, 0.0  ;;  %4211 = vmax.xlane.f32.xlu1 %v8593_v56  ;;  %v8598_v32 = vsel %vm4174_vm2, %v4140_v16, -inf }
 0x463   :  { %4207 = vmax.xlane.f32.xlu0 %v8598_v32  ;;  %v8603_v43 = vsel %vm4174_vm2, %v4143_v44, -inf }
 0x464   :  { %v8608_v49 = vsel %vm4174_vm2, %v4141_v11, -inf }
 0x466   :  { %4213 = vmax.xlane.f32.xlu1 %v8603_v43 }
 0x467   :  { %4209 = vmax.xlane.f32.xlu0 %v8608_v49 }
 0x46c   :  { %v5901_v27 = vpop.f32.mrb[100].mxu0 }
 0x46d   :  { %v4038_v62 = vadd.f32 %v5901_v27, %v8584_v1  ;;  %v4029_v19 = vpop.f32.mrb[101].mxu0 }
 0x46e   :  { %v4030_v9 = vadd.f32 %v8584_v1, %v4029_v19  ;;  %v5902_v14 = vpop.f32.mrb[102].mxu0 }
 0x46f   :  { %v4146_v3 = vmax.f32 %v4038_v62, 0.0  ;;  %v4041_v12 = vadd.f32 %v5902_v14, %v8584_v1  ;;  %v4032_v57 = vpop.f32.mrb[103].mxu0 }
 0x470   :  { %v4033_v22 = vadd.f32 %v8584_v1, %v4032_v57  ;;  %v4144_v10 = vmax.f32 %v4030_v9, 0.0 }
 0x471   :  { %v4147_v34 = vmax.f32 %v4041_v12, 0.0  ;;  %v8617_v25 = vsel %vm4174_vm2, %v4146_v3, -inf }
 0x472   :  { %4219 = vmax.xlane.f32.xlu0 %v8617_v25  ;;  %v4145_v26 = vmax.f32 %v4033_v22, 0.0  ;;  %v8627_v48 = vsel %vm4174_vm2, %v4144_v10, -inf }
 0x473   :  { %v8622_v31 = vsel %vm4174_vm2, %v4147_v34, -inf }
 0x474   :  { %4221 = vmax.xlane.f32.xlu1 %v8622_v31  ;;  %v8632_v37 = vsel %vm4174_vm2, %v4145_v26, -inf }
 0x476   :  { %4215 = vmax.xlane.f32.xlu0 %v8627_v48 }
 0x478   :  { %4217 = vmax.xlane.f32.xlu1 %v8632_v37 }
 0x47c   :  { %v5905_v39 = vpop.f32.mrb[32].mxu1 }
 0x47d   :  { %v4054_v15 = vadd.f32 %v5905_v39, %v8584_v1  ;;  %v4045_v63 = vpop.f32.mrb[33].mxu1 }
 0x47e   :  { %v4046_v23 = vadd.f32 %v8584_v1, %v4045_v63  ;;  %v5906_v55 = vpop.f32.mrb[34].mxu1 }
 0x47f   :  { %v4150_v40 = vmax.f32 %v4054_v15, 0.0  ;;  %v4057_v46 = vadd.f32 %v5906_v55, %v8584_v1  ;;  %v4048_v60 = vpop.f32.mrb[35].mxu1 }
 0x480   :  { %v4049_v18 = vadd.f32 %v8584_v1, %v4048_v60  ;;  %v4148_v2 = vmax.f32 %v4046_v23, 0.0 }
 0x481   :  { %v4151_v52 = vmax.f32 %v4057_v46, 0.0  ;;  %v8641_v35 = vsel %vm4174_vm2, %v4150_v40, -inf }
 0x482   :  { %4227 = vmax.xlane.f32.xlu0 %v8641_v35  ;;  %v4149_v61 = vmax.f32 %v4049_v18, 0.0  ;;  %v8651_v45 = vsel %vm4174_vm2, %v4148_v2, -inf }
 0x483   :  { %v8646_v59 = vsel %vm4174_vm2, %v4151_v52, -inf }
 0x484   :  { %4229 = vmax.xlane.f32.xlu1 %v8646_v59  ;;  %v8656_v30 = vsel %vm4174_vm2, %v4149_v61, -inf }
 0x486   :  { %4223 = vmax.xlane.f32.xlu0 %v8651_v45 }
 0x488   :  { %4225 = vmax.xlane.f32.xlu1 %v8656_v30 }
 0x48c   :  { %v5909_v5 = vpop.f32.mrb[36].mxu1 }
 0x48d   :  { %v4070_v20 = vadd.f32 %v5909_v5, %v8584_v1  ;;  %v4061_v7 = vpop.f32.mrb[37].mxu1 }
 0x48e   :  { %v4062_v47 = vadd.f32 %v8584_v1, %v4061_v7  ;;  %v5910_v51 = vpop.f32.mrb[38].mxu1 }
 0x48f   :  { %v4154_v21 = vmax.f32 %v4070_v20, 0.0  ;;  %v4073_v42 = vadd.f32 %v5910_v51, %v8584_v1  ;;  %v4064_v53 = vpop.f32.mrb[39].mxu1 }
 0x490   :  { %v4065_v36 = vadd.f32 %v8584_v1, %v4064_v53  ;;  %v4152_v50 = vmax.f32 %v4062_v47, 0.0 }
 0x491   :  { %v4155_v13 = vmax.f32 %v4073_v42, 0.0  ;;  %v8665_v29 = vsel %vm4174_vm2, %v4154_v21, -inf }
 0x492   :  { %4235 = vmax.xlane.f32.xlu0 %v8665_v29  ;;  %v4153_v0 = vmax.f32 %v4065_v36, 0.0  ;;  %v8675_v54 = vsel %vm4174_vm2, %v4152_v50, -inf }
 0x493   :  { %v8670_v33 = vsel %vm4174_vm2, %v4155_v13, -inf }
 0x494   :  { %4237 = vmax.xlane.f32.xlu1 %v8670_v33  ;;  %v8680_v58 = vsel %vm4174_vm2, %v4153_v0, -inf }
 0x496   :  { %4231 = vmax.xlane.f32.xlu0 %v8675_v54 }
 0x498   :  { %4233 = vmax.xlane.f32.xlu1 %v8680_v58 }
 0x49c   :  { %v5913_v41 = vpop.f32.mrb[40].mxu1 }
 0x49d   :  { %v4086_v4 = vadd.f32 %v5913_v41, %v8584_v1  ;;  %v4077_v38 = vpop.f32.mrb[41].mxu1 }
 0x49e   :  { %v4078_v6 = vadd.f32 %v8584_v1, %v4077_v38  ;;  %v5914_v17 = vpop.f32.mrb[42].mxu1 }
 0x49f   :  { %v4158_v24 = vmax.f32 %v4086_v4, 0.0  ;;  %v4089_v16 = vadd.f32 %v5914_v17, %v8584_v1  ;;  %v4080_v28 = vpop.f32.mrb[43].mxu1 }
 0x4a0   :  { %v4081_v44 = vadd.f32 %v8584_v1, %v4080_v28  ;;  %v4156_v11 = vmax.f32 %v4078_v6, 0.0 }
 0x4a1   :  { %v4159_v27 = vmax.f32 %v4089_v16, 0.0  ;;  %v8689_v62 = vsel %vm4174_vm2, %v4158_v24, -inf }
 0x4a2   :  { %4243 = vmax.xlane.f32.xlu0 %v8689_v62  ;;  %v4157_v19 = vmax.f32 %v4081_v44, 0.0  ;;  %v8699_v14 = vsel %vm4174_vm2, %v4156_v11, -inf }
 0x4a3   :  { %v8694_v9 = vsel %vm4174_vm2, %v4159_v27, -inf }
 0x4a4   :  { %4245 = vmax.xlane.f32.xlu1 %v8694_v9  ;;  %v8704_v3 = vsel %vm4174_vm2, %v4157_v19, -inf }
 0x4a6   :  { %4239 = vmax.xlane.f32.xlu0 %v8699_v14 }
 0x4a8   :  { %4241 = vmax.xlane.f32.xlu1 %v8704_v3 }
 0x4ac   :  { %v5917_v12 = vpop.f32.mrb[44].mxu1 }
 0x4ad   :  { %v4102_v57 = vadd.f32 %v5917_v12, %v8584_v1  ;;  %v4093_v22 = vpop.f32.mrb[45].mxu1 }
 0x4ae   :  { %v4094_v10 = vadd.f32 %v8584_v1, %v4093_v22  ;;  %v5918_v34 = vpop.f32.mrb[46].mxu1 }
 0x4af   :  { %v4162_v26 = vmax.f32 %v4102_v57, 0.0  ;;  %v4105_v39 = vadd.f32 %v5918_v34, %v8584_v1  ;;  %v4096_v15 = vpop.f32.mrb[47].mxu1 }
 0x4b0   :  { %v4097_v63 = vadd.f32 %v8584_v1, %v4096_v15  ;;  %v4160_v23 = vmax.f32 %v4094_v10, 0.0 }
 0x4b1   :  { %v4163_v55 = vmax.f32 %v4105_v39, 0.0  ;;  %v8713_v40 = vsel %vm4174_vm2, %v4162_v26, -inf }
 0x4b2   :  { %4251 = vmax.xlane.f32.xlu0 %v8713_v40  ;;  %v4161_v46 = vmax.f32 %v4097_v63, 0.0  ;;  %v8723_v18 = vsel %vm4174_vm2, %v4160_v23, -inf }
 0x4b3   :  { %v8718_v60 = vsel %vm4174_vm2, %v4163_v55, -inf }
 0x4b4   :  { %4253 = vmax.xlane.f32.xlu1 %v8718_v60  ;;  %v8728_v2 = vsel %vm4174_vm2, %v4161_v46, -inf }
 0x4b6   :  { %4247 = vmax.xlane.f32.xlu0 %v8723_v18 }
 0x4b8   :  { %4249 = vmax.xlane.f32.xlu1 %v8728_v2 }
 0x4bc   :  { %v5921_v52 = vpop.f32.mrb[48].mxu1 }
 0x4bd   :  { %v4118_v61 = vadd.f32 %v5921_v52, %v8584_v1  ;;  %v4109_v5 = vpop.f32.mrb[49].mxu1 }
 0x4be   :  { %v4110_v20 = vadd.f32 %v8584_v1, %v4109_v5  ;;  %v5922_v7 = vpop.f32.mrb[50].mxu1 }
 0x4bf   :  { %v4166_v47 = vmax.f32 %v4118_v61, 0.0  ;;  %v4121_v51 = vadd.f32 %v5922_v7, %v8584_v1  ;;  %v4112_v21 = vpop.f32.mrb[51].mxu1 }
 0x4c0   :  { %v4113_v42 = vadd.f32 %v8584_v1, %v4112_v21  ;;  %v4164_v53 = vmax.f32 %v4110_v20, 0.0 }
 0x4c1   :  { %v4167_v36 = vmax.f32 %v4121_v51, 0.0  ;;  %v8737_v50 = vsel %vm4174_vm2, %v4166_v47, -inf }
 0x4c2   :  { %4259 = vmax.xlane.f32.xlu0 %v8737_v50  ;;  %v4165_v13 = vmax.f32 %v4113_v42, 0.0  ;;  %v8747_v41 = vsel %vm4174_vm2, %v4164_v53, -inf }
 0x4c3   :  { %v8742_v0 = vsel %vm4174_vm2, %v4167_v36, -inf }
 0x4c4   :  { %4261 = vmax.xlane.f32.xlu1 %v8742_v0  ;;  %v8752_v4 = vsel %vm4174_vm2, %v4165_v13, -inf }
 0x4c6   :  { %4255 = vmax.xlane.f32.xlu0 %v8747_v41 }
 0x4c8   :  { %4257 = vmax.xlane.f32.xlu1 %v8752_v4 }
 0x4cc   :  { %v5925_v38 = vpop.f32.mrb[52].mxu1 }
 0x4cd   :  { %v4125_v6 = vpop.f32.mrb[53].mxu1  ;;  %v4134_v17 = vadd.f32 %v5925_v38, %v8584_v1 }
 0x4ce   :  { %v4126_v24 = vadd.f32 %v8584_v1, %v4125_v6  ;;  %v5926_v16 = vpop.f32.mrb[54].mxu1 }
 0x4cf   :  { %v4128_v28 = vpop.f32.mrb[55].mxu1  ;;  %v4137_v11 = vadd.f32 %v5926_v16, %v8584_v1  ;;  %v4170_v19 = vmax.f32 %v4134_v17, 0.0 }
 0x4d0   :  { %v4168_v44 = vmax.f32 %v4126_v24, 0.0  ;;  %v4129_v27 = vadd.f32 %v8584_v1, %v4128_v28 }
 0x4d1   :  { %v4171_v22 = vmax.f32 %v4137_v11, 0.0  ;;  %v8771_v34 = vsel %vm4174_vm2, %v4170_v19, -inf }
 0x4d2   :  { %v4169_v12 = vmax.f32 %v4129_v27, 0.0  ;;  %v8761_v57 = vsel %vm4174_vm2, %v4168_v44, -inf }
 0x4d3   :  { %4263 = vmax.xlane.f32.xlu0 %v8761_v57  ;;  %v8776_v1 = vsel %vm4174_vm2, %v4171_v22, -inf }
 0x4d4   :  { %v8766_v10 = vsel %vm4174_vm2, %v4169_v12, -inf }
 0x4d5   :  { %4265 = vmax.xlane.f32.xlu1 %v8766_v10 }
 0x4d7   :  { %4267 = vmax.xlane.f32.xlu0 %v8771_v34 }
 0x4d9   :  { %4269 = vmax.xlane.f32.xlu1 %v8776_v1 }
 0x4ef   :  { %v4212_v26 = vpop.xlane.xlu1 %4211 }
 0x4f0   :  { %v4273_v39 = vsub.f32 %v8593_v56, %v4212_v26  ;;  %v4208_v15 = vpop.xlane.xlu0 %4207 }
 0x4f1   :  { %v4271_v63 = vsub.f32 %v8598_v32, %v4208_v15 }
 0x4f2   :  { %v4307_v23 = vmul.f32 1.442695, %v4273_v39 }
 0x4f3   :  { %v4303_v55 = vmul.f32 1.442695, %v4271_v63  ;;  %v4214_v46 = vpop.xlane.xlu1 %4213 }
 0x4f4   :  { %6579 = vpow2.f32 %v4307_v23  ;;  %v4274_v52 = vsub.f32 %v8603_v43, %v4214_v46  ;;  %v4210_v61 = vpop.xlane.xlu0 %4209 }
 0x4f5   :  { %v4272_v5 = vsub.f32 %v8608_v49, %v4210_v61  ;;  %6581 = vpow2.f32 %v4303_v55 }
 0x4f6   :  { %v4309_v20 = vmul.f32 1.442695, %v4274_v52 }
 0x4f7   :  { %v4305_v7 = vmul.f32 1.442695, %v4272_v5 }
 0x4f8   :  { %6583 = vpow2.f32 %v4309_v20 }
 0x4f9   :  { %6585 = vpow2.f32 %v4305_v7 }
 0x4fe   :  { %v8783_v47 = vpop.eup %6579 }
 0x4ff   :  { %4371 = vadd.xlane.f32.xlu0 %v8783_v47  ;;  %v4220_v56 = vpop.xlane.xlu0 %4219  ;;  %v8787_v51 = vpop.eup %6581 }
 0x500   :  { %v4277_v32 = vsub.f32 %v8617_v25, %v4220_v56 }
 0x501   :  { %v4222_v21 = vpop.xlane.xlu1 %4221 }
 0x502   :  { %v8789_v42 = vpop.eup %6583  ;;  %v4315_v43 = vmul.f32 1.442695, %v4277_v32  ;;  %v4278_v49 = vsub.f32 %v8622_v31, %v4222_v21 }
 0x503   :  { %4373 = vadd.xlane.f32.xlu1 %v8789_v42  ;;  %4367 = vadd.xlane.f32.xlu0 %v8787_v51  ;;  %v4216_v53 = vpop.xlane.xlu0 %4215  ;;  %v8795_v6 = vpop.eup %6585 }
 0x504   :  { %6587 = vpow2.f32 %v4315_v43  ;;  %v4317_v36 = vmul.f32 1.442695, %v4278_v49  ;;  %v4275_v13 = vsub.f32 %v8627_v48, %v4216_v53 }
 0x505   :  { %v4218_v38 = vpop.xlane.xlu1 %4217 }
 0x506   :  { %6589 = vpow2.f32 %v4317_v36  ;;  %v4311_v25 = vmul.f32 1.442695, %v4275_v13  ;;  %v4276_v17 = vsub.f32 %v8632_v37, %v4218_v38 }
 0x507   :  { %4369 = vadd.xlane.f32.xlu1 %v8795_v6 }
 0x508   :  { %6591 = vpow2.f32 %v4311_v25  ;;  %v4313_v31 = vmul.f32 1.442695, %v4276_v17 }
 0x50a   :  { %6593 = vpow2.f32 %v4313_v31 }
 0x50e   :  { %v8799_v24 = vpop.eup %6587 }
 0x50f   :  { %4379 = vadd.xlane.f32.xlu0 %v8799_v24  ;;  %v4228_v16 = vpop.xlane.xlu0 %4227 }
 0x510   :  { %v8802_v28 = vpop.eup %6589  ;;  %v4281_v48 = vsub.f32 %v8641_v35, %v4228_v16 }
 0x511   :  { %v4230_v44 = vpop.xlane.xlu1 %4229  ;;  %4381 = vadd.xlane.f32.xlu1 %v8802_v28 }
 0x512   :  { %v8806_v11 = vpop.eup %6591  ;;  %v4323_v37 = vmul.f32 1.442695, %v4281_v48  ;;  %v4282_v27 = vsub.f32 %v8646_v59, %v4230_v44 }
 0x513   :  { %4375 = vadd.xlane.f32.xlu0 %v8806_v11  ;;  %v4224_v19 = vpop.xlane.xlu0 %4223 }
 0x514   :  { %v8810_v12 = vpop.eup %6593  ;;  %6595 = vpow2.f32 %v4323_v37  ;;  %v4325_v22 = vmul.f32 1.442695, %v4282_v27  ;;  %v4279_v26 = vsub.f32 %v8651_v45, %v4224_v19 }
 0x515   :  { %v4226_v39 = vpop.xlane.xlu1 %4225  ;;  %4377 = vadd.xlane.f32.xlu1 %v8810_v12 }
 0x516   :  { %6597 = vpow2.f32 %v4325_v22  ;;  %v4319_v35 = vmul.f32 1.442695, %v4279_v26  ;;  %v4280_v15 = vsub.f32 %v8656_v30, %v4226_v39 }
 0x518   :  { %6599 = vpow2.f32 %v4319_v35  ;;  %v4321_v63 = vmul.f32 1.442695, %v4280_v15 }
 0x51a   :  { %6601 = vpow2.f32 %v4321_v63 }
 0x51e   :  { %v8815_v59 = vpop.eup %6595 }
 0x51f   :  { %4387 = vadd.xlane.f32.xlu0 %v8815_v59  ;;  %v4236_v23 = vpop.xlane.xlu0 %4235 }
 0x520   :  { %v8818_v55 = vpop.eup %6597  ;;  %v4285_v46 = vsub.f32 %v8665_v29, %v4236_v23 }
 0x521   :  { %v4238_v45 = vpop.xlane.xlu1 %4237  ;;  %4389 = vadd.xlane.f32.xlu1 %v8818_v55 }
 0x522   :  { %v8822_v52 = vpop.eup %6599  ;;  %v4331_v61 = vmul.f32 1.442695, %v4285_v46  ;;  %v4286_v30 = vsub.f32 %v8670_v33, %v4238_v45 }
 0x523   :  { %4383 = vadd.xlane.f32.xlu0 %v8822_v52  ;;  %v4232_v5 = vpop.xlane.xlu0 %4231 }
 0x524   :  { %v8826_v20 = vpop.eup %6601  ;;  %6603 = vpow2.f32 %v4331_v61  ;;  %v4333_v7 = vmul.f32 1.442695, %v4286_v30  ;;  %v4283_v56 = vsub.f32 %v8675_v54, %v4232_v5 }
 0x525   :  { %v4234_v32 = vpop.xlane.xlu1 %4233  ;;  %4385 = vadd.xlane.f32.xlu1 %v8826_v20 }
 0x526   :  { %6605 = vpow2.f32 %v4333_v7  ;;  %v4327_v29 = vmul.f32 1.442695, %v4283_v56  ;;  %v4284_v21 = vsub.f32 %v8680_v58, %v4234_v32 }
 0x528   :  { %6607 = vpow2.f32 %v4327_v29  ;;  %v4329_v43 = vmul.f32 1.442695, %v4284_v21 }
 0x52a   :  { %6609 = vpow2.f32 %v4329_v43 }
 0x52e   :  { %v8831_v33 = vpop.eup %6603 }
 0x52f   :  { %4395 = vadd.xlane.f32.xlu0 %v8831_v33  ;;  %v4244_v49 = vpop.xlane.xlu0 %4243 }
 0x530   :  { %v8834_v53 = vpop.eup %6605  ;;  %v4289_v36 = vsub.f32 %v8689_v62, %v4244_v49 }
 0x531   :  { %v4246_v54 = vpop.xlane.xlu1 %4245  ;;  %4397 = vadd.xlane.f32.xlu1 %v8834_v53 }
 0x532   :  { %v8838_v13 = vpop.eup %6607  ;;  %v4339_v38 = vmul.f32 1.442695, %v4289_v36  ;;  %v4290_v58 = vsub.f32 %v8694_v9, %v4246_v54 }
 0x533   :  { %4391 = vadd.xlane.f32.xlu0 %v8838_v13  ;;  %v4240_v25 = vpop.xlane.xlu0 %4239 }
 0x534   :  { %v8842_v17 = vpop.eup %6609  ;;  %6611 = vpow2.f32 %v4339_v38  ;;  %v4341_v31 = vmul.f32 1.442695, %v4290_v58  ;;  %v4287_v16 = vsub.f32 %v8699_v14, %v4240_v25 }
 0x535   :  { %v4242_v48 = vpop.xlane.xlu1 %4241  ;;  %4393 = vadd.xlane.f32.xlu1 %v8842_v17 }
 0x536   :  { %6613 = vpow2.f32 %v4341_v31  ;;  %v4335_v62 = vmul.f32 1.442695, %v4287_v16  ;;  %v4288_v44 = vsub.f32 %v8704_v3, %v4242_v48 }
 0x538   :  { %6615 = vpow2.f32 %v4335_v62  ;;  %v4337_v37 = vmul.f32 1.442695, %v4288_v44 }
 0x53a   :  { %6617 = vpow2.f32 %v4337_v37 }
 0x53e   :  { %v8847_v9 = vpop.eup %6611 }
 0x53f   :  { %4403 = vadd.xlane.f32.xlu0 %v8847_v9  ;;  %v4252_v27 = vpop.xlane.xlu0 %4251 }
 0x540   :  { %v8850_v19 = vpop.eup %6613  ;;  %v4293_v22 = vsub.f32 %v8713_v40, %v4252_v27 }
 0x541   :  { %v4254_v14 = vpop.xlane.xlu1 %4253  ;;  %4405 = vadd.xlane.f32.xlu1 %v8850_v19 }
 0x542   :  { %v8854_v26 = vpop.eup %6615  ;;  %v4347_v39 = vmul.f32 1.442695, %v4293_v22  ;;  %v4294_v3 = vsub.f32 %v8718_v60, %v4254_v14 }
 0x543   :  { %4399 = vadd.xlane.f32.xlu0 %v8854_v26  ;;  %v4248_v35 = vpop.xlane.xlu0 %4247 }
 0x544   :  { %v8858_v15 = vpop.eup %6617  ;;  %6619 = vpow2.f32 %v4347_v39  ;;  %v4349_v63 = vmul.f32 1.442695, %v4294_v3  ;;  %v4291_v23 = vsub.f32 %v8723_v18, %v4248_v35 }
 0x545   :  { %v4250_v46 = vpop.xlane.xlu1 %4249  ;;  %4401 = vadd.xlane.f32.xlu1 %v8858_v15 }
 0x546   :  { %6621 = vpow2.f32 %v4349_v63  ;;  %v4343_v40 = vmul.f32 1.442695, %v4291_v23  ;;  %v4292_v45 = vsub.f32 %v8728_v2, %v4250_v46 }
 0x548   :  { %6623 = vpow2.f32 %v4343_v40  ;;  %v4345_v61 = vmul.f32 1.442695, %v4292_v45 }
 0x54a   :  { %6625 = vpow2.f32 %v4345_v61 }
 0x54e   :  { %v8863_v60 = vpop.eup %6619 }
 0x54f   :  { %4411 = vadd.xlane.f32.xlu0 %v8863_v60  ;;  %v4260_v30 = vpop.xlane.xlu0 %4259 }
 0x550   :  { %v8866_v5 = vpop.eup %6621  ;;  %v4297_v7 = vsub.f32 %v8737_v50, %v4260_v30 }
 0x551   :  { %v4262_v18 = vpop.xlane.xlu1 %4261  ;;  %4413 = vadd.xlane.f32.xlu1 %v8866_v5 }
 0x552   :  { %v8870_v56 = vpop.eup %6623  ;;  %v4355_v32 = vmul.f32 1.442695, %v4297_v7  ;;  %v4298_v2 = vsub.f32 %v8742_v0, %v4262_v18 }
 0x553   :  { %4407 = vadd.xlane.f32.xlu0 %v8870_v56  ;;  %v4256_v29 = vpop.xlane.xlu0 %4255 }
 0x554   :  { %v8874_v21 = vpop.eup %6625  ;;  %6627 = vpow2.f32 %v4355_v32  ;;  %v4357_v43 = vmul.f32 1.442695, %v4298_v2  ;;  %v4295_v49 = vsub.f32 %v8747_v41, %v4256_v29 }
 0x555   :  { %v4258_v36 = vpop.xlane.xlu1 %4257  ;;  %4409 = vadd.xlane.f32.xlu1 %v8874_v21 }
 0x556   :  { %6629 = vpow2.f32 %v4357_v43  ;;  %v4351_v50 = vmul.f32 1.442695, %v4295_v49  ;;  %v4296_v54 = vsub.f32 %v8752_v4, %v4258_v36 }
 0x558   :  { %6631 = vpow2.f32 %v4351_v50  ;;  %v4353_v38 = vmul.f32 1.442695, %v4296_v54 }
 0x55a   :  { %6633 = vpow2.f32 %v4353_v38 }
 0x55e   :  { %v8879_v0 = vpop.eup %6627 }
 0x55f   :  { %4419 = vadd.xlane.f32.xlu0 %v8879_v0 }
 0x560   :  { %v8882_v58 = vpop.eup %6629  ;;  %v4264_v25 = vpop.xlane.xlu0 %4263 }
 0x561   :  { %v4299_v31 = vsub.f32 %v8761_v57, %v4264_v25  ;;  %4421 = vadd.xlane.f32.xlu1 %v8882_v58 }
 0x562   :  { %v8886_v41 = vpop.eup %6631  ;;  %v4266_v16 = vpop.xlane.xlu1 %4265 }
 0x563   :  { %v4359_v48 = vmul.f32 1.442695, %v4299_v31  ;;  %v4300_v4 = vsub.f32 %v8766_v10, %v4266_v16  ;;  %4415 = vadd.xlane.f32.xlu0 %v8886_v41 }
 0x564   :  { %v8890_v62 = vpop.eup %6633  ;;  %v4268_v44 = vpop.xlane.xlu0 %4267 }
 0x565   :  { %6635 = vpow2.f32 %v4359_v48  ;;  %v4361_v37 = vmul.f32 1.442695, %v4300_v4  ;;  %v4301_v27 = vsub.f32 %v8771_v34, %v4268_v44  ;;  %4417 = vadd.xlane.f32.xlu1 %v8890_v62 }
 0x566   :  { %v4270_v57 = vpop.xlane.xlu1 %4269 }
 0x567   :  { %6637 = vpow2.f32 %v4361_v37  ;;  %v4363_v22 = vmul.f32 1.442695, %v4301_v27  ;;  %v4302_v14 = vsub.f32 %v8776_v1, %v4270_v57 }
 0x569   :  { %6639 = vpow2.f32 %v4363_v22  ;;  %v4365_v39 = vmul.f32 1.442695, %v4302_v14 }
 0x56b   :  { %6641 = vpow2.f32 %v4365_v39 }
 0x56f   :  { %v8895_v10 = vpop.eup %6635 }
 0x570   :  { %4423 = vadd.xlane.f32.xlu0 %v8895_v10 }
 0x571   :  { %v8898_v3 = vpop.eup %6637 }
 0x572   :  { %4425 = vadd.xlane.f32.xlu1 %v8898_v3 }
 0x573   :  { %v8901_v35 = vpop.eup %6639 }
 0x574   :  { %4427 = vadd.xlane.f32.xlu0 %v8901_v35 }
 0x575   :  { %v8904_v34 = vpop.eup %6641 }
 0x576   :  { %4429 = vadd.xlane.f32.xlu1 %v8904_v34 }
 0x58c   :  { %v4372_v1 = vpop.xlane.xlu0 %4371 }
 0x58d   :  { %6643 = vrcp.f32 %v4372_v1 }
 0x590   :  { %v4374_v63 = vpop.xlane.xlu1 %4373  ;;  %v4368_v23 = vpop.xlane.xlu0 %4367 }
 0x591   :  { %6645 = vrcp.f32 %v4374_v63 }
 0x592   :  { %6647 = vrcp.f32 %v4368_v23 }
 0x594   :  { %v4370_v46 = vpop.xlane.xlu1 %4369 }
 0x595   :  { %6649 = vrcp.f32 %v4370_v46 }
 0x597   :  { %v6644_v40 = vpop.eup %6643 }
 0x598   :  { %v8908_v45 = vmul.f32 %v6644_v40, %v8783_v47 }
 0x59a   :  { %v8913_v61 = vsel %vm4174_vm2, %v8908_v45, -inf }
 0x59b   :  { %v6646_v30 = vpop.eup %6645  ;;  %4531 = vmax.xlane.f32.xlu0 %v8913_v61 }
 0x59c   :  { %v6648_v7 = vpop.eup %6647  ;;  %v4380_v18 = vpop.xlane.xlu0 %4379  ;;  %v8917_v32 = vmul.f32 %v6646_v30, %v8789_v42 }
 0x59d   :  { %6651 = vrcp.f32 %v4380_v18  ;;  %v8920_v2 = vmul.f32 %v6648_v7, %v8787_v51 }
 0x59e   :  { %v4382_v29 = vpop.xlane.xlu1 %4381  ;;  %v8925_v47 = vsel %vm4174_vm2, %v8917_v32, -inf }
 0x59f   :  { %v6650_v43 = vpop.eup %6649  ;;  %6653 = vrcp.f32 %v4382_v29  ;;  %4533 = vmax.xlane.f32.xlu1 %v8925_v47  ;;  %v8931_v49 = vsel %vm4174_vm2, %v8920_v2, -inf }
 0x5a0   :  { %4527 = vmax.xlane.f32.xlu0 %v8931_v49  ;;  %v4376_v42 = vpop.xlane.xlu0 %4375  ;;  %v8935_v51 = vmul.f32 %v6650_v43, %v8795_v6 }
 0x5a1   :  { %6655 = vrcp.f32 %v4376_v42 }
 0x5a2   :  { %v4378_v36 = vpop.xlane.xlu1 %4377  ;;  %v8940_v50 = vsel %vm4174_vm2, %v8935_v51, -inf }
 0x5a3   :  { %6657 = vrcp.f32 %v4378_v36  ;;  %4529 = vmax.xlane.f32.xlu1 %v8940_v50 }
 0x5a7   :  { %v6652_v54 = vpop.eup %6651 }
 0x5a8   :  { %v8944_v38 = vmul.f32 %v6652_v54, %v8799_v24 }
 0x5a9   :  { %v6654_v25 = vpop.eup %6653 }
 0x5aa   :  { %v8949_v6 = vsel %vm4174_vm2, %v8944_v38, -inf  ;;  %v8952_v31 = vmul.f32 %v6654_v25, %v8802_v28 }
 0x5ab   :  { %v6656_v16 = vpop.eup %6655  ;;  %4539 = vmax.xlane.f32.xlu0 %v8949_v6 }
 0x5ac   :  { %v4388_v48 = vpop.xlane.xlu0 %4387  ;;  %v8958_v4 = vsel %vm4174_vm2, %v8952_v31, -inf  ;;  %v8961_v24 = vmul.f32 %v6656_v16, %v8806_v11 }
 0x5ad   :  { %v6658_v44 = vpop.eup %6657  ;;  %6659 = vrcp.f32 %v4388_v48  ;;  %4541 = vmax.xlane.f32.xlu1 %v8958_v4 }
 0x5ae   :  { %v4390_v37 = vpop.xlane.xlu1 %4389  ;;  %v8967_v28 = vsel %vm4174_vm2, %v8961_v24, -inf  ;;  %v8970_v27 = vmul.f32 %v6658_v44, %v8810_v12 }
 0x5af   :  { %6661 = vrcp.f32 %v4390_v37  ;;  %4535 = vmax.xlane.f32.xlu0 %v8967_v28 }
 0x5b0   :  { %v4384_v57 = vpop.xlane.xlu0 %4383  ;;  %v8976_v11 = vsel %vm4174_vm2, %v8970_v27, -inf }
 0x5b1   :  { %6663 = vrcp.f32 %v4384_v57  ;;  %4537 = vmax.xlane.f32.xlu1 %v8976_v11 }
 0x5b2   :  { %v4386_v22 = vpop.xlane.xlu1 %4385 }
 0x5b3   :  { %6665 = vrcp.f32 %v4386_v22 }
 0x5b7   :  { %v6660_v14 = vpop.eup %6659 }
 0x5b8   :  { %v8980_v39 = vmul.f32 %v6660_v14, %v8815_v59 }
 0x5b9   :  { %v6662_v12 = vpop.eup %6661 }
 0x5ba   :  { %v8985_v1 = vsel %vm4174_vm2, %v8980_v39, -inf  ;;  %v8988_v63 = vmul.f32 %v6662_v12, %v8818_v55 }
 0x5bb   :  { %v6664_v23 = vpop.eup %6663  ;;  %4547 = vmax.xlane.f32.xlu0 %v8985_v1 }
 0x5bc   :  { %v4396_v46 = vpop.xlane.xlu0 %4395  ;;  %v8994_v40 = vsel %vm4174_vm2, %v8988_v63, -inf  ;;  %v8997_v59 = vmul.f32 %v6664_v23, %v8822_v52 }
 0x5bd   :  { %v6666_v30 = vpop.eup %6665  ;;  %6667 = vrcp.f32 %v4396_v46  ;;  %4549 = vmax.xlane.f32.xlu1 %v8994_v40 }
 0x5be   :  { %v4398_v7 = vpop.xlane.xlu1 %4397  ;;  %v9003_v55 = vsel %vm4174_vm2, %v8997_v59, -inf  ;;  %v9006_v18 = vmul.f32 %v6666_v30, %v8826_v20 }
 0x5bf   :  { %6669 = vrcp.f32 %v4398_v7  ;;  %4543 = vmax.xlane.f32.xlu0 %v9003_v55 }
 0x5c0   :  { %v4392_v29 = vpop.xlane.xlu0 %4391  ;;  %v9012_v52 = vsel %vm4174_vm2, %v9006_v18, -inf }
 0x5c1   :  { %6671 = vrcp.f32 %v4392_v29  ;;  %4545 = vmax.xlane.f32.xlu1 %v9012_v52 }
 0x5c2   :  { %v4394_v43 = vpop.xlane.xlu1 %4393 }
 0x5c3   :  { %6673 = vrcp.f32 %v4394_v43 }
 0x5c7   :  { %v6668_v42 = vpop.eup %6667 }
 0x5c8   :  { %v9016_v36 = vmul.f32 %v6668_v42, %v8831_v33 }
 0x5c9   :  { %v6670_v20 = vpop.eup %6669 }
 0x5ca   :  { %v9021_v54 = vsel %vm4174_vm2, %v9016_v36, -inf  ;;  %v9024_v25 = vmul.f32 %v6670_v20, %v8834_v53 }
 0x5cb   :  { %v6672_v16 = vpop.eup %6671  ;;  %4555 = vmax.xlane.f32.xlu0 %v9021_v54 }
 0x5cc   :  { %v4404_v48 = vpop.xlane.xlu0 %4403  ;;  %v9030_v44 = vsel %vm4174_vm2, %v9024_v25, -inf  ;;  %v9033_v33 = vmul.f32 %v6672_v16, %v8838_v13 }
 0x5cd   :  { %v6674_v37 = vpop.eup %6673  ;;  %6675 = vrcp.f32 %v4404_v48  ;;  %4557 = vmax.xlane.f32.xlu1 %v9030_v44 }
 0x5ce   :  { %v4406_v57 = vpop.xlane.xlu1 %4405  ;;  %v9039_v53 = vsel %vm4174_vm2, %v9033_v33, -inf  ;;  %v9042_v22 = vmul.f32 %v6674_v37, %v8842_v17 }
 0x5cf   :  { %6677 = vrcp.f32 %v4406_v57  ;;  %4551 = vmax.xlane.f32.xlu0 %v9039_v53 }
 0x5d0   :  { %v4400_v14 = vpop.xlane.xlu0 %4399  ;;  %v9048_v13 = vsel %vm4174_vm2, %v9042_v22, -inf }
 0x5d1   :  { %6679 = vrcp.f32 %v4400_v14  ;;  %4553 = vmax.xlane.f32.xlu1 %v9048_v13 }
 0x5d2   :  { %v4402_v12 = vpop.xlane.xlu1 %4401 }
 0x5d3   :  { %6681 = vrcp.f32 %v4402_v12 }
 0x5d7   :  { %v6676_v23 = vpop.eup %6675 }
 0x5d8   :  { %v9052_v46 = vmul.f32 %v6676_v23, %v8847_v9 }
 0x5d9   :  { %v6678_v17 = vpop.eup %6677 }
 0x5da   :  { %v9057_v30 = vsel %vm4174_vm2, %v9052_v46, -inf  ;;  %v9060_v7 = vmul.f32 %v6678_v17, %v8850_v19 }
 0x5db   :  { %v6680_v29 = vpop.eup %6679  ;;  %4563 = vmax.xlane.f32.xlu0 %v9057_v30 }
 0x5dc   :  { %v4412_v43 = vpop.xlane.xlu0 %4411  ;;  %v9066_v42 = vsel %vm4174_vm2, %v9060_v7, -inf  ;;  %v9069_v9 = vmul.f32 %v6680_v29, %v8854_v26 }
 0x5dd   :  { %v6682_v20 = vpop.eup %6681  ;;  %6683 = vrcp.f32 %v4412_v43  ;;  %4565 = vmax.xlane.f32.xlu1 %v9066_v42 }
 0x5de   :  { %v4414_v16 = vpop.xlane.xlu1 %4413  ;;  %v9075_v19 = vsel %vm4174_vm2, %v9069_v9, -inf  ;;  %v9078_v48 = vmul.f32 %v6682_v20, %v8858_v15 }
 0x5df   :  { %6685 = vrcp.f32 %v4414_v16  ;;  %4559 = vmax.xlane.f32.xlu0 %v9075_v19 }
 0x5e0   :  { %9486 = vst [vmem:[#allocation5_spill] sm:$0xff] %v9078_v48  ;;  %v4408_v37 = vpop.xlane.xlu0 %4407  ;;  %v9084_v26 = vsel %vm4174_vm2, %v9078_v48, -inf }
 0x5e1   :  { %6687 = vrcp.f32 %v4408_v37  ;;  %4561 = vmax.xlane.f32.xlu1 %v9084_v26 }
 0x5e2   :  { %v4410_v57 = vpop.xlane.xlu1 %4409 }
 0x5e3   :  { %6689 = vrcp.f32 %v4410_v57 }
 0x5e7   :  { %v6684_v14 = vpop.eup %6683 }
 0x5e8   :  { %v9088_v12 = vmul.f32 %v6684_v14, %v8863_v60 }
 0x5e9   :  { %v6686_v15 = vpop.eup %6685 }
 0x5ea   :  { %9487 = vst [vmem:[#allocation6_spill] sm:$0xff] %v9088_v12  ;;  %v9093_v23 = vsel %vm4174_vm2, %v9088_v12, -inf  ;;  %v9096_v17 = vmul.f32 %v6686_v15, %v8866_v5 }
 0x5eb   :  { %v6688_v29 = vpop.eup %6687  ;;  %4571 = vmax.xlane.f32.xlu0 %v9093_v23 }
 0x5ec   :  { %9488 = vst [vmem:[#allocation7_spill] sm:$0xff] %v9096_v17  ;;  %v4420_v43 = vpop.xlane.xlu0 %4419  ;;  %v9102_v20 = vsel %vm4174_vm2, %v9096_v17, -inf  ;;  %v9105_v60 = vmul.f32 %v6688_v29, %v8870_v56 }
 0x5ed   :  { %v6690_v16 = vpop.eup %6689  ;;  %6691 = vrcp.f32 %v4420_v43  ;;  %4573 = vmax.xlane.f32.xlu1 %v9102_v20 }
 0x5ee   :  { %9489 = vst [vmem:[#allocation8_spill] sm:$0xff] %v9105_v60  ;;  %v4422_v37 = vpop.xlane.xlu1 %4421  ;;  %v9111_v5 = vsel %vm4174_vm2, %v9105_v60, -inf  ;;  %v9114_v57 = vmul.f32 %v6690_v16, %v8874_v21 }
 0x5ef   :  { %6693 = vrcp.f32 %v4422_v37  ;;  %4567 = vmax.xlane.f32.xlu0 %v9111_v5 }
 0x5f0   :  { %9490 = vst [vmem:[#allocation9_spill] sm:$0xff] %v9114_v57  ;;  %v4416_v14 = vpop.xlane.xlu0 %4415  ;;  %v9120_v56 = vsel %vm4174_vm2, %v9114_v57, -inf }
 0x5f1   :  { %6695 = vrcp.f32 %v4416_v14  ;;  %4569 = vmax.xlane.f32.xlu1 %v9120_v56 }
 0x5f2   :  { %v4418_v15 = vpop.xlane.xlu1 %4417 }
 0x5f3   :  { %6697 = vrcp.f32 %v4418_v15 }
 0x5f7   :  { %v6692_v29 = vpop.eup %6691 }
 0x5f8   :  { %v9124_v43 = vmul.f32 %v6692_v29, %v8879_v0 }
 0x5f9   :  { %v6694_v21 = vpop.eup %6693 }
 0x5fa   :  { %9491 = vst [vmem:[#allocation10_spill] sm:$0xff] %v9124_v43  ;;  %v9129_v16 = vsel %vm4174_vm2, %v9124_v43, -inf  ;;  %v9132_v37 = vmul.f32 %v6694_v21, %v8882_v58 }
 0x5fb   :  { %v6696_v57 = vpop.eup %6695  ;;  %4579 = vmax.xlane.f32.xlu0 %v9129_v16 }
 0x5fc   :  { %9492 = vst [vmem:[#allocation11_spill] sm:$0xff] %v9132_v37  ;;  %v9138_v14 = vsel %vm4174_vm2, %v9132_v37, -inf  ;;  %v9141_v0 = vmul.f32 %v6696_v57, %v8886_v41 }
 0x5fd   :  { %v6698_v15 = vpop.eup %6697  ;;  %4581 = vmax.xlane.f32.xlu1 %v9138_v14  ;;  %v4424_v29 = vpop.xlane.xlu0 %4423 }
 0x5fe   :  { %9493 = vst [vmem:[#allocation12_spill] sm:$0xff] %v9141_v0  ;;  %6699 = vrcp.f32 %v4424_v29  ;;  %v9147_v58 = vsel %vm4174_vm2, %v9141_v0, -inf  ;;  %v9150_v21 = vmul.f32 %v6698_v15, %v8890_v62 }
 0x5ff   :  { %v4426_v43 = vpop.xlane.xlu1 %4425  ;;  %4575 = vmax.xlane.f32.xlu0 %v9147_v58 }
 0x600   :  { %9494 = vst [vmem:[#allocation13_spill] sm:$0xff] %v9150_v21  ;;  %6701 = vrcp.f32 %v4426_v43  ;;  %v9156_v41 = vsel %vm4174_vm2, %v9150_v21, -inf }
 0x601   :  { %4577 = vmax.xlane.f32.xlu1 %v9156_v41  ;;  %v4428_v57 = vpop.xlane.xlu0 %4427 }
 0x602   :  { %6703 = vrcp.f32 %v4428_v57 }
 0x603   :  { %v4430_v29 = vpop.xlane.xlu1 %4429 }
 0x604   :  { %6705 = vrcp.f32 %v4430_v29 }
 0x608   :  { %v6700_v0 = vpop.eup %6699 }
 0x609   :  { %v9160_v37 = vmul.f32 %v6700_v0, %v8895_v10 }
 0x60a   :  { %v6702_v62 = vpop.eup %6701 }
 0x60b   :  { %9495 = vst [vmem:[#allocation14_spill] sm:$0xff] %v9160_v37  ;;  %v9165_v43 = vsel %vm4174_vm2, %v9160_v37, -inf  ;;  %v9168_v15 = vmul.f32 %v6702_v62, %v8898_v3 }
 0x60c   :  { %v6704_v21 = vpop.eup %6703  ;;  %4583 = vmax.xlane.f32.xlu0 %v9165_v43 }
 0x60d   :  { %9496 = vst [vmem:[#allocation15_spill] sm:$0xff] %v9168_v15  ;;  %v9174_v57 = vsel %vm4174_vm2, %v9168_v15, -inf  ;;  %v9177_v10 = vmul.f32 %v6704_v21, %v8901_v35 }
 0x60e   :  { %v6706_v0 = vpop.eup %6705  ;;  %4585 = vmax.xlane.f32.xlu1 %v9174_v57 }
 0x60f   :  { %9497 = vst [vmem:[#allocation16_spill] sm:$0xff] %v9177_v10  ;;  %v9183_v29 = vsel %vm4174_vm2, %v9177_v10, -inf  ;;  %v9186_v3 = vmul.f32 %v6706_v0, %v8904_v34 }
 0x610   :  { %4587 = vmax.xlane.f32.xlu0 %v9183_v29 }
 0x611   :  { %9498 = vst [vmem:[#allocation17_spill] sm:$0xff] %v9186_v3  ;;  %v9192_v62 = vsel %vm4174_vm2, %v9186_v3, -inf }
 0x612   :  { %4589 = vmax.xlane.f32.xlu1 %v9192_v62 }
 0x628   :  { %v9195_v35 = vpop.xlane.xlu0 %4531 }
 0x629   :  { %v4593_v21 = vsub.f32 %v8913_v61, %v9195_v35 }
 0x62b   :  { %v4627_v15 = vmul.f32 1.442695, %v4593_v21 }
 0x62c   :  { %v9199_v10 = vpop.xlane.xlu1 %4533 }
 0x62d   :  { %6707 = vpow2.f32 %v4627_v15  ;;  %v4594_v34 = vsub.f32 %v8925_v47, %v9199_v10  ;;  %v9203_v0 = vpop.xlane.xlu0 %4527 }
 0x62e   :  { %v4591_v3 = vsub.f32 %v8931_v49, %v9203_v0 }
 0x62f   :  { %v4629_v37 = vmul.f32 1.442695, %v4594_v34 }
 0x630   :  { %v4623_v60 = vmul.f32 1.442695, %v4591_v3  ;;  %v9207_v17 = vpop.xlane.xlu1 %4529 }
 0x631   :  { %6709 = vpow2.f32 %v4629_v37  ;;  %v4592_v61 = vsub.f32 %v8940_v50, %v9207_v17 }
 0x632   :  { %6711 = vpow2.f32 %v4623_v60 }
 0x633   :  { %v4625_v21 = vmul.f32 1.442695, %v4592_v61 }
 0x635   :  { %6713 = vpow2.f32 %v4625_v21 }
 0x637   :  { %v6708_v15 = vpop.eup %6707 }
 0x638   :  { %4691 = vadd.xlane.f32.xlu0 %v6708_v15  ;;  %v9211_v12 = vpop.xlane.xlu0 %4539 }
 0x639   :  { %v4597_v47 = vsub.f32 %v8949_v6, %v9211_v12 }
 0x63a   :  { %v9215_v48 = vpop.xlane.xlu1 %4541 }
 0x63b   :  { %v6710_v49 = vpop.eup %6709  ;;  %v4635_v3 = vmul.f32 1.442695, %v4597_v47  ;;  %v4598_v37 = vsub.f32 %v8958_v4, %v9215_v48 }
 0x63c   :  { %v6712_v34 = vpop.eup %6711  ;;  %4693 = vadd.xlane.f32.xlu1 %v6710_v49  ;;  %v9219_v50 = vpop.xlane.xlu0 %4535 }
 0x63d   :  { %6715 = vpow2.f32 %v4635_v3  ;;  %v4637_v60 = vmul.f32 1.442695, %v4598_v37  ;;  %4687 = vadd.xlane.f32.xlu0 %v6712_v34  ;;  %v4595_v61 = vsub.f32 %v8967_v28, %v9219_v50 }
 0x63e   :  { %v9223_v21 = vpop.xlane.xlu1 %4537 }
 0x63f   :  { %v6714_v6 = vpop.eup %6713  ;;  %6717 = vpow2.f32 %v4637_v60  ;;  %v4631_v15 = vmul.f32 1.442695, %v4595_v61  ;;  %v4596_v47 = vsub.f32 %v8976_v11, %v9223_v21 }
 0x640   :  { %4689 = vadd.xlane.f32.xlu1 %v6714_v6 }
 0x641   :  { %6719 = vpow2.f32 %v4631_v15  ;;  %v4633_v4 = vmul.f32 1.442695, %v4596_v47 }
 0x643   :  { %6721 = vpow2.f32 %v4633_v4 }
 0x647   :  { %v6716_v49 = vpop.eup %6715 }
 0x648   :  { %4699 = vadd.xlane.f32.xlu0 %v6716_v49  ;;  %v9227_v3 = vpop.xlane.xlu0 %4547 }
 0x649   :  { %v6718_v37 = vpop.eup %6717  ;;  %v4601_v28 = vsub.f32 %v8985_v1, %v9227_v3 }
 0x64a   :  { %4701 = vadd.xlane.f32.xlu1 %v6718_v37  ;;  %v9231_v34 = vpop.xlane.xlu1 %4549 }
 0x64b   :  { %v6720_v60 = vpop.eup %6719  ;;  %v4643_v61 = vmul.f32 1.442695, %v4601_v28  ;;  %v4602_v11 = vsub.f32 %v8994_v40, %v9231_v34 }
 0x64c   :  { %4695 = vadd.xlane.f32.xlu0 %v6720_v60  ;;  %v9235_v6 = vpop.xlane.xlu0 %4543 }
 0x64d   :  { %v6722_v15 = vpop.eup %6721  ;;  %6723 = vpow2.f32 %v4643_v61  ;;  %v4645_v47 = vmul.f32 1.442695, %v4602_v11  ;;  %v4599_v4 = vsub.f32 %v9003_v55, %v9235_v6 }
 0x64e   :  { %4697 = vadd.xlane.f32.xlu1 %v6722_v15  ;;  %v9239_v49 = vpop.xlane.xlu1 %4545 }
 0x64f   :  { %6725 = vpow2.f32 %v4645_v47  ;;  %v4639_v1 = vmul.f32 1.442695, %v4599_v4  ;;  %v4600_v37 = vsub.f32 %v9012_v52, %v9239_v49 }
 0x651   :  { %6727 = vpow2.f32 %v4639_v1  ;;  %v4641_v28 = vmul.f32 1.442695, %v4600_v37 }
 0x653   :  { %6729 = vpow2.f32 %v4641_v28 }
 0x657   :  { %v6724_v40 = vpop.eup %6723 }
 0x658   :  { %4707 = vadd.xlane.f32.xlu0 %v6724_v40  ;;  %v9243_v60 = vpop.xlane.xlu0 %4555 }
 0x659   :  { %v6726_v61 = vpop.eup %6725  ;;  %v4605_v11 = vsub.f32 %v9021_v54, %v9243_v60 }
 0x65a   :  { %4709 = vadd.xlane.f32.xlu1 %v6726_v61  ;;  %v9247_v55 = vpop.xlane.xlu1 %4557 }
 0x65b   :  { %v6728_v15 = vpop.eup %6727  ;;  %v4651_v47 = vmul.f32 1.442695, %v4605_v11  ;;  %v4606_v4 = vsub.f32 %v9030_v44, %v9247_v55 }
 0x65c   :  { %4703 = vadd.xlane.f32.xlu0 %v6728_v15  ;;  %v9251_v52 = vpop.xlane.xlu0 %4551 }
 0x65d   :  { %v6730_v1 = vpop.eup %6729  ;;  %6731 = vpow2.f32 %v4651_v47  ;;  %v4653_v37 = vmul.f32 1.442695, %v4606_v4  ;;  %v4603_v28 = vsub.f32 %v9039_v53, %v9251_v52 }
 0x65e   :  { %4705 = vadd.xlane.f32.xlu1 %v6730_v1  ;;  %v9255_v40 = vpop.xlane.xlu1 %4553 }
 0x65f   :  { %6733 = vpow2.f32 %v4653_v37  ;;  %v4647_v54 = vmul.f32 1.442695, %v4603_v28  ;;  %v4604_v61 = vsub.f32 %v9048_v13, %v9255_v40 }
 0x661   :  { %6735 = vpow2.f32 %v4647_v54  ;;  %v4649_v11 = vmul.f32 1.442695, %v4604_v61 }
 0x663   :  { %6737 = vpow2.f32 %v4649_v11 }
 0x667   :  { %v6732_v44 = vpop.eup %6731 }
 0x668   :  { %4715 = vadd.xlane.f32.xlu0 %v6732_v44  ;;  %v9259_v15 = vpop.xlane.xlu0 %4563 }
 0x669   :  { %v6734_v47 = vpop.eup %6733  ;;  %v4609_v4 = vsub.f32 %v9057_v30, %v9259_v15 }
 0x66a   :  { %4717 = vadd.xlane.f32.xlu1 %v6734_v47  ;;  %v9263_v53 = vpop.xlane.xlu1 %4565 }
 0x66b   :  { %v6736_v1 = vpop.eup %6735  ;;  %v4659_v37 = vmul.f32 1.442695, %v4609_v4  ;;  %v4610_v28 = vsub.f32 %v9066_v42, %v9263_v53 }
 0x66c   :  { %4711 = vadd.xlane.f32.xlu0 %v6736_v1  ;;  %v9267_v13 = vpop.xlane.xlu0 %4559 }
 0x66d   :  { %v6738_v54 = vpop.eup %6737  ;;  %6739 = vpow2.f32 %v4659_v37  ;;  %v4661_v61 = vmul.f32 1.442695, %v4610_v28  ;;  %v4607_v11 = vsub.f32 %v9075_v19, %v9267_v13 }
 0x66e   :  { %4713 = vadd.xlane.f32.xlu1 %v6738_v54  ;;  %v9271_v44 = vpop.xlane.xlu1 %4561 }
 0x66f   :  { %6741 = vpow2.f32 %v4661_v61  ;;  %v4655_v30 = vmul.f32 1.442695, %v4607_v11  ;;  %v4608_v47 = vsub.f32 %v9084_v26, %v9271_v44 }
 0x671   :  { %6743 = vpow2.f32 %v4655_v30  ;;  %v4657_v4 = vmul.f32 1.442695, %v4608_v47 }
 0x673   :  { %6745 = vpow2.f32 %v4657_v4 }
 0x677   :  { %v6740_v42 = vpop.eup %6739 }
 0x678   :  { %4723 = vadd.xlane.f32.xlu0 %v6740_v42  ;;  %v9275_v1 = vpop.xlane.xlu0 %4571 }
 0x679   :  { %v6742_v37 = vpop.eup %6741  ;;  %v4613_v28 = vsub.f32 %v9093_v23, %v9275_v1 }
 0x67a   :  { %4725 = vadd.xlane.f32.xlu1 %v6742_v37  ;;  %v9279_v19 = vpop.xlane.xlu1 %4573 }
 0x67b   :  { %v6744_v54 = vpop.eup %6743  ;;  %v4667_v61 = vmul.f32 1.442695, %v4613_v28  ;;  %v4614_v11 = vsub.f32 %v9102_v20, %v9279_v19 }
 0x67c   :  { %4719 = vadd.xlane.f32.xlu0 %v6744_v54  ;;  %v9283_v26 = vpop.xlane.xlu0 %4567 }
 0x67d   :  { %v6746_v30 = vpop.eup %6745  ;;  %6747 = vpow2.f32 %v4667_v61  ;;  %v4669_v47 = vmul.f32 1.442695, %v4614_v11  ;;  %v4611_v4 = vsub.f32 %v9111_v5, %v9283_v26 }
 0x67e   :  { %4721 = vadd.xlane.f32.xlu1 %v6746_v30  ;;  %v9287_v42 = vpop.xlane.xlu1 %4569 }
 0x67f   :  { %6749 = vpow2.f32 %v4669_v47  ;;  %v4663_v23 = vmul.f32 1.442695, %v4611_v4  ;;  %v4612_v37 = vsub.f32 %v9120_v56, %v9287_v42 }
 0x681   :  { %6751 = vpow2.f32 %v4663_v23  ;;  %v4665_v28 = vmul.f32 1.442695, %v4612_v37 }
 0x683   :  { %6753 = vpow2.f32 %v4665_v28 }
 0x687   :  { %v6748_v20 = vpop.eup %6747 }
 0x688   :  { %4731 = vadd.xlane.f32.xlu0 %v6748_v20  ;;  %v9291_v54 = vpop.xlane.xlu0 %4579 }
 0x689   :  { %v6750_v61 = vpop.eup %6749  ;;  %v4617_v11 = vsub.f32 %v9129_v16, %v9291_v54 }
 0x68a   :  { %4733 = vadd.xlane.f32.xlu1 %v6750_v61  ;;  %v9295_v5 = vpop.xlane.xlu1 %4581 }
 0x68b   :  { %9499 = vst [vmem:[#allocation18_spill] sm:$0xff] %v9295_v5  ;;  %v6752_v30 = vpop.eup %6751  ;;  %v4675_v47 = vmul.f32 1.442695, %v4617_v11  ;;  %v4618_v4 = vsub.f32 %v9138_v14, %v9295_v5 }
 0x68c   :  { %4727 = vadd.xlane.f32.xlu0 %v6752_v30  ;;  %v9299_v56 = vpop.xlane.xlu0 %4575 }
 0x68d   :  { %v6754_v23 = vpop.eup %6753  ;;  %6755 = vpow2.f32 %v4675_v47  ;;  %v4677_v37 = vmul.f32 1.442695, %v4618_v4  ;;  %v4615_v28 = vsub.f32 %v9147_v58, %v9299_v56 }
 0x68e   :  { %4729 = vadd.xlane.f32.xlu1 %v6754_v23  ;;  %v9303_v20 = vpop.xlane.xlu1 %4577 }
 0x68f   :  { %6757 = vpow2.f32 %v4677_v37  ;;  %v4671_v16 = vmul.f32 1.442695, %v4615_v28  ;;  %v4616_v61 = vsub.f32 %v9156_v41, %v9303_v20 }
 0x691   :  { %6759 = vpow2.f32 %v4671_v16  ;;  %v4673_v11 = vmul.f32 1.442695, %v4616_v61 }
 0x693   :  { %6761 = vpow2.f32 %v4673_v11 }
 0x697   :  { %v6756_v14 = vpop.eup %6755 }
 0x698   :  { %4739 = vadd.xlane.f32.xlu0 %v6756_v14 }
 0x699   :  { %v6758_v30 = vpop.eup %6757  ;;  %v9307_v5 = vpop.xlane.xlu0 %4583 }
 0x69a   :  { %v4619_v47 = vsub.f32 %v9165_v43, %v9307_v5  ;;  %4741 = vadd.xlane.f32.xlu1 %v6758_v30 }
 0x69b   :  { %v6760_v58 = vpop.eup %6759  ;;  %v9311_v4 = vpop.xlane.xlu1 %4585 }
 0x69c   :  { %v4679_v23 = vmul.f32 1.442695, %v4619_v47  ;;  %v4620_v37 = vsub.f32 %v9174_v57, %v9311_v4  ;;  %4735 = vadd.xlane.f32.xlu0 %v6760_v58 }
 0x69d   :  { %v6762_v41 = vpop.eup %6761  ;;  %v9315_v28 = vpop.xlane.xlu0 %4587 }
 0x69e   :  { %6763 = vpow2.f32 %v4679_v23  ;;  %v4681_v16 = vmul.f32 1.442695, %v4620_v37  ;;  %v4621_v61 = vsub.f32 %v9183_v29, %v9315_v28  ;;  %4737 = vadd.xlane.f32.xlu1 %v6762_v41 }
 0x69f   :  { %v9319_v11 = vpop.xlane.xlu1 %4589 }
 0x6a0   :  { %9500 = vst [vmem:[#allocation19_spill] sm:$0xff] %v9319_v11  ;;  %6765 = vpow2.f32 %v4681_v16  ;;  %v4683_v43 = vmul.f32 1.442695, %v4621_v61  ;;  %v4622_v14 = vsub.f32 %v9192_v62, %v9319_v11 }
 0x6a2   :  { %6767 = vpow2.f32 %v4683_v43  ;;  %v4685_v30 = vmul.f32 1.442695, %v4622_v14 }
 0x6a4   :  { %6769 = vpow2.f32 %v4685_v30 }
 0x6a8   :  { %v6764_v57 = vpop.eup %6763 }
 0x6a9   :  { %4743 = vadd.xlane.f32.xlu0 %v6764_v57 }
 0x6aa   :  { %v6766_v47 = vpop.eup %6765 }
 0x6ab   :  { %4745 = vadd.xlane.f32.xlu1 %v6766_v47 }
 0x6ac   :  { %v6768_v58 = vpop.eup %6767 }
 0x6ad   :  { %4747 = vadd.xlane.f32.xlu0 %v6768_v58 }
 0x6ae   :  { %v6770_v23 = vpop.eup %6769 }
 0x6af   :  { %4749 = vadd.xlane.f32.xlu1 %v6770_v23 }
 0x6c5   :  { %v4692_v29 = vpop.xlane.xlu0 %4691 }
 0x6c6   :  { %6771 = vlog2.f32 %v4692_v29 }
 0x6c9   :  { %v4694_v37 = vpop.xlane.xlu1 %4693 }
 0x6ca   :  { %6773 = vlog2.f32 %v4694_v37  ;;  %v4688_v41 = vpop.xlane.xlu0 %4687 }
 0x6cb   :  { %6775 = vlog2.f32 %v4688_v41 }
 0x6cd   :  { %v4690_v16 = vpop.xlane.xlu1 %4689 }
 0x6ce   :  { %6777 = vlog2.f32 %v4690_v16 }
 0x6d0   :  { %v6772_v62 = vpop.eup %6771 }
 0x6d1   :  { %v4756_v61 = vmul.f32 0.6931472, %v6772_v62 }
 0x6d3   :  { %v4817_v43 = vadd.f32 %v4756_v61, %v9195_v35 }
 0x6d4   :  { %v6774_v14 = vpop.eup %6773 }
 0x6d5   :  { %v6776_v30 = vpop.eup %6775  ;;  %v4849_v57 = vsub.f32 %v8908_v45, %v4817_v43  ;;  %v4758_v47 = vmul.f32 0.6931472, %v6774_v14  ;;  %v4700_v58 = vpop.xlane.xlu0 %4699 }
 0x6d6   :  { %v4752_v11 = vmul.f32 0.6931472, %v6776_v30  ;;  %6779 = vlog2.f32 %v4700_v58 }
 0x6d7   :  { %v4881_v23 = vsel %vm4174_vm2, %v4849_v57, 0.0  ;;  %v4818_v29 = vadd.f32 %v4758_v47, %v9199_v10  ;;  %v4702_v37 = vpop.xlane.xlu1 %4701 }
 0x6d8   :  { %v6778_v41 = vpop.eup %6777  ;;  %4913 = vst [vmem:[#allocation2 + $0x10] sm:$0xff] %v4881_v23  ;;  %v4815_v16 = vadd.f32 %v4752_v11, %v9203_v0  ;;  %6781 = vlog2.f32 %v4702_v37 }
 0x6d9   :  { %v4850_v35 = vsub.f32 %v8917_v32, %v4818_v29  ;;  %v4754_v62 = vmul.f32 0.6931472, %v6778_v41  ;;  %v4696_v61 = vpop.xlane.xlu0 %4695 }
 0x6da   :  { %v4847_v45 = vsub.f32 %v8920_v2, %v4815_v16  ;;  %6783 = vlog2.f32 %v4696_v61 }
 0x6db   :  { %v4882_v43 = vsel %vm4174_vm2, %v4850_v35, 0.0  ;;  %v4816_v14 = vadd.f32 %v4754_v62, %v9207_v17  ;;  %v4698_v30 = vpop.xlane.xlu1 %4697 }
 0x6dc   :  { %4914 = vst [vmem:[#allocation2 + $0x18] sm:$0xff] %v4882_v43  ;;  %v4879_v10 = vsel %vm4174_vm2, %v4847_v45, 0.0  ;;  %6785 = vlog2.f32 %v4698_v30 }
 0x6dd   :  { %4911 = vst [vmem:[#allocation2] sm:$0xff] %v4879_v10  ;;  %v4848_v0 = vsub.f32 %v8935_v51, %v4816_v14 }
 0x6df   :  { %v4880_v32 = vsel %vm4174_vm2, %v4848_v0, 0.0 }
 0x6e0   :  { %v6780_v11 = vpop.eup %6779  ;;  %4912 = vst [vmem:[#allocation2 + $0x8] sm:$0xff] %v4880_v32 }
 0x6e1   :  { %v4764_v2 = vmul.f32 0.6931472, %v6780_v11 }
 0x6e2   :  { %v6782_v57 = vpop.eup %6781 }
 0x6e3   :  { %v4821_v47 = vadd.f32 %v4764_v2, %v9211_v12  ;;  %v4766_v58 = vmul.f32 0.6931472, %v6782_v57 }
 0x6e4   :  { %v6784_v17 = vpop.eup %6783 }
 0x6e5   :  { %v4853_v23 = vsub.f32 %v8944_v38, %v4821_v47  ;;  %v4822_v29 = vadd.f32 %v4766_v58, %v9215_v48  ;;  %v4760_v37 = vmul.f32 0.6931472, %v6784_v17  ;;  %v4708_v41 = vpop.xlane.xlu0 %4707 }
 0x6e6   :  { %v6786_v16 = vpop.eup %6785  ;;  %6787 = vlog2.f32 %v4708_v41 }
 0x6e7   :  { %v4885_v51 = vsel %vm4174_vm2, %v4853_v23, 0.0  ;;  %v4854_v35 = vsub.f32 %v8952_v31, %v4822_v29  ;;  %v4819_v62 = vadd.f32 %v4760_v37, %v9219_v50  ;;  %v4762_v61 = vmul.f32 0.6931472, %v6786_v16  ;;  %v4710_v45 = vpop.xlane.xlu1 %4709 }
 0x6e8   :  { %4917 = vst [vmem:[#allocation2 + $0x30] sm:$0xff] %v4885_v51  ;;  %6789 = vlog2.f32 %v4710_v45 }
 0x6e9   :  { %v4886_v38 = vsel %vm4174_vm2, %v4854_v35, 0.0  ;;  %v4851_v48 = vsub.f32 %v8961_v24, %v4819_v62  ;;  %v4820_v12 = vadd.f32 %v4762_v61, %v9223_v21  ;;  %v4704_v43 = vpop.xlane.xlu0 %4703 }
 0x6ea   :  { %4918 = vst [vmem:[#allocation2 + $0x38] sm:$0xff] %v4886_v38  ;;  %6791 = vlog2.f32 %v4704_v43 }
 0x6eb   :  { %v4883_v14 = vsel %vm4174_vm2, %v4851_v48, 0.0  ;;  %v4852_v31 = vsub.f32 %v8970_v27, %v4820_v12  ;;  %v4706_v50 = vpop.xlane.xlu1 %4705 }
 0x6ec   :  { %4915 = vst [vmem:[#allocation2 + $0x20] sm:$0xff] %v4883_v14  ;;  %6793 = vlog2.f32 %v4706_v50 }
 0x6ed   :  { %v4884_v30 = vsel %vm4174_vm2, %v4852_v31, 0.0 }
 0x6ee   :  { %4916 = vst [vmem:[#allocation2 + $0x28] sm:$0xff] %v4884_v30 }
 0x6f0   :  { %v6788_v10 = vpop.eup %6787 }
 0x6f1   :  { %v4772_v0 = vmul.f32 0.6931472, %v6788_v10 }
 0x6f2   :  { %v6790_v24 = vpop.eup %6789 }
 0x6f3   :  { %v4825_v21 = vadd.f32 %v4772_v0, %v9227_v3  ;;  %v4774_v32 = vmul.f32 0.6931472, %v6790_v24 }
 0x6f4   :  { %v6792_v11 = vpop.eup %6791 }
 0x6f5   :  { %v4857_v2 = vsub.f32 %v8980_v39, %v4825_v21  ;;  %v4826_v57 = vadd.f32 %v4774_v32, %v9231_v34  ;;  %v4768_v47 = vmul.f32 0.6931472, %v6792_v11  ;;  %v4716_v27 = vpop.xlane.xlu0 %4715 }
 0x6f6   :  { %v6794_v58 = vpop.eup %6793  ;;  %6795 = vlog2.f32 %v4716_v27 }
 0x6f7   :  { %v4889_v17 = vsel %vm4174_vm2, %v4857_v2, 0.0  ;;  %v4858_v23 = vsub.f32 %v8988_v63, %v4826_v57  ;;  %v4823_v29 = vadd.f32 %v4768_v47, %v9235_v6  ;;  %v4770_v37 = vmul.f32 0.6931472, %v6794_v58  ;;  %v4718_v41 = vpop.xlane.xlu1 %4717 }
 0x6f8   :  { %4921 = vst [vmem:[#allocation2 + $0x50] sm:$0xff] %v4889_v17  ;;  %6797 = vlog2.f32 %v4718_v41 }
 0x6f9   :  { %v4890_v39 = vsel %vm4174_vm2, %v4858_v23, 0.0  ;;  %v4855_v3 = vsub.f32 %v8997_v59, %v4823_v29  ;;  %v4824_v34 = vadd.f32 %v4770_v37, %v9239_v49  ;;  %v4712_v16 = vpop.xlane.xlu0 %4711 }
 0x6fa   :  { %4922 = vst [vmem:[#allocation2 + $0x58] sm:$0xff] %v4890_v39  ;;  %6799 = vlog2.f32 %v4712_v16 }
 0x6fb   :  { %v4887_v51 = vsel %vm4174_vm2, %v4855_v3, 0.0  ;;  %v4856_v63 = vsub.f32 %v9006_v18, %v4824_v34  ;;  %v4714_v6 = vpop.xlane.xlu1 %4713 }
 0x6fc   :  { %4919 = vst [vmem:[#allocation2 + $0x40] sm:$0xff] %v4887_v51  ;;  %6801 = vlog2.f32 %v4714_v6 }
 0x6fd   :  { %v4888_v35 = vsel %vm4174_vm2, %v4856_v63, 0.0 }
 0x6fe   :  { %4920 = vst [vmem:[#allocation2 + $0x48] sm:$0xff] %v4888_v35 }
 0x700   :  { %v6796_v62 = vpop.eup %6795 }
 0x701   :  { %v4780_v61 = vmul.f32 0.6931472, %v6796_v62 }
 0x702   :  { %v6798_v59 = vpop.eup %6797 }
 0x703   :  { %v4829_v49 = vadd.f32 %v4780_v61, %v9243_v60  ;;  %v4782_v45 = vmul.f32 0.6931472, %v6798_v59  ;;  %v9502_v59 = vld [vmem:[#allocation6_spill] sm:$0xff] }
 0x704   :  { %v6800_v38 = vpop.eup %6799 }
 0x705   :  { %v4861_v48 = vsub.f32 %v9016_v36, %v4829_v49  ;;  %v4830_v12 = vadd.f32 %v4782_v45, %v9247_v55  ;;  %v4776_v43 = vmul.f32 0.6931472, %v6800_v38  ;;  %v4724_v18 = vpop.xlane.xlu0 %4723 }
 0x706   :  { %v6802_v14 = vpop.eup %6801  ;;  %6803 = vlog2.f32 %v4724_v18  ;;  %v9503_v18 = vld [vmem:[#allocation7_spill] sm:$0xff] }
 0x707   :  { %v4893_v31 = vsel %vm4174_vm2, %v4861_v48, 0.0  ;;  %v4862_v50 = vsub.f32 %v9024_v25, %v4830_v12  ;;  %v4827_v30 = vadd.f32 %v4776_v43, %v9251_v52  ;;  %v4778_v10 = vmul.f32 0.6931472, %v6802_v14  ;;  %v4726_v0 = vpop.xlane.xlu1 %4725 }
 0x708   :  { %4925 = vst [vmem:[#allocation2 + $0x70] sm:$0xff] %v4893_v31  ;;  %6805 = vlog2.f32 %v4726_v0 }
 0x709   :  { %v4894_v36 = vsel %vm4174_vm2, %v4862_v50, 0.0  ;;  %v4859_v60 = vsub.f32 %v9033_v33, %v4827_v30  ;;  %v4828_v55 = vadd.f32 %v4778_v10, %v9255_v40  ;;  %v4720_v24 = vpop.xlane.xlu0 %4719  ;;  %v9504_v10 = vld [vmem:[#allocation8_spill] sm:$0xff] }
 0x70a   :  { %4926 = vst [vmem:[#allocation2 + $0x78] sm:$0xff] %v4894_v36  ;;  %6807 = vlog2.f32 %v4720_v24 }
 0x70b   :  { %v4891_v21 = vsel %vm4174_vm2, %v4859_v60, 0.0  ;;  %v4860_v25 = vsub.f32 %v9042_v22, %v4828_v55  ;;  %v4722_v52 = vpop.xlane.xlu1 %4721  ;;  %v9505_v55 = vld [vmem:[#allocation9_spill] sm:$0xff] }
 0x70c   :  { %4923 = vst [vmem:[#allocation2 + $0x60] sm:$0xff] %v4891_v21  ;;  %6809 = vlog2.f32 %v4722_v52 }
 0x70d   :  { %v4892_v32 = vsel %vm4174_vm2, %v4860_v25, 0.0 }
 0x70e   :  { %4924 = vst [vmem:[#allocation2 + $0x68] sm:$0xff] %v4892_v32 }
 0x710   :  { %v6804_v11 = vpop.eup %6803 }
 0x711   :  { %v4788_v2 = vmul.f32 0.6931472, %v6804_v11 }
 0x712   :  { %v6806_v33 = vpop.eup %6805 }
 0x713   :  { %v4833_v40 = vadd.f32 %v4788_v2, %v9259_v15  ;;  %v4790_v57 = vmul.f32 0.6931472, %v6806_v33  ;;  %v9506_v33 = vld [vmem:[#allocation10_spill] sm:$0xff] }
 0x714   :  { %v6808_v47 = vpop.eup %6807 }
 0x715   :  { %v4865_v27 = vsub.f32 %v9052_v46, %v4833_v40  ;;  %v4834_v58 = vadd.f32 %v4790_v57, %v9263_v53  ;;  %v4784_v17 = vmul.f32 0.6931472, %v6808_v47  ;;  %v4732_v22 = vpop.xlane.xlu0 %4731  ;;  %v9507_v57 = vld [vmem:[#allocation18_spill] sm:$0xff] }
 0x716   :  { %v6810_v23 = vpop.eup %6809  ;;  %6811 = vlog2.f32 %v4732_v22 }
 0x717   :  { %v4897_v29 = vsel %vm4174_vm2, %v4865_v27, 0.0  ;;  %v4866_v37 = vsub.f32 %v9060_v7, %v4834_v58  ;;  %v4831_v41 = vadd.f32 %v4784_v17, %v9267_v13  ;;  %v4786_v39 = vmul.f32 0.6931472, %v6810_v23  ;;  %v4734_v3 = vpop.xlane.xlu1 %4733  ;;  %v9501_v7 = vld [vmem:[#allocation5_spill] sm:$0xff]  ;;  %v9508_v23 = vld [vmem:[#allocation11_spill] sm:$0xff] }
 0x718   :  { %4929 = vst [vmem:[#allocation2 + $0x90] sm:$0xff] %v4897_v29  ;;  %6813 = vlog2.f32 %v4734_v3  ;;  %v9509_v3 = vld [vmem:[#allocation12_spill] sm:$0xff] }
 0x719   :  { %v4898_v46 = vsel %vm4174_vm2, %v4866_v37, 0.0  ;;  %v4863_v15 = vsub.f32 %v9069_v9, %v4831_v41  ;;  %v4832_v53 = vadd.f32 %v4786_v39, %v9271_v44  ;;  %v4728_v34 = vpop.xlane.xlu0 %4727 }
 0x71a   :  { %4930 = vst [vmem:[#allocation2 + $0x98] sm:$0xff] %v4898_v46  ;;  %6815 = vlog2.f32 %v4728_v34 }
 0x71b   :  { %v4895_v16 = vsel %vm4174_vm2, %v4863_v15, 0.0  ;;  %v4864_v51 = vsub.f32 %v9501_v7, %v4832_v53  ;;  %v4730_v13 = vpop.xlane.xlu1 %4729 }
 0x71c   :  { %4927 = vst [vmem:[#allocation2 + $0x80] sm:$0xff] %v4895_v16  ;;  %6817 = vlog2.f32 %v4730_v13  ;;  %v9510_v16 = vld [vmem:[#allocation13_spill] sm:$0xff] }
 0x71d   :  { %v4896_v63 = vsel %vm4174_vm2, %v4864_v51, 0.0 }
 0x71e   :  { %4928 = vst [vmem:[#allocation2 + $0x88] sm:$0xff] %v4896_v63 }
 0x720   :  { %v6812_v6 = vpop.eup %6811 }
 0x721   :  { %v4796_v35 = vmul.f32 0.6931472, %v6812_v6 }
 0x722   :  { %v6814_v9 = vpop.eup %6813 }
 0x723   :  { %v4837_v44 = vadd.f32 %v4796_v35, %v9275_v1  ;;  %v4798_v62 = vmul.f32 0.6931472, %v6814_v9 }
 0x724   :  { %v6816_v61 = vpop.eup %6815 }
 0x725   :  { %v4869_v49 = vsub.f32 %v9502_v59, %v4837_v44  ;;  %v4838_v45 = vadd.f32 %v4798_v62, %v9279_v19  ;;  %v4792_v38 = vmul.f32 0.6931472, %v6816_v61  ;;  %v4740_v48 = vpop.xlane.xlu0 %4739  ;;  %v9511_v59 = vld [vmem:[#allocation14_spill] sm:$0xff] }
 0x726   :  { %v6818_v12 = vpop.eup %6817  ;;  %6819 = vlog2.f32 %v4740_v48 }
 0x727   :  { %v4901_v43 = vsel %vm4174_vm2, %v4869_v49, 0.0  ;;  %v4870_v14 = vsub.f32 %v9503_v18, %v4838_v45  ;;  %v4835_v31 = vadd.f32 %v4792_v38, %v9283_v26  ;;  %v4794_v50 = vmul.f32 0.6931472, %v6818_v12  ;;  %v4742_v30 = vpop.xlane.xlu1 %4741  ;;  %v9512_v45 = vld [vmem:[#allocation15_spill] sm:$0xff] }
 0x728   :  { %4933 = vst [vmem:[#allocation2 + $0xb0] sm:$0xff] %v4901_v43  ;;  %6821 = vlog2.f32 %v4742_v30  ;;  %v9515_v30 = vld [vmem:[#allocation17_spill] sm:$0xff] }
 0x729   :  { %v4902_v1 = vsel %vm4174_vm2, %v4870_v14, 0.0  ;;  %v4867_v19 = vsub.f32 %v9504_v10, %v4835_v31  ;;  %v4836_v0 = vadd.f32 %v4794_v50, %v9287_v42  ;;  %v4736_v36 = vpop.xlane.xlu0 %4735  ;;  %v9513_v14 = vld [vmem:[#allocation16_spill] sm:$0xff]  ;;  %v9514_v31 = vld [vmem:[#allocation19_spill] sm:$0xff] }
 0x72a   :  { %4934 = vst [vmem:[#allocation2 + $0xb8] sm:$0xff] %v4902_v1  ;;  %6823 = vlog2.f32 %v4736_v36 }
 0x72b   :  { %v4899_v60 = vsel %vm4174_vm2, %v4867_v19, 0.0  ;;  %v4868_v24 = vsub.f32 %v9505_v55, %v4836_v0  ;;  %v4738_v26 = vpop.xlane.xlu1 %4737 }
 0x72c   :  { %4931 = vst [vmem:[#allocation2 + $0xa0] sm:$0xff] %v4899_v60  ;;  %6825 = vlog2.f32 %v4738_v26 }
 0x72d   :  { %v4900_v21 = vsel %vm4174_vm2, %v4868_v24, 0.0 }
 0x72e   :  { %4932 = vst [vmem:[#allocation2 + $0xa8] sm:$0xff] %v4900_v21 }
 0x730   :  { %v6820_v25 = vpop.eup %6819 }
 0x731   :  { %v4804_v52 = vmul.f32 0.6931472, %v6820_v25 }
 0x732   :  { %v6822_v32 = vpop.eup %6821 }
 0x733   :  { %v4841_v42 = vadd.f32 %v4804_v52, %v9291_v54  ;;  %v4806_v11 = vmul.f32 0.6931472, %v6822_v32 }
 0x734   :  { %v6824_v2 = vpop.eup %6823 }
 0x735   :  { %v4873_v40 = vsub.f32 %v9506_v33, %v4841_v42  ;;  %v4842_v47 = vadd.f32 %v4806_v11, %v9507_v57  ;;  %v4800_v27 = vmul.f32 0.6931472, %v6824_v2 }
 0x736   :  { %v6826_v58 = vpop.eup %6825  ;;  %v4744_v17 = vpop.xlane.xlu0 %4743 }
 0x737   :  { %v4905_v22 = vsel %vm4174_vm2, %v4873_v40, 0.0  ;;  %v4874_v29 = vsub.f32 %v9508_v23, %v4842_v47  ;;  %v4839_v37 = vadd.f32 %v4800_v27, %v9299_v56  ;;  %v4802_v41 = vmul.f32 0.6931472, %v6826_v58 }
 0x738   :  { %4937 = vst [vmem:[#allocation2 + $0xd0] sm:$0xff] %v4905_v22  ;;  %6827 = vlog2.f32 %v4744_v17  ;;  %v4746_v54 = vpop.xlane.xlu1 %4745 }
 0x739   :  { %v4906_v39 = vsel %vm4174_vm2, %v4874_v29, 0.0  ;;  %v4871_v46 = vsub.f32 %v9509_v3, %v4839_v37  ;;  %v4840_v15 = vadd.f32 %v4802_v41, %v9303_v20  ;;  %6829 = vlog2.f32 %v4746_v54 }
 0x73a   :  { %4938 = vst [vmem:[#allocation2 + $0xd8] sm:$0xff] %v4906_v39  ;;  %v4748_v53 = vpop.xlane.xlu0 %4747 }
 0x73b   :  { %v4903_v34 = vsel %vm4174_vm2, %v4871_v46, 0.0  ;;  %v4872_v7 = vsub.f32 %v9510_v16, %v4840_v15  ;;  %6831 = vlog2.f32 %v4748_v53 }
 0x73c   :  { %4935 = vst [vmem:[#allocation2 + $0xc0] sm:$0xff] %v4903_v34  ;;  %v4750_v56 = vpop.xlane.xlu1 %4749 }
 0x73d   :  { %v4904_v51 = vsel %vm4174_vm2, %v4872_v7, 0.0  ;;  %6833 = vlog2.f32 %v4750_v56 }
 0x73e   :  { %4936 = vst [vmem:[#allocation2 + $0xc8] sm:$0xff] %v4904_v51 }
 0x742   :  { %v6828_v13 = vpop.eup %6827 }
 0x743   :  { %v6830_v63 = vpop.eup %6829  ;;  %v4808_v6 = vmul.f32 0.6931472, %v6828_v13 }
 0x744   :  { %v4810_v20 = vmul.f32 0.6931472, %v6830_v63 }
 0x745   :  { %v6832_v35 = vpop.eup %6831  ;;  %v4843_v9 = vadd.f32 %v4808_v6, %v9307_v5 }
 0x746   :  { %v4844_v44 = vadd.f32 %v4810_v20, %v9311_v4  ;;  %v4812_v62 = vmul.f32 0.6931472, %v6832_v35 }
 0x747   :  { %v6834_v61 = vpop.eup %6833  ;;  %v4875_v49 = vsub.f32 %v9511_v59, %v4843_v9 }
 0x748   :  { %v4876_v38 = vsub.f32 %v9512_v45, %v4844_v44  ;;  %v4845_v48 = vadd.f32 %v4812_v62, %v9315_v28  ;;  %v4814_v12 = vmul.f32 0.6931472, %v6834_v61 }
 0x749   :  { %v4907_v43 = vsel %vm4174_vm2, %v4875_v49, 0.0 }
 0x74a   :  { %4939 = vst [vmem:[#allocation2 + $0xe0] sm:$0xff] %v4907_v43  ;;  %v4908_v18 = vsel %vm4174_vm2, %v4876_v38, 0.0  ;;  %v4877_v5 = vsub.f32 %v9513_v14, %v4845_v48  ;;  %v4846_v4 = vadd.f32 %v4814_v12, %v9514_v31 }
 0x74b   :  { %4940 = vst [vmem:[#allocation2 + $0xe8] sm:$0xff] %v4908_v18 }
 0x74c   :  { %v4909_v50 = vsel %vm4174_vm2, %v4877_v5, 0.0  ;;  %v4878_v28 = vsub.f32 %v9515_v30, %v4846_v4 }
 0x74d   :  { %4941 = vst [vmem:[#allocation2 + $0xf0] sm:$0xff] %v4909_v50 }
 0x74e   :  { %v4910_v1 = vsel %vm4174_vm2, %v4878_v28, 0.0 }
 0x74f   :  { %4942 = vst [vmem:[#allocation2 + $0xf8] sm:$0xff] %v4910_v1 }
 0x750   :  { %6847 = shalt.err (!%p6844_p4)
}
 0x751   :  { %s6848_s22 = scalar_lea.hbm %s9470_s7, 4096 }
 0x752   :  { %p6849_p5 = scmp.ne.s32.totalorder %s9470_s7, %s6848_s22  ;;  %p6852_p6 = scmp.lt.u32.totalorder %s6848_s22, %s9470_s7 }
 0x754   :  { %p6854_p7 = pnand %p6852_p6, %p6849_p5 }
 0x756   :  { %6857 = shalt.err (!%p6854_p7)
}
 0x757   :  { %s6862_s27 = smov 128   ;;  %s6863_s28 = smov 8  }
 0x758   :  { %4954 = dma.vmem_to_hbm [thread:$0]  %s4949_s18, 4096, %s9470_s7, [#allocation3], %s6862_s27, %s6862_s27, %s6863_s28  }
 0x759   :  { %6858 = dma.done.wait [#allocation3], 4096  }
 0x75a   :  { %6859 = vsyncadd [#allocation3], 4294963200 }
 0x75b   :  { %4958 = vsyncpa [#allocation3], 1 }

</bundles_post_ra>
